<compile_context>
chip_gen: v7x
topology: tpu7x:2x2x1
jax: 0.10.0
libtpu: 0.0.40
codegen_flags: <defaults>
</compile_context>

<pallas_src>
import numpy as np
import jax
import jax.numpy as jnp
from jax.experimental import pallas as pl
from jax.experimental.pallas import tpu as pltpu


# ----------------------------------------------------------------------------
# Fused Pallas kernel: whole SWNET forward for one batch block
# ----------------------------------------------------------------------------
def _swnet_kernel(x_ref, w1_ref, b1_ref, w2_ref, b2_ref,
                  wih_ref, whh_ref, bl_ref,
                  wsig_ref, bsig_ref, wdep_ref, bdep_ref, head_ref,
                  out_ref, xp_ref):
    f32 = jnp.float32
    Bblk, R, Cin4 = x_ref.shape          # (bblk, L//4, 4*Cin)  -> (bblk, 16, 36)
    Cin = Cin4 // 4                      # 9
    C1 = b1_ref.shape[1] // 2            # 32 (conv1 bias is duplicated -> (1, 64))
    C2 = b2_ref.shape[1]                 # 64
    H = whh_ref.shape[0]                 # 64
    T = R - 4                            # LSTM sequence length (12)

    # ---- l1_1: Conv1d(9->32, k=3, s=2, p=0) + ReLU --------------------------
    # One matmul computes TWO adjacent conv outputs per row:
    #   row m channels = [x[4m] | x[4m+1] | x[4m+2] | x[4m+3] | x[4m+4]] (45)
    #   -> [y1[2m] | y1[2m+1]] (64).  Row R-1's odd output is garbage (unused).
    xa = x_ref[...]                                                  # (B, R, 36)
    xnext = jnp.concatenate(
        [xa[:, 1:, :Cin], jnp.zeros((Bblk, 1, Cin), f32)], axis=1)   # pos 4m+4
    tap1 = jnp.concatenate([xa, xnext], axis=-1)                     # (B, R, 45)
    y1 = jnp.dot(tap1.reshape(Bblk * R, 5 * Cin), w1_ref[...],
                 preferred_element_type=f32) + b1_ref[...]
    y1 = jnp.maximum(y1, 0.0).reshape(Bblk, R, 2 * C1)   # row m = [y1[2m]|y1[2m+1]]

    # ---- MaxPool1d(4, stride=1) + conv2 zero-padding (=2), interleaved ------
    lo = y1[:, :, :C1]                    # y1[2m]
    hi = y1[:, :, C1:]                    # y1[2m+1]
    mrow = jnp.maximum(lo, hi)            # max(y1[2m], y1[2m+1])
    pe = jnp.maximum(mrow[:, 0:R - 2], mrow[:, 1:R - 1])             # pool[2s]
    po = jnp.maximum(jnp.maximum(hi[:, 0:R - 2], mrow[:, 1:R - 1]),
                     lo[:, 2:R])                                     # pool[2s+1]
    zrow = jnp.zeros((Bblk, 1, 2 * C1), f32)
    # padded conv2 input, row r = [padded[2r] | padded[2r+1]]; rows 0 / R-1 = pad
    pad2 = jnp.concatenate(
        [zrow, jnp.concatenate([pe, po], axis=-1), zrow], axis=1)    # (B, R, 64)

    # ---- l1_2: Conv1d(32->64, k=3, s=2, p=2) + ReLU (one fused matmul) ------
    p_next = jnp.concatenate(
        [pad2[:, 1:, :C1], jnp.zeros((Bblk, 1, C1), f32)], axis=1)   # padded[2t+2]
    tap2 = jnp.concatenate([pad2, p_next], axis=-1)                  # (B, R, 96)
    y2 = jnp.dot(tap2.reshape(Bblk * R, 3 * C1), w2_ref[...],
                 preferred_element_type=f32) + b2_ref[...]
    y2 = jnp.maximum(y2, 0.0).reshape(Bblk, R, C2)       # rows 0..R-2 valid (15)

    # ---- MaxPool1d(4, stride=1) -> LSTM features (rows 0..T-1 valid) --------
    def shift_up(v, k):
        if k == 0:
            return v
        return jnp.concatenate([v[:, k:, :], jnp.zeros((Bblk, k, C2), f32)], axis=1)
    feat = jnp.maximum(jnp.maximum(shift_up(y2, 0), shift_up(y2, 1)),
                       jnp.maximum(shift_up(y2, 2), shift_up(y2, 3)))  # (B, R, 64)

    # ---- LSTM: hoisted input projection, one (B,H)@(H,4H) matmul per step ---
    xproj = (jnp.dot(feat.reshape(Bblk * R, C2), wih_ref[...],
                     preferred_element_type=f32) + bl_ref[...])      # (B*R, 4H)
    xp_ref[...] = xproj.reshape(Bblk, R, 4 * H)          # park in VMEM scratch

    whh = whh_ref[...]                                   # (H, 4H)
    wsig = wsig_ref[...]                                  # (1, H)
    h = jnp.zeros((Bblk, H), f32)
    c = jnp.zeros((Bblk, H), f32)
    sig_steps = []
    for t in range(T):                    # static trip count, fully unrolled
        xt = xp_ref[:, t:t + 1, :].reshape(Bblk, 4 * H)
        g = xt + jnp.dot(h, whh, preferred_element_type=f32)
        i_g = jax.nn.sigmoid(g[:, 0:H])
        f_g = jax.nn.sigmoid(g[:, H:2 * H])
        g_g = jnp.tanh(g[:, 2 * H:3 * H])
        o_g = jax.nn.sigmoid(g[:, 3 * H:4 * H])
        c = f_g * c + i_g * g_g
        h = o_g * jnp.tanh(c)
        # fc_signal folded into the step (lane reduce -> XLU slot, no hs scratch)
        sig_steps.append(jnp.sum(h * wsig, axis=-1, keepdims=True) + bsig_ref[...])

    dep = jnp.sum(h * wdep_ref[...], axis=-1, keepdims=True) + bdep_ref[...]

    # ---- heads: single lane-dense (B, 384) store ----------------------------
    # head rows 0..T-1 = linear-interp matrix into cols 0:300 (F.interpolate,
    # mode='linear', align_corners=False); row T = one-hot at col 300 -> depth.
    coeff = jnp.concatenate(sig_steps + [dep], axis=-1)              # (B, T+1)
    out_ref[...] = jnp.dot(coeff, head_ref[...], preferred_element_type=f32)


# ----------------------------------------------------------------------------
# pallas_call wrapper
# ----------------------------------------------------------------------------
_PARAM_KEYS = ("w1", "b1", "w2", "b2", "wih", "whh", "bl",
               "wsig", "bsig", "wdep", "bdep", "head")


def swnet_forward(x, params, *, out_len=300, num_batch_blocks=1):
    """x: (B, 9, L) float32 (NCL, like the PyTorch module); L % 4 == 0.

    num_batch_blocks: keep 1 on single-TC chips (v5e/v6e) and for tiny batches.
    On v7x split across the two TensorCores only when each core gets >= ~256
    matmul rows (B >= ~16); bblk must then be a multiple of 8.  For very large
    batches keep bblk <= ~256 (VMEM on v7x is 64 MiB/TC) and use the batch grid
    for DMA/compute pipelining even on single-TC chips."""
    B, Cin, L = x.shape
    assert L % 4 == 0
    R = L // 4
    T = R - 4
    assert T >= 1
    assert params["head"].shape[0] == T + 1
    head_w = params["head"].shape[1]
    assert B % num_batch_blocks == 0
    bblk = B // num_batch_blocks
    assert num_batch_blocks == 1 or bblk % 8 == 0, \
        "batch block must be a multiple of 8 when the batch grid is split"
    H = params["whh"].shape[0]

    # channels-last + 4 input positions per row: free layout plumbing in XLA,
    # makes every conv tap a contiguous slice inside the kernel (no strided refs)
    x4 = jnp.transpose(x, (0, 2, 1)).astype(jnp.float32).reshape(B, R, 4 * Cin)

    def full_spec(a):
        nd = a.ndim
        return pl.BlockSpec(a.shape, lambda i, nd=nd: (0,) * nd)

    out = pl.pallas_call(
        _swnet_kernel,
        out_shape=jax.ShapeDtypeStruct((B, head_w), jnp.float32),
        grid=(num_batch_blocks,),
        in_specs=[pl.BlockSpec((bblk, R, 4 * Cin), lambda i: (i, 0, 0))]
                 + [full_spec(params[k]) for k in _PARAM_KEYS],
        out_specs=pl.BlockSpec((bblk, head_w), lambda i: (i, 0)),
        scratch_shapes=[pltpu.VMEM((bblk, R, 4 * H), jnp.float32)],  # xproj park
        compiler_params=pltpu.CompilerParams(dimension_semantics=("parallel",)),
    )(x4, *(params[k] for k in _PARAM_KEYS))

    return out[:, :out_len], out[:, out_len:out_len + 1]


# ----------------------------------------------------------------------------
# Host-side helpers (pure layout plumbing, done once)
# ----------------------------------------------------------------------------
def build_interp_matrix(in_len, out_len):
    """Weights of F.interpolate(mode='linear', align_corners=False).
    (Reproduces PyTorch's half-pixel source-index formula with clamping; should
    be spot-checked against torch once offline.)"""
    M = np.zeros((in_len, out_len), dtype=np.float32)
    scale = in_len / out_len
    for j in range(out_len):
        src = max((j + 0.5) * scale - 0.5, 0.0)
        i0 = min(int(np.floor(src)), in_len - 1)
        i1 = min(i0 + 1, in_len - 1)
        lam = src - i0
        M[i0, j] += 1.0 - lam
        M[i1, j] += lam
    return M


def prepare_params(raw):
    """Repack PyTorch-layout weights into the kernel layout."""
    W1 = np.asarray(raw["W1"], np.float32)   # (32, 9, 3)
    b1 = np.asarray(raw["b1"], np.float32)
    W2 = np.asarray(raw["W2"], np.float32)   # (64, 32, 3)
    b2 = np.asarray(raw["b2"], np.float32)
    Cout1, Cin, K = W1.shape
    Cout2 = W2.shape[0]
    H = raw["Whh"].shape[1]

    # conv1 computes two adjacent outputs per row of the (B, L/4, 4*Cin) view:
    #   cols 0:Cout1   -> y1[2m]   (input positions 4m, 4m+1, 4m+2)
    #   cols Cout1:2*  -> y1[2m+1] (input positions 4m+2, 4m+3, 4m+4)
    w1 = np.zeros(((K + 2) * Cin, 2 * Cout1), np.float32)            # (45, 64)
    for k in range(K):
        w1[k * Cin:(k + 1) * Cin, :Cout1] = W1[:, :, k].T
        w1[(k + 2) * Cin:(k + 3) * Cin, Cout1:] = W1[:, :, k].T
    b1p = np.concatenate([b1, b1])[None, :]                          # (1, 64)

    # conv2: the 3 taps fused along K (tap k -> rows 32k:32k+32)
    w2 = np.concatenate([W2[:, :, k].T for k in range(K)], axis=0)   # (96, 64)
    b2p = b2[None, :]                                                # (1, 64)

    # merged output head: interp matrix padded to a 128-multiple width, plus a
    # one-hot row that routes fc_depth into the spare column `out_len`.
    interp = np.asarray(raw["interp"], np.float32)                   # (T, 300)
    T, out_len = interp.shape
    head_w = ((out_len + 1 + 127) // 128) * 128                      # 384
    head = np.zeros((T + 1, head_w), np.float32)
    head[:T, :out_len] = interp
    head[T, out_len] = 1.0

    return dict(
        w1=jnp.asarray(w1), b1=jnp.asarray(b1p),
        w2=jnp.asarray(w2), b2=jnp.asarray(b2p),
        wih=jnp.asarray(np.asarray(raw["Wih"], np.float32).T),       # (H, 4H) i|f|g|o
        whh=jnp.asarray(np.asarray(raw["Whh"], np.float32).T),       # (H, 4H)
        bl=jnp.asarray((np.asarray(raw["bih"], np.float32)
                        + np.asarray(raw["bhh"], np.float32))[None, :]),
        wsig=jnp.asarray(np.asarray(raw["Wsig"], np.float32)),       # (1, H)
        bsig=jnp.asarray(np.asarray(raw["bsig"], np.float32).reshape(1, 1)),
        wdep=jnp.asarray(np.asarray(raw["Wdep"], np.float32)),       # (1, H)
        bdep=jnp.asarray(np.asarray(raw["bdep"], np.float32).reshape(1, 1)),
        head=jnp.asarray(head),                                      # (T+1, 384)
    )


# ----------------------------------------------------------------------------
# Pure-JAX reference (direct transcription of the PyTorch forward) for checking
# ----------------------------------------------------------------------------
def _ref_conv1d(x_cf, W, b, stride, pad):
    if pad:
        x_cf = jnp.pad(x_cf, ((0, 0), (0, 0), (pad, pad)))
    K = W.shape[-1]
    P = (x_cf.shape[-1] - K) // stride + 1
    cols = jnp.stack([x_cf[:, :, stride * t:stride * t + K] for t in range(P)],
                     axis=2)                                   # (B, Cin, P, K)
    return jnp.einsum("bcpk,ock->bop", cols, W) + b[None, :, None]


def _ref_maxpool(x_cf, k=4):
    P = x_cf.shape[-1] - k + 1
    return jnp.max(jnp.stack([x_cf[:, :, s:s + P] for s in range(k)], axis=0), axis=0)


def reference_forward(x, raw):
    o = jax.nn.relu(_ref_conv1d(x, raw["W1"], raw["b1"], 2, 0))
    o = _ref_maxpool(o)
    o = jax.nn.relu(_ref_conv1d(o, raw["W2"], raw["b2"], 2, 2))
    o = _ref_maxpool(o)
    feat = jnp.transpose(o, (0, 2, 1))                         # (B, T, 64)
    B, T, H = feat.shape
    h = jnp.zeros((B, H), jnp.float32)
    c = jnp.zeros((B, H), jnp.float32)
    bb = raw["bih"] + raw["bhh"]
    hs = []
    for t in range(T):
        g = feat[:, t, :] @ raw["Wih"].T + h @ raw["Whh"].T + bb
        i = jax.nn.sigmoid(g[:, 0:H])
        f = jax.nn.sigmoid(g[:, H:2 * H])
        gg = jnp.tanh(g[:, 2 * H:3 * H])
        og = jax.nn.sigmoid(g[:, 3 * H:4 * H])
        c = f * c + i * gg
        h = og * jnp.tanh(c)
        hs.append(h)
    hs = jnp.stack(hs, axis=1)                                 # (B, T, H)
    sig = (hs @ raw["Wsig"].T)[..., 0] + raw["bsig"]           # (B, T)
    sig = sig @ jnp.asarray(raw["interp"])                     # (B, 300)
    dep = h @ raw["Wdep"].T + raw["bdep"]                      # (B, 1)
    return sig, dep


# ----------------------------------------------------------------------------
if __name__ == "__main__":
    H = 64
    key = jax.random.PRNGKey(0)
    ks = jax.random.split(key, 13)

    def u(k, shape, fan_in):
        bound = 1.0 / np.sqrt(fan_in)
        return jax.random.uniform(k, shape, jnp.float32, -bound, bound)

    # raw parameters, shaped exactly as the PyTorch module stores them
    raw = dict(
        W1=u(ks[0], (32, 9, 3), 27),   b1=u(ks[1], (32,), 27),
        W2=u(ks[2], (64, 32, 3), 96),  b2=u(ks[3], (64,), 96),
        Wih=u(ks[4], (4 * H, H), H),   Whh=u(ks[5], (4 * H, H), H),
        bih=u(ks[6], (4 * H,), H),     bhh=u(ks[7], (4 * H,), H),
        Wsig=u(ks[8], (1, H), H),      bsig=u(ks[9], (1,), H),
        Wdep=u(ks[10], (1, H), H),     bdep=u(ks[11], (1,), H),
    )
    seq_len = 12   # L=64 -> conv1 31 -> pool 28 -> conv2 15 -> pool 12
    raw["interp"] = build_interp_matrix(seq_len, 300)

    params = prepare_params(raw)

    x = jax.random.normal(ks[12], (2, 9, 64), jnp.float32)      # NCL, like PyTorch

    fwd = jax.jit(lambda xx: swnet_forward(xx, params, num_batch_blocks=1))
    sig, dep = fwd(x)
    jax.block_until_ready((sig, dep))

    # correctness check against a pure-JAX transcription of the PyTorch forward
    sig_ref, dep_ref = jax.jit(lambda xx: reference_forward(xx, raw))(x)
    assert sig.shape == (2, 300) and dep.shape == (2, 1)
    assert bool(jnp.all(jnp.isfinite(sig))) and bool(jnp.all(jnp.isfinite(dep)))
    np.testing.assert_allclose(np.asarray(sig), np.asarray(sig_ref), rtol=5e-3, atol=5e-3)
    np.testing.assert_allclose(np.asarray(dep), np.asarray(dep_ref), rtol=5e-3, atol=5e-3)
    print("KERNEL_OK")
</pallas_src>

<mosaic_0001>
module attributes {stable_mosaic.version = 11 : i64} {
  func.func @_swnet_kernel(%arg0: i32, %arg1: memref<2x16x36xf32, #tpu.memory_space<vmem>>, %arg2: memref<45x64xf32, #tpu.memory_space<vmem>>, %arg3: memref<1x64xf32, #tpu.memory_space<vmem>>, %arg4: memref<96x64xf32, #tpu.memory_space<vmem>>, %arg5: memref<1x64xf32, #tpu.memory_space<vmem>>, %arg6: memref<64x256xf32, #tpu.memory_space<vmem>>, %arg7: memref<64x256xf32, #tpu.memory_space<vmem>>, %arg8: memref<1x256xf32, #tpu.memory_space<vmem>>, %arg9: memref<1x64xf32, #tpu.memory_space<vmem>>, %arg10: memref<1x1xf32, #tpu.memory_space<vmem>>, %arg11: memref<1x64xf32, #tpu.memory_space<vmem>>, %arg12: memref<1x1xf32, #tpu.memory_space<vmem>>, %arg13: memref<13x384xf32, #tpu.memory_space<vmem>>, %arg14: memref<2x384xf32, #tpu.memory_space<vmem>>, %arg15: memref<2x16x256xf32, #tpu.memory_space<vmem>>) attributes {dimension_semantics = [#tpu.dimension_semantics<parallel>], iteration_bounds = array<i64: 1>, scalar_prefetch = 0 : i64, scratch_operands = 1 : i64, tpu.core_type = #tpu.core_type<tc>, window_params = [{transform_indices = @transform_0, window_bounds = array<i64: 2, 16, 36>}, {pipeline_mode = #tpu.pipeline_mode<synchronous>, transform_indices = @transform_1, window_bounds = array<i64: 45, 64>}, {pipeline_mode = #tpu.pipeline_mode<synchronous>, transform_indices = @transform_2, window_bounds = array<i64: 1, 64>}, {pipeline_mode = #tpu.pipeline_mode<synchronous>, transform_indices = @transform_3, window_bounds = array<i64: 96, 64>}, {pipeline_mode = #tpu.pipeline_mode<synchronous>, transform_indices = @transform_4, window_bounds = array<i64: 1, 64>}, {pipeline_mode = #tpu.pipeline_mode<synchronous>, transform_indices = @transform_5, window_bounds = array<i64: 64, 256>}, {pipeline_mode = #tpu.pipeline_mode<synchronous>, transform_indices = @transform_6, window_bounds = array<i64: 64, 256>}, {pipeline_mode = #tpu.pipeline_mode<synchronous>, transform_indices = @transform_7, window_bounds = array<i64: 1, 256>}, {pipeline_mode = #tpu.pipeline_mode<synchronous>, transform_indices = @transform_8, window_bounds = array<i64: 1, 64>}, {pipeline_mode = #tpu.pipeline_mode<synchronous>, transform_indices = @transform_9, window_bounds = array<i64: 1, 1>}, {pipeline_mode = #tpu.pipeline_mode<synchronous>, transform_indices = @transform_10, window_bounds = array<i64: 1, 64>}, {pipeline_mode = #tpu.pipeline_mode<synchronous>, transform_indices = @transform_11, window_bounds = array<i64: 1, 1>}, {pipeline_mode = #tpu.pipeline_mode<synchronous>, transform_indices = @transform_12, window_bounds = array<i64: 13, 384>}, {transform_indices = @transform_13, window_bounds = array<i64: 2, 384>}]} {
    %c0 = arith.constant 0 : index
    %c0_0 = arith.constant 0 : index
    %c0_1 = arith.constant 0 : index
    %0 = vector.load %arg1[%c0, %c0_0, %c0_1] : memref<2x16x36xf32, #tpu.memory_space<vmem>>, vector<2x16x36xf32>
    %1 = vector.extract_strided_slice %0 {offsets = [0, 1, 0], sizes = [2, 15, 9], strides = [1, 1, 1]} : vector<2x16x36xf32> to vector<2x15x9xf32>
    %cst = arith.constant 0.000000e+00 : f32
    %2 = vector.broadcast %cst : f32 to vector<2x1x9xf32>
    %3 = tpu.concatenate %1, %2 in 1 : vector<2x15x9xf32>, vector<2x1x9xf32> -> vector<2x16x9xf32>
    %4 = tpu.concatenate %0, %3 in 2 : vector<2x16x36xf32>, vector<2x16x9xf32> -> vector<2x16x45xf32>
    %5 = vector.shape_cast %4 : vector<2x16x45xf32> to vector<32x45xf32>
    %c0_2 = arith.constant 0 : index
    %c0_3 = arith.constant 0 : index
    %6 = vector.load %arg2[%c0_2, %c0_3] : memref<45x64xf32, #tpu.memory_space<vmem>>, vector<45x64xf32>
    %cst_4 = arith.constant dense<0.000000e+00> : vector<32x64xf32>
    %7 = tpu.matmul %5, %6, %cst_4 {dimension_numbers = #tpu.dot_dimension_numbers<[1], [0], [0], [1], [0, 0, 1, 1], [], []>} : vector<32x45xf32>, vector<45x64xf32>, vector<32x64xf32> -> vector<32x64xf32>
    %c0_5 = arith.constant 0 : index
    %c0_6 = arith.constant 0 : index
    %8 = vector.load %arg3[%c0_5, %c0_6] : memref<1x64xf32, #tpu.memory_space<vmem>>, vector<1x64xf32>
    %9 = vector.broadcast %8 : vector<1x64xf32> to vector<32x64xf32>
    %10 = arith.addf %7, %9 : vector<32x64xf32>
    %cst_7 = arith.constant 0.000000e+00 : f32
    %11 = vector.broadcast %cst_7 : f32 to vector<32x64xf32>
    %12 = arith.maximumf %10, %11 : vector<32x64xf32>
    %13 = vector.shape_cast %12 : vector<32x64xf32> to vector<2x16x64xf32>
    %14 = vector.extract_strided_slice %13 {offsets = [0, 0, 0], sizes = [2, 16, 32], strides = [1, 1, 1]} : vector<2x16x64xf32> to vector<2x16x32xf32>
    %15 = vector.extract_strided_slice %13 {offsets = [0, 0, 32], sizes = [2, 16, 32], strides = [1, 1, 1]} : vector<2x16x64xf32> to vector<2x16x32xf32>
    %16 = arith.maximumf %14, %15 : vector<2x16x32xf32>
    %17 = vector.extract_strided_slice %16 {offsets = [0, 0, 0], sizes = [2, 14, 32], strides = [1, 1, 1]} : vector<2x16x32xf32> to vector<2x14x32xf32>
    %18 = vector.extract_strided_slice %16 {offsets = [0, 1, 0], sizes = [2, 14, 32], strides = [1, 1, 1]} : vector<2x16x32xf32> to vector<2x14x32xf32>
    %19 = arith.maximumf %17, %18 : vector<2x14x32xf32>
    %20 = vector.extract_strided_slice %15 {offsets = [0, 0, 0], sizes = [2, 14, 32], strides = [1, 1, 1]} : vector<2x16x32xf32> to vector<2x14x32xf32>
    %21 = vector.extract_strided_slice %16 {offsets = [0, 1, 0], sizes = [2, 14, 32], strides = [1, 1, 1]} : vector<2x16x32xf32> to vector<2x14x32xf32>
    %22 = arith.maximumf %20, %21 : vector<2x14x32xf32>
    %23 = vector.extract_strided_slice %14 {offsets = [0, 2, 0], sizes = [2, 14, 32], strides = [1, 1, 1]} : vector<2x16x32xf32> to vector<2x14x32xf32>
    %24 = arith.maximumf %22, %23 : vector<2x14x32xf32>
    %cst_8 = arith.constant 0.000000e+00 : f32
    %25 = vector.broadcast %cst_8 : f32 to vector<2x1x64xf32>
    %26 = tpu.concatenate %19, %24 in 2 : vector<2x14x32xf32>, vector<2x14x32xf32> -> vector<2x14x64xf32>
    %27 = tpu.concatenate %25, %26, %25 in 1 : vector<2x1x64xf32>, vector<2x14x64xf32>, vector<2x1x64xf32> -> vector<2x16x64xf32>
    %28 = vector.extract_strided_slice %27 {offsets = [0, 1, 0], sizes = [2, 15, 32], strides = [1, 1, 1]} : vector<2x16x64xf32> to vector<2x15x32xf32>
    %cst_9 = arith.constant 0.000000e+00 : f32
    %29 = vector.broadcast %cst_9 : f32 to vector<2x1x32xf32>
    %30 = tpu.concatenate %28, %29 in 1 : vector<2x15x32xf32>, vector<2x1x32xf32> -> vector<2x16x32xf32>
    %31 = tpu.concatenate %27, %30 in 2 : vector<2x16x64xf32>, vector<2x16x32xf32> -> vector<2x16x96xf32>
    %32 = vector.shape_cast %31 : vector<2x16x96xf32> to vector<32x96xf32>
    %c0_10 = arith.constant 0 : index
    %c0_11 = arith.constant 0 : index
    %33 = vector.load %arg4[%c0_10, %c0_11] : memref<96x64xf32, #tpu.memory_space<vmem>>, vector<96x64xf32>
    %cst_12 = arith.constant dense<0.000000e+00> : vector<32x64xf32>
    %34 = tpu.matmul %32, %33, %cst_12 {dimension_numbers = #tpu.dot_dimension_numbers<[1], [0], [0], [1], [0, 0, 1, 1], [], []>} : vector<32x96xf32>, vector<96x64xf32>, vector<32x64xf32> -> vector<32x64xf32>
    %c0_13 = arith.constant 0 : index
    %c0_14 = arith.constant 0 : index
    %35 = vector.load %arg5[%c0_13, %c0_14] : memref<1x64xf32, #tpu.memory_space<vmem>>, vector<1x64xf32>
    %36 = vector.broadcast %35 : vector<1x64xf32> to vector<32x64xf32>
    %37 = arith.addf %34, %36 : vector<32x64xf32>
    %cst_15 = arith.constant 0.000000e+00 : f32
    %38 = vector.broadcast %cst_15 : f32 to vector<32x64xf32>
    %39 = arith.maximumf %37, %38 : vector<32x64xf32>
    %40 = vector.shape_cast %39 : vector<32x64xf32> to vector<2x16x64xf32>
    %41 = vector.extract_strided_slice %40 {offsets = [0, 1, 0], sizes = [2, 15, 64], strides = [1, 1, 1]} : vector<2x16x64xf32> to vector<2x15x64xf32>
    %cst_16 = arith.constant 0.000000e+00 : f32
    %42 = vector.broadcast %cst_16 : f32 to vector<2x1x64xf32>
    %43 = tpu.concatenate %41, %42 in 1 : vector<2x15x64xf32>, vector<2x1x64xf32> -> vector<2x16x64xf32>
    %44 = arith.maximumf %40, %43 : vector<2x16x64xf32>
    %45 = vector.extract_strided_slice %40 {offsets = [0, 2, 0], sizes = [2, 14, 64], strides = [1, 1, 1]} : vector<2x16x64xf32> to vector<2x14x64xf32>
    %cst_17 = arith.constant 0.000000e+00 : f32
    %46 = vector.broadcast %cst_17 : f32 to vector<2x2x64xf32>
    %47 = tpu.concatenate %45, %46 in 1 : vector<2x14x64xf32>, vector<2x2x64xf32> -> vector<2x16x64xf32>
    %48 = vector.extract_strided_slice %40 {offsets = [0, 3, 0], sizes = [2, 13, 64], strides = [1, 1, 1]} : vector<2x16x64xf32> to vector<2x13x64xf32>
    %cst_18 = arith.constant 0.000000e+00 : f32
    %49 = vector.broadcast %cst_18 : f32 to vector<2x3x64xf32>
    %50 = tpu.concatenate %48, %49 in 1 : vector<2x13x64xf32>, vector<2x3x64xf32> -> vector<2x16x64xf32>
    %51 = arith.maximumf %47, %50 : vector<2x16x64xf32>
    %52 = arith.maximumf %44, %51 : vector<2x16x64xf32>
    %53 = vector.shape_cast %52 : vector<2x16x64xf32> to vector<32x64xf32>
    %c0_19 = arith.constant 0 : index
    %c0_20 = arith.constant 0 : index
    %54 = vector.load %arg6[%c0_19, %c0_20] : memref<64x256xf32, #tpu.memory_space<vmem>>, vector<64x256xf32>
    %cst_21 = arith.constant dense<0.000000e+00> : vector<32x256xf32>
    %55 = tpu.matmul %53, %54, %cst_21 {dimension_numbers = #tpu.dot_dimension_numbers<[1], [0], [0], [1], [0, 0, 1, 1], [], []>} : vector<32x64xf32>, vector<64x256xf32>, vector<32x256xf32> -> vector<32x256xf32>
    %c0_22 = arith.constant 0 : index
    %c0_23 = arith.constant 0 : index
    %56 = vector.load %arg8[%c0_22, %c0_23] : memref<1x256xf32, #tpu.memory_space<vmem>>, vector<1x256xf32>
    %57 = vector.broadcast %56 : vector<1x256xf32> to vector<32x256xf32>
    %58 = arith.addf %55, %57 : vector<32x256xf32>
    %59 = vector.shape_cast %58 : vector<32x256xf32> to vector<2x16x256xf32>
    %c0_24 = arith.constant 0 : index
    %c0_25 = arith.constant 0 : index
    %c0_26 = arith.constant 0 : index
    %60 = vector.load %arg15[%c0_24, %c0_25, %c0_26] : memref<2x16x256xf32, #tpu.memory_space<vmem>>, vector<2x16x256xf32>
    tpu.vector_store %arg15[%c0_24, %c0_25, %c0_26], %59 {strides = array<i32>} : memref<2x16x256xf32, #tpu.memory_space<vmem>>, vector<2x16x256xf32>,
    %c0_27 = arith.constant 0 : index
    %c0_28 = arith.constant 0 : index
    %61 = vector.load %arg7[%c0_27, %c0_28] : memref<64x256xf32, #tpu.memory_space<vmem>>, vector<64x256xf32>
    %c0_29 = arith.constant 0 : index
    %c0_30 = arith.constant 0 : index
    %62 = vector.load %arg9[%c0_29, %c0_30] : memref<1x64xf32, #tpu.memory_space<vmem>>, vector<1x64xf32>
    %cst_31 = arith.constant 0.000000e+00 : f32
    %63 = vector.broadcast %cst_31 : f32 to vector<2x64xf32>
    %cst_32 = arith.constant 0.000000e+00 : f32
    %64 = vector.broadcast %cst_32 : f32 to vector<2x64xf32>
    %c0_33 = arith.constant 0 : index
    %c0_34 = arith.constant 0 : index
    %c0_35 = arith.constant 0 : index
    %65 = vector.load %arg15[%c0_33, %c0_34, %c0_35] : memref<2x16x256xf32, #tpu.memory_space<vmem>>, vector<2x1x256xf32>
    %66 = vector.shape_cast %65 : vector<2x1x256xf32> to vector<2x256xf32>
    %cst_36 = arith.constant dense<0.000000e+00> : vector<2x256xf32>
    %67 = tpu.matmul %63, %61, %cst_36 {dimension_numbers = #tpu.dot_dimension_numbers<[1], [0], [0], [1], [0, 0, 1, 1], [], []>} : vector<2x64xf32>, vector<64x256xf32>, vector<2x256xf32> -> vector<2x256xf32>
    %68 = arith.addf %66, %67 : vector<2x256xf32>
    %69 = vector.extract_strided_slice %68 {offsets = [0, 0], sizes = [2, 64], strides = [1, 1]} : vector<2x256xf32> to vector<2x64xf32>
    %70 = arith.negf %69 : vector<2x64xf32>
    %71 = math.exp %70 : vector<2x64xf32>
    %cst_37 = arith.constant 1.000000e+00 : f32
    %72 = vector.broadcast %cst_37 : f32 to vector<2x64xf32>
    %73 = arith.addf %72, %71 : vector<2x64xf32>
    %74 = arith.divf %72, %73 : vector<2x64xf32>
    %75 = vector.extract_strided_slice %68 {offsets = [0, 64], sizes = [2, 64], strides = [1, 1]} : vector<2x256xf32> to vector<2x64xf32>
    %76 = arith.negf %75 : vector<2x64xf32>
    %77 = math.exp %76 : vector<2x64xf32>
    %cst_38 = arith.constant 1.000000e+00 : f32
    %78 = vector.broadcast %cst_38 : f32 to vector<2x64xf32>
    %79 = arith.addf %78, %77 : vector<2x64xf32>
    %80 = arith.divf %78, %79 : vector<2x64xf32>
    %81 = vector.extract_strided_slice %68 {offsets = [0, 128], sizes = [2, 64], strides = [1, 1]} : vector<2x256xf32> to vector<2x64xf32>
    %82 = math.tanh %81 : vector<2x64xf32>
    %83 = vector.extract_strided_slice %68 {offsets = [0, 192], sizes = [2, 64], strides = [1, 1]} : vector<2x256xf32> to vector<2x64xf32>
    %84 = arith.negf %83 : vector<2x64xf32>
    %85 = math.exp %84 : vector<2x64xf32>
    %cst_39 = arith.constant 1.000000e+00 : f32
    %86 = vector.broadcast %cst_39 : f32 to vector<2x64xf32>
    %87 = arith.addf %86, %85 : vector<2x64xf32>
    %88 = arith.divf %86, %87 : vector<2x64xf32>
    %89 = arith.mulf %80, %64 : vector<2x64xf32>
    %90 = arith.mulf %74, %82 : vector<2x64xf32>
    %91 = arith.addf %89, %90 : vector<2x64xf32>
    %92 = math.tanh %91 : vector<2x64xf32>
    %93 = arith.mulf %88, %92 : vector<2x64xf32>
    %94 = vector.broadcast %62 : vector<1x64xf32> to vector<2x64xf32>
    %95 = arith.mulf %93, %94 : vector<2x64xf32>
    %cst_40 = arith.constant dense<0.000000e+00> : vector<2xf32>
    %96 = vector.multi_reduction <add>, %95, %cst_40 [1] : vector<2x64xf32> to vector<2xf32>
    %97 = vector.shape_cast %96 : vector<2xf32> to vector<2x1xf32>
    %c0_41 = arith.constant 0 : index
    %c0_42 = arith.constant 0 : index
    %98 = vector.load %arg10[%c0_41, %c0_42] : memref<1x1xf32, #tpu.memory_space<vmem>>, vector<1x1xf32>
    %99 = vector.broadcast %98 : vector<1x1xf32> to vector<2x1xf32>
    %100 = arith.addf %97, %99 : vector<2x1xf32>
    %c0_43 = arith.constant 0 : index
    %c1 = arith.constant 1 : index
    %c0_44 = arith.constant 0 : index
    %101 = vector.load %arg15[%c0_43, %c1, %c0_44] : memref<2x16x256xf32, #tpu.memory_space<vmem>>, vector<2x1x256xf32>
    %102 = vector.shape_cast %101 : vector<2x1x256xf32> to vector<2x256xf32>
    %cst_45 = arith.constant dense<0.000000e+00> : vector<2x256xf32>
    %103 = tpu.matmul %93, %61, %cst_45 {dimension_numbers = #tpu.dot_dimension_numbers<[1], [0], [0], [1], [0, 0, 1, 1], [], []>} : vector<2x64xf32>, vector<64x256xf32>, vector<2x256xf32> -> vector<2x256xf32>
    %104 = arith.addf %102, %103 : vector<2x256xf32>
    %105 = vector.extract_strided_slice %104 {offsets = [0, 0], sizes = [2, 64], strides = [1, 1]} : vector<2x256xf32> to vector<2x64xf32>
    %106 = arith.negf %105 : vector<2x64xf32>
    %107 = math.exp %106 : vector<2x64xf32>
    %cst_46 = arith.constant 1.000000e+00 : f32
    %108 = vector.broadcast %cst_46 : f32 to vector<2x64xf32>
    %109 = arith.addf %108, %107 : vector<2x64xf32>
    %110 = arith.divf %108, %109 : vector<2x64xf32>
    %111 = vector.extract_strided_slice %104 {offsets = [0, 64], sizes = [2, 64], strides = [1, 1]} : vector<2x256xf32> to vector<2x64xf32>
    %112 = arith.negf %111 : vector<2x64xf32>
    %113 = math.exp %112 : vector<2x64xf32>
    %cst_47 = arith.constant 1.000000e+00 : f32
    %114 = vector.broadcast %cst_47 : f32 to vector<2x64xf32>
    %115 = arith.addf %114, %113 : vector<2x64xf32>
    %116 = arith.divf %114, %115 : vector<2x64xf32>
    %117 = vector.extract_strided_slice %104 {offsets = [0, 128], sizes = [2, 64], strides = [1, 1]} : vector<2x256xf32> to vector<2x64xf32>
    %118 = math.tanh %117 : vector<2x64xf32>
    %119 = vector.extract_strided_slice %104 {offsets = [0, 192], sizes = [2, 64], strides = [1, 1]} : vector<2x256xf32> to vector<2x64xf32>
    %120 = arith.negf %119 : vector<2x64xf32>
    %121 = math.exp %120 : vector<2x64xf32>
    %cst_48 = arith.constant 1.000000e+00 : f32
    %122 = vector.broadcast %cst_48 : f32 to vector<2x64xf32>
    %123 = arith.addf %122, %121 : vector<2x64xf32>
    %124 = arith.divf %122, %123 : vector<2x64xf32>
    %125 = arith.mulf %116, %91 : vector<2x64xf32>
    %126 = arith.mulf %110, %118 : vector<2x64xf32>
    %127 = arith.addf %125, %126 : vector<2x64xf32>
    %128 = math.tanh %127 : vector<2x64xf32>
    %129 = arith.mulf %124, %128 : vector<2x64xf32>
    %130 = vector.broadcast %62 : vector<1x64xf32> to vector<2x64xf32>
    %131 = arith.mulf %129, %130 : vector<2x64xf32>
    %cst_49 = arith.constant dense<0.000000e+00> : vector<2xf32>
    %132 = vector.multi_reduction <add>, %131, %cst_49 [1] : vector<2x64xf32> to vector<2xf32>
    %133 = vector.shape_cast %132 : vector<2xf32> to vector<2x1xf32>
    %c0_50 = arith.constant 0 : index
    %c0_51 = arith.constant 0 : index
    %134 = vector.load %arg10[%c0_50, %c0_51] : memref<1x1xf32, #tpu.memory_space<vmem>>, vector<1x1xf32>
    %135 = vector.broadcast %134 : vector<1x1xf32> to vector<2x1xf32>
    %136 = arith.addf %133, %135 : vector<2x1xf32>
    %c0_52 = arith.constant 0 : index
    %c2 = arith.constant 2 : index
    %c0_53 = arith.constant 0 : index
    %137 = vector.load %arg15[%c0_52, %c2, %c0_53] : memref<2x16x256xf32, #tpu.memory_space<vmem>>, vector<2x1x256xf32>
    %138 = vector.shape_cast %137 : vector<2x1x256xf32> to vector<2x256xf32>
    %cst_54 = arith.constant dense<0.000000e+00> : vector<2x256xf32>
    %139 = tpu.matmul %129, %61, %cst_54 {dimension_numbers = #tpu.dot_dimension_numbers<[1], [0], [0], [1], [0, 0, 1, 1], [], []>} : vector<2x64xf32>, vector<64x256xf32>, vector<2x256xf32> -> vector<2x256xf32>
    %140 = arith.addf %138, %139 : vector<2x256xf32>
    %141 = vector.extract_strided_slice %140 {offsets = [0, 0], sizes = [2, 64], strides = [1, 1]} : vector<2x256xf32> to vector<2x64xf32>
    %142 = arith.negf %141 : vector<2x64xf32>
    %143 = math.exp %142 : vector<2x64xf32>
    %cst_55 = arith.constant 1.000000e+00 : f32
    %144 = vector.broadcast %cst_55 : f32 to vector<2x64xf32>
    %145 = arith.addf %144, %143 : vector<2x64xf32>
    %146 = arith.divf %144, %145 : vector<2x64xf32>
    %147 = vector.extract_strided_slice %140 {offsets = [0, 64], sizes = [2, 64], strides = [1, 1]} : vector<2x256xf32> to vector<2x64xf32>
    %148 = arith.negf %147 : vector<2x64xf32>
    %149 = math.exp %148 : vector<2x64xf32>
    %cst_56 = arith.constant 1.000000e+00 : f32
    %150 = vector.broadcast %cst_56 : f32 to vector<2x64xf32>
    %151 = arith.addf %150, %149 : vector<2x64xf32>
    %152 = arith.divf %150, %151 : vector<2x64xf32>
    %153 = vector.extract_strided_slice %140 {offsets = [0, 128], sizes = [2, 64], strides = [1, 1]} : vector<2x256xf32> to vector<2x64xf32>
    %154 = math.tanh %153 : vector<2x64xf32>
    %155 = vector.extract_strided_slice %140 {offsets = [0, 192], sizes = [2, 64], strides = [1, 1]} : vector<2x256xf32> to vector<2x64xf32>
    %156 = arith.negf %155 : vector<2x64xf32>
    %157 = math.exp %156 : vector<2x64xf32>
    %cst_57 = arith.constant 1.000000e+00 : f32
    %158 = vector.broadcast %cst_57 : f32 to vector<2x64xf32>
    %159 = arith.addf %158, %157 : vector<2x64xf32>
    %160 = arith.divf %158, %159 : vector<2x64xf32>
    %161 = arith.mulf %152, %127 : vector<2x64xf32>
    %162 = arith.mulf %146, %154 : vector<2x64xf32>
    %163 = arith.addf %161, %162 : vector<2x64xf32>
    %164 = math.tanh %163 : vector<2x64xf32>
    %165 = arith.mulf %160, %164 : vector<2x64xf32>
    %166 = vector.broadcast %62 : vector<1x64xf32> to vector<2x64xf32>
    %167 = arith.mulf %165, %166 : vector<2x64xf32>
    %cst_58 = arith.constant dense<0.000000e+00> : vector<2xf32>
    %168 = vector.multi_reduction <add>, %167, %cst_58 [1] : vector<2x64xf32> to vector<2xf32>
    %169 = vector.shape_cast %168 : vector<2xf32> to vector<2x1xf32>
    %c0_59 = arith.constant 0 : index
    %c0_60 = arith.constant 0 : index
    %170 = vector.load %arg10[%c0_59, %c0_60] : memref<1x1xf32, #tpu.memory_space<vmem>>, vector<1x1xf32>
    %171 = vector.broadcast %170 : vector<1x1xf32> to vector<2x1xf32>
    %172 = arith.addf %169, %171 : vector<2x1xf32>
    %c0_61 = arith.constant 0 : index
    %c3 = arith.constant 3 : index
    %c0_62 = arith.constant 0 : index
    %173 = vector.load %arg15[%c0_61, %c3, %c0_62] : memref<2x16x256xf32, #tpu.memory_space<vmem>>, vector<2x1x256xf32>
    %174 = vector.shape_cast %173 : vector<2x1x256xf32> to vector<2x256xf32>
    %cst_63 = arith.constant dense<0.000000e+00> : vector<2x256xf32>
    %175 = tpu.matmul %165, %61, %cst_63 {dimension_numbers = #tpu.dot_dimension_numbers<[1], [0], [0], [1], [0, 0, 1, 1], [], []>} : vector<2x64xf32>, vector<64x256xf32>, vector<2x256xf32> -> vector<2x256xf32>
    %176 = arith.addf %174, %175 : vector<2x256xf32>
    %177 = vector.extract_strided_slice %176 {offsets = [0, 0], sizes = [2, 64], strides = [1, 1]} : vector<2x256xf32> to vector<2x64xf32>
    %178 = arith.negf %177 : vector<2x64xf32>
    %179 = math.exp %178 : vector<2x64xf32>
    %cst_64 = arith.constant 1.000000e+00 : f32
    %180 = vector.broadcast %cst_64 : f32 to vector<2x64xf32>
    %181 = arith.addf %180, %179 : vector<2x64xf32>
    %182 = arith.divf %180, %181 : vector<2x64xf32>
    %183 = vector.extract_strided_slice %176 {offsets = [0, 64], sizes = [2, 64], strides = [1, 1]} : vector<2x256xf32> to vector<2x64xf32>
    %184 = arith.negf %183 : vector<2x64xf32>
    %185 = math.exp %184 : vector<2x64xf32>
    %cst_65 = arith.constant 1.000000e+00 : f32
    %186 = vector.broadcast %cst_65 : f32 to vector<2x64xf32>
    %187 = arith.addf %186, %185 : vector<2x64xf32>
    %188 = arith.divf %186, %187 : vector<2x64xf32>
    %189 = vector.extract_strided_slice %176 {offsets = [0, 128], sizes = [2, 64], strides = [1, 1]} : vector<2x256xf32> to vector<2x64xf32>
    %190 = math.tanh %189 : vector<2x64xf32>
    %191 = vector.extract_strided_slice %176 {offsets = [0, 192], sizes = [2, 64], strides = [1, 1]} : vector<2x256xf32> to vector<2x64xf32>
    %192 = arith.negf %191 : vector<2x64xf32>
    %193 = math.exp %192 : vector<2x64xf32>
    %cst_66 = arith.constant 1.000000e+00 : f32
    %194 = vector.broadcast %cst_66 : f32 to vector<2x64xf32>
    %195 = arith.addf %194, %193 : vector<2x64xf32>
    %196 = arith.divf %194, %195 : vector<2x64xf32>
    %197 = arith.mulf %188, %163 : vector<2x64xf32>
    %198 = arith.mulf %182, %190 : vector<2x64xf32>
    %199 = arith.addf %197, %198 : vector<2x64xf32>
    %200 = math.tanh %199 : vector<2x64xf32>
    %201 = arith.mulf %196, %200 : vector<2x64xf32>
    %202 = vector.broadcast %62 : vector<1x64xf32> to vector<2x64xf32>
    %203 = arith.mulf %201, %202 : vector<2x64xf32>
    %cst_67 = arith.constant dense<0.000000e+00> : vector<2xf32>
    %204 = vector.multi_reduction <add>, %203, %cst_67 [1] : vector<2x64xf32> to vector<2xf32>
    %205 = vector.shape_cast %204 : vector<2xf32> to vector<2x1xf32>
    %c0_68 = arith.constant 0 : index
    %c0_69 = arith.constant 0 : index
    %206 = vector.load %arg10[%c0_68, %c0_69] : memref<1x1xf32, #tpu.memory_space<vmem>>, vector<1x1xf32>
    %207 = vector.broadcast %206 : vector<1x1xf32> to vector<2x1xf32>
    %208 = arith.addf %205, %207 : vector<2x1xf32>
    %c0_70 = arith.constant 0 : index
    %c4 = arith.constant 4 : index
    %c0_71 = arith.constant 0 : index
    %209 = vector.load %arg15[%c0_70, %c4, %c0_71] : memref<2x16x256xf32, #tpu.memory_space<vmem>>, vector<2x1x256xf32>
    %210 = vector.shape_cast %209 : vector<2x1x256xf32> to vector<2x256xf32>
    %cst_72 = arith.constant dense<0.000000e+00> : vector<2x256xf32>
    %211 = tpu.matmul %201, %61, %cst_72 {dimension_numbers = #tpu.dot_dimension_numbers<[1], [0], [0], [1], [0, 0, 1, 1], [], []>} : vector<2x64xf32>, vector<64x256xf32>, vector<2x256xf32> -> vector<2x256xf32>
    %212 = arith.addf %210, %211 : vector<2x256xf32>
    %213 = vector.extract_strided_slice %212 {offsets = [0, 0], sizes = [2, 64], strides = [1, 1]} : vector<2x256xf32> to vector<2x64xf32>
    %214 = arith.negf %213 : vector<2x64xf32>
    %215 = math.exp %214 : vector<2x64xf32>
    %cst_73 = arith.constant 1.000000e+00 : f32
    %216 = vector.broadcast %cst_73 : f32 to vector<2x64xf32>
    %217 = arith.addf %216, %215 : vector<2x64xf32>
    %218 = arith.divf %216, %217 : vector<2x64xf32>
    %219 = vector.extract_strided_slice %212 {offsets = [0, 64], sizes = [2, 64], strides = [1, 1]} : vector<2x256xf32> to vector<2x64xf32>
    %220 = arith.negf %219 : vector<2x64xf32>
    %221 = math.exp %220 : vector<2x64xf32>
    %cst_74 = arith.constant 1.000000e+00 : f32
    %222 = vector.broadcast %cst_74 : f32 to vector<2x64xf32>
    %223 = arith.addf %222, %221 : vector<2x64xf32>
    %224 = arith.divf %222, %223 : vector<2x64xf32>
    %225 = vector.extract_strided_slice %212 {offsets = [0, 128], sizes = [2, 64], strides = [1, 1]} : vector<2x256xf32> to vector<2x64xf32>
    %226 = math.tanh %225 : vector<2x64xf32>
    %227 = vector.extract_strided_slice %212 {offsets = [0, 192], sizes = [2, 64], strides = [1, 1]} : vector<2x256xf32> to vector<2x64xf32>
    %228 = arith.negf %227 : vector<2x64xf32>
    %229 = math.exp %228 : vector<2x64xf32>
    %cst_75 = arith.constant 1.000000e+00 : f32
    %230 = vector.broadcast %cst_75 : f32 to vector<2x64xf32>
    %231 = arith.addf %230, %229 : vector<2x64xf32>
    %232 = arith.divf %230, %231 : vector<2x64xf32>
    %233 = arith.mulf %224, %199 : vector<2x64xf32>
    %234 = arith.mulf %218, %226 : vector<2x64xf32>
    %235 = arith.addf %233, %234 : vector<2x64xf32>
    %236 = math.tanh %235 : vector<2x64xf32>
    %237 = arith.mulf %232, %236 : vector<2x64xf32>
    %238 = vector.broadcast %62 : vector<1x64xf32> to vector<2x64xf32>
    %239 = arith.mulf %237, %238 : vector<2x64xf32>
    %cst_76 = arith.constant dense<0.000000e+00> : vector<2xf32>
    %240 = vector.multi_reduction <add>, %239, %cst_76 [1] : vector<2x64xf32> to vector<2xf32>
    %241 = vector.shape_cast %240 : vector<2xf32> to vector<2x1xf32>
    %c0_77 = arith.constant 0 : index
    %c0_78 = arith.constant 0 : index
    %242 = vector.load %arg10[%c0_77, %c0_78] : memref<1x1xf32, #tpu.memory_space<vmem>>, vector<1x1xf32>
    %243 = vector.broadcast %242 : vector<1x1xf32> to vector<2x1xf32>
    %244 = arith.addf %241, %243 : vector<2x1xf32>
    %c0_79 = arith.constant 0 : index
    %c5 = arith.constant 5 : index
    %c0_80 = arith.constant 0 : index
    %245 = vector.load %arg15[%c0_79, %c5, %c0_80] : memref<2x16x256xf32, #tpu.memory_space<vmem>>, vector<2x1x256xf32>
    %246 = vector.shape_cast %245 : vector<2x1x256xf32> to vector<2x256xf32>
    %cst_81 = arith.constant dense<0.000000e+00> : vector<2x256xf32>
    %247 = tpu.matmul %237, %61, %cst_81 {dimension_numbers = #tpu.dot_dimension_numbers<[1], [0], [0], [1], [0, 0, 1, 1], [], []>} : vector<2x64xf32>, vector<64x256xf32>, vector<2x256xf32> -> vector<2x256xf32>
    %248 = arith.addf %246, %247 : vector<2x256xf32>
    %249 = vector.extract_strided_slice %248 {offsets = [0, 0], sizes = [2, 64], strides = [1, 1]} : vector<2x256xf32> to vector<2x64xf32>
    %250 = arith.negf %249 : vector<2x64xf32>
    %251 = math.exp %250 : vector<2x64xf32>
    %cst_82 = arith.constant 1.000000e+00 : f32
    %252 = vector.broadcast %cst_82 : f32 to vector<2x64xf32>
    %253 = arith.addf %252, %251 : vector<2x64xf32>
    %254 = arith.divf %252, %253 : vector<2x64xf32>
    %255 = vector.extract_strided_slice %248 {offsets = [0, 64], sizes = [2, 64], strides = [1, 1]} : vector<2x256xf32> to vector<2x64xf32>
    %256 = arith.negf %255 : vector<2x64xf32>
    %257 = math.exp %256 : vector<2x64xf32>
    %cst_83 = arith.constant 1.000000e+00 : f32
    %258 = vector.broadcast %cst_83 : f32 to vector<2x64xf32>
    %259 = arith.addf %258, %257 : vector<2x64xf32>
    %260 = arith.divf %258, %259 : vector<2x64xf32>
    %261 = vector.extract_strided_slice %248 {offsets = [0, 128], sizes = [2, 64], strides = [1, 1]} : vector<2x256xf32> to vector<2x64xf32>
    %262 = math.tanh %261 : vector<2x64xf32>
    %263 = vector.extract_strided_slice %248 {offsets = [0, 192], sizes = [2, 64], strides = [1, 1]} : vector<2x256xf32> to vector<2x64xf32>
    %264 = arith.negf %263 : vector<2x64xf32>
    %265 = math.exp %264 : vector<2x64xf32>
    %cst_84 = arith.constant 1.000000e+00 : f32
    %266 = vector.broadcast %cst_84 : f32 to vector<2x64xf32>
    %267 = arith.addf %266, %265 : vector<2x64xf32>
    %268 = arith.divf %266, %267 : vector<2x64xf32>
    %269 = arith.mulf %260, %235 : vector<2x64xf32>
    %270 = arith.mulf %254, %262 : vector<2x64xf32>
    %271 = arith.addf %269, %270 : vector<2x64xf32>
    %272 = math.tanh %271 : vector<2x64xf32>
    %273 = arith.mulf %268, %272 : vector<2x64xf32>
    %274 = vector.broadcast %62 : vector<1x64xf32> to vector<2x64xf32>
    %275 = arith.mulf %273, %274 : vector<2x64xf32>
    %cst_85 = arith.constant dense<0.000000e+00> : vector<2xf32>
    %276 = vector.multi_reduction <add>, %275, %cst_85 [1] : vector<2x64xf32> to vector<2xf32>
    %277 = vector.shape_cast %276 : vector<2xf32> to vector<2x1xf32>
    %c0_86 = arith.constant 0 : index
    %c0_87 = arith.constant 0 : index
    %278 = vector.load %arg10[%c0_86, %c0_87] : memref<1x1xf32, #tpu.memory_space<vmem>>, vector<1x1xf32>
    %279 = vector.broadcast %278 : vector<1x1xf32> to vector<2x1xf32>
    %280 = arith.addf %277, %279 : vector<2x1xf32>
    %c0_88 = arith.constant 0 : index
    %c6 = arith.constant 6 : index
    %c0_89 = arith.constant 0 : index
    %281 = vector.load %arg15[%c0_88, %c6, %c0_89] : memref<2x16x256xf32, #tpu.memory_space<vmem>>, vector<2x1x256xf32>
    %282 = vector.shape_cast %281 : vector<2x1x256xf32> to vector<2x256xf32>
    %cst_90 = arith.constant dense<0.000000e+00> : vector<2x256xf32>
    %283 = tpu.matmul %273, %61, %cst_90 {dimension_numbers = #tpu.dot_dimension_numbers<[1], [0], [0], [1], [0, 0, 1, 1], [], []>} : vector<2x64xf32>, vector<64x256xf32>, vector<2x256xf32> -> vector<2x256xf32>
    %284 = arith.addf %282, %283 : vector<2x256xf32>
    %285 = vector.extract_strided_slice %284 {offsets = [0, 0], sizes = [2, 64], strides = [1, 1]} : vector<2x256xf32> to vector<2x64xf32>
    %286 = arith.negf %285 : vector<2x64xf32>
    %287 = math.exp %286 : vector<2x64xf32>
    %cst_91 = arith.constant 1.000000e+00 : f32
    %288 = vector.broadcast %cst_91 : f32 to vector<2x64xf32>
    %289 = arith.addf %288, %287 : vector<2x64xf32>
    %290 = arith.divf %288, %289 : vector<2x64xf32>
    %291 = vector.extract_strided_slice %284 {offsets = [0, 64], sizes = [2, 64], strides = [1, 1]} : vector<2x256xf32> to vector<2x64xf32>
    %292 = arith.negf %291 : vector<2x64xf32>
    %293 = math.exp %292 : vector<2x64xf32>
    %cst_92 = arith.constant 1.000000e+00 : f32
    %294 = vector.broadcast %cst_92 : f32 to vector<2x64xf32>
    %295 = arith.addf %294, %293 : vector<2x64xf32>
    %296 = arith.divf %294, %295 : vector<2x64xf32>
    %297 = vector.extract_strided_slice %284 {offsets = [0, 128], sizes = [2, 64], strides = [1, 1]} : vector<2x256xf32> to vector<2x64xf32>
    %298 = math.tanh %297 : vector<2x64xf32>
    %299 = vector.extract_strided_slice %284 {offsets = [0, 192], sizes = [2, 64], strides = [1, 1]} : vector<2x256xf32> to vector<2x64xf32>
    %300 = arith.negf %299 : vector<2x64xf32>
    %301 = math.exp %300 : vector<2x64xf32>
    %cst_93 = arith.constant 1.000000e+00 : f32
    %302 = vector.broadcast %cst_93 : f32 to vector<2x64xf32>
    %303 = arith.addf %302, %301 : vector<2x64xf32>
    %304 = arith.divf %302, %303 : vector<2x64xf32>
    %305 = arith.mulf %296, %271 : vector<2x64xf32>
    %306 = arith.mulf %290, %298 : vector<2x64xf32>
    %307 = arith.addf %305, %306 : vector<2x64xf32>
    %308 = math.tanh %307 : vector<2x64xf32>
    %309 = arith.mulf %304, %308 : vector<2x64xf32>
    %310 = vector.broadcast %62 : vector<1x64xf32> to vector<2x64xf32>
    %311 = arith.mulf %309, %310 : vector<2x64xf32>
    %cst_94 = arith.constant dense<0.000000e+00> : vector<2xf32>
    %312 = vector.multi_reduction <add>, %311, %cst_94 [1] : vector<2x64xf32> to vector<2xf32>
    %313 = vector.shape_cast %312 : vector<2xf32> to vector<2x1xf32>
    %c0_95 = arith.constant 0 : index
    %c0_96 = arith.constant 0 : index
    %314 = vector.load %arg10[%c0_95, %c0_96] : memref<1x1xf32, #tpu.memory_space<vmem>>, vector<1x1xf32>
    %315 = vector.broadcast %314 : vector<1x1xf32> to vector<2x1xf32>
    %316 = arith.addf %313, %315 : vector<2x1xf32>
    %c0_97 = arith.constant 0 : index
    %c7 = arith.constant 7 : index
    %c0_98 = arith.constant 0 : index
    %317 = vector.load %arg15[%c0_97, %c7, %c0_98] : memref<2x16x256xf32, #tpu.memory_space<vmem>>, vector<2x1x256xf32>
    %318 = vector.shape_cast %317 : vector<2x1x256xf32> to vector<2x256xf32>
    %cst_99 = arith.constant dense<0.000000e+00> : vector<2x256xf32>
    %319 = tpu.matmul %309, %61, %cst_99 {dimension_numbers = #tpu.dot_dimension_numbers<[1], [0], [0], [1], [0, 0, 1, 1], [], []>} : vector<2x64xf32>, vector<64x256xf32>, vector<2x256xf32> -> vector<2x256xf32>
    %320 = arith.addf %318, %319 : vector<2x256xf32>
    %321 = vector.extract_strided_slice %320 {offsets = [0, 0], sizes = [2, 64], strides = [1, 1]} : vector<2x256xf32> to vector<2x64xf32>
    %322 = arith.negf %321 : vector<2x64xf32>
    %323 = math.exp %322 : vector<2x64xf32>
    %cst_100 = arith.constant 1.000000e+00 : f32
    %324 = vector.broadcast %cst_100 : f32 to vector<2x64xf32>
    %325 = arith.addf %324, %323 : vector<2x64xf32>
    %326 = arith.divf %324, %325 : vector<2x64xf32>
    %327 = vector.extract_strided_slice %320 {offsets = [0, 64], sizes = [2, 64], strides = [1, 1]} : vector<2x256xf32> to vector<2x64xf32>
    %328 = arith.negf %327 : vector<2x64xf32>
    %329 = math.exp %328 : vector<2x64xf32>
    %cst_101 = arith.constant 1.000000e+00 : f32
    %330 = vector.broadcast %cst_101 : f32 to vector<2x64xf32>
    %331 = arith.addf %330, %329 : vector<2x64xf32>
    %332 = arith.divf %330, %331 : vector<2x64xf32>
    %333 = vector.extract_strided_slice %320 {offsets = [0, 128], sizes = [2, 64], strides = [1, 1]} : vector<2x256xf32> to vector<2x64xf32>
    %334 = math.tanh %333 : vector<2x64xf32>
    %335 = vector.extract_strided_slice %320 {offsets = [0, 192], sizes = [2, 64], strides = [1, 1]} : vector<2x256xf32> to vector<2x64xf32>
    %336 = arith.negf %335 : vector<2x64xf32>
    %337 = math.exp %336 : vector<2x64xf32>
    %cst_102 = arith.constant 1.000000e+00 : f32
    %338 = vector.broadcast %cst_102 : f32 to vector<2x64xf32>
    %339 = arith.addf %338, %337 : vector<2x64xf32>
    %340 = arith.divf %338, %339 : vector<2x64xf32>
    %341 = arith.mulf %332, %307 : vector<2x64xf32>
    %342 = arith.mulf %326, %334 : vector<2x64xf32>
    %343 = arith.addf %341, %342 : vector<2x64xf32>
    %344 = math.tanh %343 : vector<2x64xf32>
    %345 = arith.mulf %340, %344 : vector<2x64xf32>
    %346 = vector.broadcast %62 : vector<1x64xf32> to vector<2x64xf32>
    %347 = arith.mulf %345, %346 : vector<2x64xf32>
    %cst_103 = arith.constant dense<0.000000e+00> : vector<2xf32>
    %348 = vector.multi_reduction <add>, %347, %cst_103 [1] : vector<2x64xf32> to vector<2xf32>
    %349 = vector.shape_cast %348 : vector<2xf32> to vector<2x1xf32>
    %c0_104 = arith.constant 0 : index
    %c0_105 = arith.constant 0 : index
    %350 = vector.load %arg10[%c0_104, %c0_105] : memref<1x1xf32, #tpu.memory_space<vmem>>, vector<1x1xf32>
    %351 = vector.broadcast %350 : vector<1x1xf32> to vector<2x1xf32>
    %352 = arith.addf %349, %351 : vector<2x1xf32>
    %c0_106 = arith.constant 0 : index
    %c8 = arith.constant 8 : index
    %c0_107 = arith.constant 0 : index
    %353 = vector.load %arg15[%c0_106, %c8, %c0_107] : memref<2x16x256xf32, #tpu.memory_space<vmem>>, vector<2x1x256xf32>
    %354 = vector.shape_cast %353 : vector<2x1x256xf32> to vector<2x256xf32>
    %cst_108 = arith.constant dense<0.000000e+00> : vector<2x256xf32>
    %355 = tpu.matmul %345, %61, %cst_108 {dimension_numbers = #tpu.dot_dimension_numbers<[1], [0], [0], [1], [0, 0, 1, 1], [], []>} : vector<2x64xf32>, vector<64x256xf32>, vector<2x256xf32> -> vector<2x256xf32>
    %356 = arith.addf %354, %355 : vector<2x256xf32>
    %357 = vector.extract_strided_slice %356 {offsets = [0, 0], sizes = [2, 64], strides = [1, 1]} : vector<2x256xf32> to vector<2x64xf32>
    %358 = arith.negf %357 : vector<2x64xf32>
    %359 = math.exp %358 : vector<2x64xf32>
    %cst_109 = arith.constant 1.000000e+00 : f32
    %360 = vector.broadcast %cst_109 : f32 to vector<2x64xf32>
    %361 = arith.addf %360, %359 : vector<2x64xf32>
    %362 = arith.divf %360, %361 : vector<2x64xf32>
    %363 = vector.extract_strided_slice %356 {offsets = [0, 64], sizes = [2, 64], strides = [1, 1]} : vector<2x256xf32> to vector<2x64xf32>
    %364 = arith.negf %363 : vector<2x64xf32>
    %365 = math.exp %364 : vector<2x64xf32>
    %cst_110 = arith.constant 1.000000e+00 : f32
    %366 = vector.broadcast %cst_110 : f32 to vector<2x64xf32>
    %367 = arith.addf %366, %365 : vector<2x64xf32>
    %368 = arith.divf %366, %367 : vector<2x64xf32>
    %369 = vector.extract_strided_slice %356 {offsets = [0, 128], sizes = [2, 64], strides = [1, 1]} : vector<2x256xf32> to vector<2x64xf32>
    %370 = math.tanh %369 : vector<2x64xf32>
    %371 = vector.extract_strided_slice %356 {offsets = [0, 192], sizes = [2, 64], strides = [1, 1]} : vector<2x256xf32> to vector<2x64xf32>
    %372 = arith.negf %371 : vector<2x64xf32>
    %373 = math.exp %372 : vector<2x64xf32>
    %cst_111 = arith.constant 1.000000e+00 : f32
    %374 = vector.broadcast %cst_111 : f32 to vector<2x64xf32>
    %375 = arith.addf %374, %373 : vector<2x64xf32>
    %376 = arith.divf %374, %375 : vector<2x64xf32>
    %377 = arith.mulf %368, %343 : vector<2x64xf32>
    %378 = arith.mulf %362, %370 : vector<2x64xf32>
    %379 = arith.addf %377, %378 : vector<2x64xf32>
    %380 = math.tanh %379 : vector<2x64xf32>
    %381 = arith.mulf %376, %380 : vector<2x64xf32>
    %382 = vector.broadcast %62 : vector<1x64xf32> to vector<2x64xf32>
    %383 = arith.mulf %381, %382 : vector<2x64xf32>
    %cst_112 = arith.constant dense<0.000000e+00> : vector<2xf32>
    %384 = vector.multi_reduction <add>, %383, %cst_112 [1] : vector<2x64xf32> to vector<2xf32>
    %385 = vector.shape_cast %384 : vector<2xf32> to vector<2x1xf32>
    %c0_113 = arith.constant 0 : index
    %c0_114 = arith.constant 0 : index
    %386 = vector.load %arg10[%c0_113, %c0_114] : memref<1x1xf32, #tpu.memory_space<vmem>>, vector<1x1xf32>
    %387 = vector.broadcast %386 : vector<1x1xf32> to vector<2x1xf32>
    %388 = arith.addf %385, %387 : vector<2x1xf32>
    %c0_115 = arith.constant 0 : index
    %c9 = arith.constant 9 : index
    %c0_116 = arith.constant 0 : index
    %389 = vector.load %arg15[%c0_115, %c9, %c0_116] : memref<2x16x256xf32, #tpu.memory_space<vmem>>, vector<2x1x256xf32>
    %390 = vector.shape_cast %389 : vector<2x1x256xf32> to vector<2x256xf32>
    %cst_117 = arith.constant dense<0.000000e+00> : vector<2x256xf32>
    %391 = tpu.matmul %381, %61, %cst_117 {dimension_numbers = #tpu.dot_dimension_numbers<[1], [0], [0], [1], [0, 0, 1, 1], [], []>} : vector<2x64xf32>, vector<64x256xf32>, vector<2x256xf32> -> vector<2x256xf32>
    %392 = arith.addf %390, %391 : vector<2x256xf32>
    %393 = vector.extract_strided_slice %392 {offsets = [0, 0], sizes = [2, 64], strides = [1, 1]} : vector<2x256xf32> to vector<2x64xf32>
    %394 = arith.negf %393 : vector<2x64xf32>
    %395 = math.exp %394 : vector<2x64xf32>
    %cst_118 = arith.constant 1.000000e+00 : f32
    %396 = vector.broadcast %cst_118 : f32 to vector<2x64xf32>
    %397 = arith.addf %396, %395 : vector<2x64xf32>
    %398 = arith.divf %396, %397 : vector<2x64xf32>
    %399 = vector.extract_strided_slice %392 {offsets = [0, 64], sizes = [2, 64], strides = [1, 1]} : vector<2x256xf32> to vector<2x64xf32>
    %400 = arith.negf %399 : vector<2x64xf32>
    %401 = math.exp %400 : vector<2x64xf32>
    %cst_119 = arith.constant 1.000000e+00 : f32
    %402 = vector.broadcast %cst_119 : f32 to vector<2x64xf32>
    %403 = arith.addf %402, %401 : vector<2x64xf32>
    %404 = arith.divf %402, %403 : vector<2x64xf32>
    %405 = vector.extract_strided_slice %392 {offsets = [0, 128], sizes = [2, 64], strides = [1, 1]} : vector<2x256xf32> to vector<2x64xf32>
    %406 = math.tanh %405 : vector<2x64xf32>
    %407 = vector.extract_strided_slice %392 {offsets = [0, 192], sizes = [2, 64], strides = [1, 1]} : vector<2x256xf32> to vector<2x64xf32>
    %408 = arith.negf %407 : vector<2x64xf32>
    %409 = math.exp %408 : vector<2x64xf32>
    %cst_120 = arith.constant 1.000000e+00 : f32
    %410 = vector.broadcast %cst_120 : f32 to vector<2x64xf32>
    %411 = arith.addf %410, %409 : vector<2x64xf32>
    %412 = arith.divf %410, %411 : vector<2x64xf32>
    %413 = arith.mulf %404, %379 : vector<2x64xf32>
    %414 = arith.mulf %398, %406 : vector<2x64xf32>
    %415 = arith.addf %413, %414 : vector<2x64xf32>
    %416 = math.tanh %415 : vector<2x64xf32>
    %417 = arith.mulf %412, %416 : vector<2x64xf32>
    %418 = vector.broadcast %62 : vector<1x64xf32> to vector<2x64xf32>
    %419 = arith.mulf %417, %418 : vector<2x64xf32>
    %cst_121 = arith.constant dense<0.000000e+00> : vector<2xf32>
    %420 = vector.multi_reduction <add>, %419, %cst_121 [1] : vector<2x64xf32> to vector<2xf32>
    %421 = vector.shape_cast %420 : vector<2xf32> to vector<2x1xf32>
    %c0_122 = arith.constant 0 : index
    %c0_123 = arith.constant 0 : index
    %422 = vector.load %arg10[%c0_122, %c0_123] : memref<1x1xf32, #tpu.memory_space<vmem>>, vector<1x1xf32>
    %423 = vector.broadcast %422 : vector<1x1xf32> to vector<2x1xf32>
    %424 = arith.addf %421, %423 : vector<2x1xf32>
    %c0_124 = arith.constant 0 : index
    %c10 = arith.constant 10 : index
    %c0_125 = arith.constant 0 : index
    %425 = vector.load %arg15[%c0_124, %c10, %c0_125] : memref<2x16x256xf32, #tpu.memory_space<vmem>>, vector<2x1x256xf32>
    %426 = vector.shape_cast %425 : vector<2x1x256xf32> to vector<2x256xf32>
    %cst_126 = arith.constant dense<0.000000e+00> : vector<2x256xf32>
    %427 = tpu.matmul %417, %61, %cst_126 {dimension_numbers = #tpu.dot_dimension_numbers<[1], [0], [0], [1], [0, 0, 1, 1], [], []>} : vector<2x64xf32>, vector<64x256xf32>, vector<2x256xf32> -> vector<2x256xf32>
    %428 = arith.addf %426, %427 : vector<2x256xf32>
    %429 = vector.extract_strided_slice %428 {offsets = [0, 0], sizes = [2, 64], strides = [1, 1]} : vector<2x256xf32> to vector<2x64xf32>
    %430 = arith.negf %429 : vector<2x64xf32>
    %431 = math.exp %430 : vector<2x64xf32>
    %cst_127 = arith.constant 1.000000e+00 : f32
    %432 = vector.broadcast %cst_127 : f32 to vector<2x64xf32>
    %433 = arith.addf %432, %431 : vector<2x64xf32>
    %434 = arith.divf %432, %433 : vector<2x64xf32>
    %435 = vector.extract_strided_slice %428 {offsets = [0, 64], sizes = [2, 64], strides = [1, 1]} : vector<2x256xf32> to vector<2x64xf32>
    %436 = arith.negf %435 : vector<2x64xf32>
    %437 = math.exp %436 : vector<2x64xf32>
    %cst_128 = arith.constant 1.000000e+00 : f32
    %438 = vector.broadcast %cst_128 : f32 to vector<2x64xf32>
    %439 = arith.addf %438, %437 : vector<2x64xf32>
    %440 = arith.divf %438, %439 : vector<2x64xf32>
    %441 = vector.extract_strided_slice %428 {offsets = [0, 128], sizes = [2, 64], strides = [1, 1]} : vector<2x256xf32> to vector<2x64xf32>
    %442 = math.tanh %441 : vector<2x64xf32>
    %443 = vector.extract_strided_slice %428 {offsets = [0, 192], sizes = [2, 64], strides = [1, 1]} : vector<2x256xf32> to vector<2x64xf32>
    %444 = arith.negf %443 : vector<2x64xf32>
    %445 = math.exp %444 : vector<2x64xf32>
    %cst_129 = arith.constant 1.000000e+00 : f32
    %446 = vector.broadcast %cst_129 : f32 to vector<2x64xf32>
    %447 = arith.addf %446, %445 : vector<2x64xf32>
    %448 = arith.divf %446, %447 : vector<2x64xf32>
    %449 = arith.mulf %440, %415 : vector<2x64xf32>
    %450 = arith.mulf %434, %442 : vector<2x64xf32>
    %451 = arith.addf %449, %450 : vector<2x64xf32>
    %452 = math.tanh %451 : vector<2x64xf32>
    %453 = arith.mulf %448, %452 : vector<2x64xf32>
    %454 = vector.broadcast %62 : vector<1x64xf32> to vector<2x64xf32>
    %455 = arith.mulf %453, %454 : vector<2x64xf32>
    %cst_130 = arith.constant dense<0.000000e+00> : vector<2xf32>
    %456 = vector.multi_reduction <add>, %455, %cst_130 [1] : vector<2x64xf32> to vector<2xf32>
    %457 = vector.shape_cast %456 : vector<2xf32> to vector<2x1xf32>
    %c0_131 = arith.constant 0 : index
    %c0_132 = arith.constant 0 : index
    %458 = vector.load %arg10[%c0_131, %c0_132] : memref<1x1xf32, #tpu.memory_space<vmem>>, vector<1x1xf32>
    %459 = vector.broadcast %458 : vector<1x1xf32> to vector<2x1xf32>
    %460 = arith.addf %457, %459 : vector<2x1xf32>
    %c0_133 = arith.constant 0 : index
    %c11 = arith.constant 11 : index
    %c0_134 = arith.constant 0 : index
    %461 = vector.load %arg15[%c0_133, %c11, %c0_134] : memref<2x16x256xf32, #tpu.memory_space<vmem>>, vector<2x1x256xf32>
    %462 = vector.shape_cast %461 : vector<2x1x256xf32> to vector<2x256xf32>
    %cst_135 = arith.constant dense<0.000000e+00> : vector<2x256xf32>
    %463 = tpu.matmul %453, %61, %cst_135 {dimension_numbers = #tpu.dot_dimension_numbers<[1], [0], [0], [1], [0, 0, 1, 1], [], []>} : vector<2x64xf32>, vector<64x256xf32>, vector<2x256xf32> -> vector<2x256xf32>
    %464 = arith.addf %462, %463 : vector<2x256xf32>
    %465 = vector.extract_strided_slice %464 {offsets = [0, 0], sizes = [2, 64], strides = [1, 1]} : vector<2x256xf32> to vector<2x64xf32>
    %466 = arith.negf %465 : vector<2x64xf32>
    %467 = math.exp %466 : vector<2x64xf32>
    %cst_136 = arith.constant 1.000000e+00 : f32
    %468 = vector.broadcast %cst_136 : f32 to vector<2x64xf32>
    %469 = arith.addf %468, %467 : vector<2x64xf32>
    %470 = arith.divf %468, %469 : vector<2x64xf32>
    %471 = vector.extract_strided_slice %464 {offsets = [0, 64], sizes = [2, 64], strides = [1, 1]} : vector<2x256xf32> to vector<2x64xf32>
    %472 = arith.negf %471 : vector<2x64xf32>
    %473 = math.exp %472 : vector<2x64xf32>
    %cst_137 = arith.constant 1.000000e+00 : f32
    %474 = vector.broadcast %cst_137 : f32 to vector<2x64xf32>
    %475 = arith.addf %474, %473 : vector<2x64xf32>
    %476 = arith.divf %474, %475 : vector<2x64xf32>
    %477 = vector.extract_strided_slice %464 {offsets = [0, 128], sizes = [2, 64], strides = [1, 1]} : vector<2x256xf32> to vector<2x64xf32>
    %478 = math.tanh %477 : vector<2x64xf32>
    %479 = vector.extract_strided_slice %464 {offsets = [0, 192], sizes = [2, 64], strides = [1, 1]} : vector<2x256xf32> to vector<2x64xf32>
    %480 = arith.negf %479 : vector<2x64xf32>
    %481 = math.exp %480 : vector<2x64xf32>
    %cst_138 = arith.constant 1.000000e+00 : f32
    %482 = vector.broadcast %cst_138 : f32 to vector<2x64xf32>
    %483 = arith.addf %482, %481 : vector<2x64xf32>
    %484 = arith.divf %482, %483 : vector<2x64xf32>
    %485 = arith.mulf %476, %451 : vector<2x64xf32>
    %486 = arith.mulf %470, %478 : vector<2x64xf32>
    %487 = arith.addf %485, %486 : vector<2x64xf32>
    %488 = math.tanh %487 : vector<2x64xf32>
    %489 = arith.mulf %484, %488 : vector<2x64xf32>
    %490 = vector.broadcast %62 : vector<1x64xf32> to vector<2x64xf32>
    %491 = arith.mulf %489, %490 : vector<2x64xf32>
    %cst_139 = arith.constant dense<0.000000e+00> : vector<2xf32>
    %492 = vector.multi_reduction <add>, %491, %cst_139 [1] : vector<2x64xf32> to vector<2xf32>
    %493 = vector.shape_cast %492 : vector<2xf32> to vector<2x1xf32>
    %c0_140 = arith.constant 0 : index
    %c0_141 = arith.constant 0 : index
    %494 = vector.load %arg10[%c0_140, %c0_141] : memref<1x1xf32, #tpu.memory_space<vmem>>, vector<1x1xf32>
    %495 = vector.broadcast %494 : vector<1x1xf32> to vector<2x1xf32>
    %496 = arith.addf %493, %495 : vector<2x1xf32>
    %c0_142 = arith.constant 0 : index
    %c0_143 = arith.constant 0 : index
    %497 = vector.load %arg11[%c0_142, %c0_143] : memref<1x64xf32, #tpu.memory_space<vmem>>, vector<1x64xf32>
    %498 = vector.broadcast %497 : vector<1x64xf32> to vector<2x64xf32>
    %499 = arith.mulf %489, %498 : vector<2x64xf32>
    %cst_144 = arith.constant dense<0.000000e+00> : vector<2xf32>
    %500 = vector.multi_reduction <add>, %499, %cst_144 [1] : vector<2x64xf32> to vector<2xf32>
    %501 = vector.shape_cast %500 : vector<2xf32> to vector<2x1xf32>
    %c0_145 = arith.constant 0 : index
    %c0_146 = arith.constant 0 : index
    %502 = vector.load %arg12[%c0_145, %c0_146] : memref<1x1xf32, #tpu.memory_space<vmem>>, vector<1x1xf32>
    %503 = vector.broadcast %502 : vector<1x1xf32> to vector<2x1xf32>
    %504 = arith.addf %501, %503 : vector<2x1xf32>
    %505 = tpu.concatenate %100, %136, %172, %208, %244, %280, %316, %352, %388, %424, %460, %496, %504 in 1 : vector<2x1xf32>, vector<2x1xf32>, vector<2x1xf32>, vector<2x1xf32>, vector<2x1xf32>, vector<2x1xf32>, vector<2x1xf32>, vector<2x1xf32>, vector<2x1xf32>, vector<2x1xf32>, vector<2x1xf32>, vector<2x1xf32>, vector<2x1xf32> -> vector<2x13xf32>
    %c0_147 = arith.constant 0 : index
    %c0_148 = arith.constant 0 : index
    %506 = vector.load %arg13[%c0_147, %c0_148] : memref<13x384xf32, #tpu.memory_space<vmem>>, vector<13x384xf32>
    %cst_149 = arith.constant dense<0.000000e+00> : vector<2x384xf32>
    %507 = tpu.matmul %505, %506, %cst_149 {dimension_numbers = #tpu.dot_dimension_numbers<[1], [0], [0], [1], [0, 0, 1, 1], [], []>} : vector<2x13xf32>, vector<13x384xf32>, vector<2x384xf32> -> vector<2x384xf32>
    %c0_150 = arith.constant 0 : index
    %c0_151 = arith.constant 0 : index
    %508 = vector.load %arg14[%c0_150, %c0_151] : memref<2x384xf32, #tpu.memory_space<vmem>>, vector<2x384xf32>
    tpu.vector_store %arg14[%c0_150, %c0_151], %507 {strides = array<i32>} : memref<2x384xf32, #tpu.memory_space<vmem>>, vector<2x384xf32>,
    return
  }
  func.func @transform_0(%arg0: i32) -> (i32, i32, i32) {
    %c0_i32 = arith.constant 0 : i32
    %c0_i32_0 = arith.constant 0 : i32
    %c0_i32_1 = arith.constant 0 : i32
    return %arg0, %c0_i32, %c0_i32_0 : i32, i32, i32
  }
  func.func @transform_1(%arg0: i32) -> (i32, i32) {
    %c0_i32 = arith.constant 0 : i32
    %c0_i32_0 = arith.constant 0 : i32
    %c0_i32_1 = arith.constant 0 : i32
    return %c0_i32, %c0_i32_0 : i32, i32
  }
  func.func @transform_2(%arg0: i32) -> (i32, i32) {
    %c0_i32 = arith.constant 0 : i32
    %c0_i32_0 = arith.constant 0 : i32
    %c0_i32_1 = arith.constant 0 : i32
    return %c0_i32, %c0_i32_0 : i32, i32
  }
  func.func @transform_3(%arg0: i32) -> (i32, i32) {
    %c0_i32 = arith.constant 0 : i32
    %c0_i32_0 = arith.constant 0 : i32
    %c0_i32_1 = arith.constant 0 : i32
    return %c0_i32, %c0_i32_0 : i32, i32
  }
  func.func @transform_4(%arg0: i32) -> (i32, i32) {
    %c0_i32 = arith.constant 0 : i32
    %c0_i32_0 = arith.constant 0 : i32
    %c0_i32_1 = arith.constant 0 : i32
    return %c0_i32, %c0_i32_0 : i32, i32
  }
  func.func @transform_5(%arg0: i32) -> (i32, i32) {
    %c0_i32 = arith.constant 0 : i32
    %c0_i32_0 = arith.constant 0 : i32
    %c0_i32_1 = arith.constant 0 : i32
    return %c0_i32, %c0_i32_0 : i32, i32
  }
  func.func @transform_6(%arg0: i32) -> (i32, i32) {
    %c0_i32 = arith.constant 0 : i32
    %c0_i32_0 = arith.constant 0 : i32
    %c0_i32_1 = arith.constant 0 : i32
    return %c0_i32, %c0_i32_0 : i32, i32
  }
  func.func @transform_7(%arg0: i32) -> (i32, i32) {
    %c0_i32 = arith.constant 0 : i32
    %c0_i32_0 = arith.constant 0 : i32
    %c0_i32_1 = arith.constant 0 : i32
    return %c0_i32, %c0_i32_0 : i32, i32
  }
  func.func @transform_8(%arg0: i32) -> (i32, i32) {
    %c0_i32 = arith.constant 0 : i32
    %c0_i32_0 = arith.constant 0 : i32
    %c0_i32_1 = arith.constant 0 : i32
    return %c0_i32, %c0_i32_0 : i32, i32
  }
  func.func @transform_9(%arg0: i32) -> (i32, i32) {
    %c0_i32 = arith.constant 0 : i32
    %c0_i32_0 = arith.constant 0 : i32
    %c0_i32_1 = arith.constant 0 : i32
    return %c0_i32, %c0_i32_0 : i32, i32
  }
  func.func @transform_10(%arg0: i32) -> (i32, i32) {
    %c0_i32 = arith.constant 0 : i32
    %c0_i32_0 = arith.constant 0 : i32
    %c0_i32_1 = arith.constant 0 : i32
    return %c0_i32, %c0_i32_0 : i32, i32
  }
  func.func @transform_11(%arg0: i32) -> (i32, i32) {
    %c0_i32 = arith.constant 0 : i32
    %c0_i32_0 = arith.constant 0 : i32
    %c0_i32_1 = arith.constant 0 : i32
    return %c0_i32, %c0_i32_0 : i32, i32
  }
  func.func @transform_12(%arg0: i32) -> (i32, i32) {
    %c0_i32 = arith.constant 0 : i32
    %c0_i32_0 = arith.constant 0 : i32
    %c0_i32_1 = arith.constant 0 : i32
    return %c0_i32, %c0_i32_0 : i32, i32
  }
  func.func @transform_13(%arg0: i32) -> (i32, i32) {
    %c0_i32 = arith.constant 0 : i32
    %c0_i32_0 = arith.constant 0 : i32
    return %arg0, %c0_i32 : i32, i32
  }
}

</mosaic_0001>

<bundles_post_ra>
// kernel: _lambda_.1
= control target key start
LH: loop header
LB: loop body
LE: loop exit
PB: predicated region body
PF: predicated region fallthrough
CT: control target
= control target key end

     0   :  { %s5336_s0 = inlined_call_operand.vmem [shape: f32[2,16,36], index: 0, kind: input, shape index: {}]   ;;  %s5337_s1 = inlined_call_operand.hbm [shape: f32[45,64], index: 1, kind: input, shape index: {}]   ;;  %s5338_s2 = inlined_call_operand.vmem [shape: f32[1,64], index: 2, kind: input, shape index: {}]   ;;  %s5339_s3 = inlined_call_operand.hbm [shape: f32[96,64], index: 3, kind: input, shape index: {}]   ;;  %s5340_s4 = inlined_call_operand.vmem [shape: f32[1,64], index: 4, kind: input, shape index: {}]   ;;  %s5341_s5 = inlined_call_operand.vmem [shape: f32[64,256], index: 5, kind: input, shape index: {}]   ;;  %s5342_s6 = inlined_call_operand.vmem [shape: f32[64,256], index: 6, kind: input, shape index: {}]   ;;  %s5343_s7 = inlined_call_operand.vmem [shape: f32[1,256], index: 7, kind: input, shape index: {}]   ;;  %s5344_s8 = inlined_call_operand.vmem [shape: f32[1,64], index: 8, kind: input, shape index: {}]   ;;  %s5345_s9 = inlined_call_operand.<no memory space> [shape: f32[1,1], index: 9, kind: input, shape index: {}]   ;;  %s5346_s10 = inlined_call_operand.vmem [shape: f32[1,64], index: 10, kind: input, shape index: {}]   ;;  %s5347_s12 = inlined_call_operand.vmem [shape: f32[13,384], index: 12, kind: input, shape index: {}]   ;;  %s5348_s13 = inlined_call_operand.vmem [shape: f32[2,384], index: 13, kind: output, shape index: {}]   ;;  %s5349_s11 = inlined_call_operand.<no memory space> [shape: f32[1,1], index: 11, kind: input, shape index: {}]  }
   0x1   :  { %v18_v0 = vstv %s5345_s9  ;;  %v20_v1 = vstv %s5349_s11 }
   0x2   :  { %19 = vst [vmem:[#allocation3] sm:$0x1] %v18_v0  ;;  %21 = vst [vmem:[#allocation4] sm:$0x1] %v20_v1 }
   0x3   :  { %22 = vsyncpa [#allocation6], 0 }
   0x4   :  { %23 = vsyncpa [#allocation8], 0  ;;  %s4374_s29 = smov [#allocation5]   ;;  %s4326_s16 = scalar_lea.hbm %s5337_s1, 768 }
   0x5   :  { %s31_s30 = sshll.u32 %s4374_s29, 4  ;;  %p4327_p0 = scmp.ne.s32.totalorder %s5337_s1, %s4326_s16  ;;  %s32_s30 = int_to_ptr.vmem [resolvable:$true] %s31_s30 }
   0x6   :  { %p4330_p1 = scmp.lt.u32.totalorder %s4326_s16, %s5337_s1 }
   0x8   :  { %p4332_p2 = pnand %p4330_p1, %p4327_p0 }
   0xa   :  { %4335 = shalt.err (!%p4332_p2)
}
   0xb   :  { %s4336_s11 = scalar_lea.vmem %s32_s30, 768  ;;  %p4341_p4 = scmp.lt.s32.totalorder %s32_s30, %s32_s30 }
   0xc   :  { %p4337_p3 = scmp.ne.s32.totalorder %s32_s30, %s4336_s11  ;;  %p4342_p5 = scmp.lt.s32.totalorder %s4336_s11, %s4336_s11 }
   0xe   :  { %p4343_p6 = por %p4342_p5, %p4341_p4 }
  0x10   :  { %p4344_p7 = pnand %p4343_p6, %p4337_p3 }
  0x12   :  { %4347 = shalt.err (!%p4344_p7)
}
  0x13   :  { %s4375_s20 = smov 128   ;;  %s4376_s21 = smov 8  }
  0x14   :  { %37 = dma.hbm_to_vmem [thread:$0]  %s5337_s1, 768, %s32_s30, [#allocation6], %s4375_s20, %s4375_s20, %s4376_s21  }
  0x15   :  { %s4377_s24 = smov [#allocation7]   ;;  %s4348_s28 = scalar_lea.hbm %s5339_s3, 1536 }
  0x16   :  { %s45_s25 = sshll.u32 %s4377_s24, 4  ;;  %p4349_p8 = scmp.ne.s32.totalorder %s5339_s3, %s4348_s28  ;;  %s46_s25 = int_to_ptr.vmem [resolvable:$true] %s45_s25 }
  0x17   :  { %p4352_p9 = scmp.lt.u32.totalorder %s4348_s28, %s5339_s3 }
  0x19   :  { %p4354_p10 = pnand %p4352_p9, %p4349_p8 }
  0x1b   :  { %4357 = shalt.err (!%p4354_p10)
}
  0x1c   :  { %s4358_s17 = scalar_lea.vmem %s46_s25, 1536  ;;  %p4363_p12 = scmp.lt.s32.totalorder %s46_s25, %s46_s25 }
  0x1d   :  { %p4359_p11 = scmp.ne.s32.totalorder %s46_s25, %s4358_s17  ;;  %p4364_p13 = scmp.lt.s32.totalorder %s4358_s17, %s4358_s17 }
  0x1f   :  { %p4365_p0 = por %p4364_p13, %p4363_p12 }
  0x21   :  { %p4366_p1 = pnand %p4365_p0, %p4359_p11 }
  0x23   :  { %4369 = shalt.err (!%p4366_p1)
}
  0x24   :  { %51 = dma.hbm_to_vmem [thread:$0]  %s5339_s3, 1536, %s46_s25, [#allocation8], %s4375_s20, %s4375_s20, %s4376_s21  }
  0x25   :  { %4370 = dma.done.wait [#allocation6], 768  }
  0x26   :  { %4371 = vsyncadd [#allocation6], 4294966528 }
  0x27   :  { %4372 = dma.done.wait [#allocation8], 1536  }
  0x28   :  { %4373 = vsyncadd [#allocation8], 4294965760  ;;  %v76_v2 = vld [vmem:[%s5336_s0] sm:$0xff]  ;;  %v77_v3 = vld [vmem:[%s5336_s0 + $0x8] sm:$0xff]  ;;  %vm84_vm0 = vcmask 1046528   ;;  %s4378_s24 = smov 36  }
  0x29   :  { %v78_v4 = vld [vmem:[%s5336_s0 + $0x10] sm:$0xff]  ;;  %v85_v5 = vrot.slane %v76_v2, 1  ;;  %v86_v6 = vrot.slane %v77_v3, 1  ;;  %v79_v7 = vld [vmem:[%s5336_s0 + $0x18] sm:$0xff]  ;;  %v114_v9 = vld [vmem:[#allocation5] sm:$0xff]  ;;  %vm140_vm1 = vcmask 1044480  }
  0x2a   :  { %v88_v8 = vrot.slane %v78_v4, 1  ;;  %v115_v10 = vld [vmem:[#allocation5 + $0x8] sm:$0xff]  ;;  %v89_v11 = vrot.slane %v79_v7, 1  ;;  %v116_v13 = vld [vmem:[#allocation5 + $0x10] sm:$0xff]  ;;  %v117_v14 = vld [vmem:[#allocation5 + $0x18] sm:$0xff]  ;;  %vm4379_vm2 = vmmov 1  }
  0x2b   :  { %v3757_v12 = vpack.c.bf16 %v115_v10, %v114_v9  ;;  %v87_v15 = vsel %vm84_vm0, %v85_v5, %v86_v6  ;;  %v3761_v16 = vpack.c.bf16 %v117_v14, %v116_v13  ;;  %v118_v17 = vld [vmem:[#allocation5 + $0x20] sm:$0xff]  ;;  %v119_v18 = vld [vmem:[#allocation5 + $0x28] sm:$0x1f]  ;;  %v93_v20 = vsel %vm84_vm0, %v86_v6, 0.0  ;;  %vm4518_vm3 = vmpackc.low %vm140_vm1, %vm4379_vm2  ;;  %s4380_s26 = smov 96   ;;  %s4382_s30 = smov 64  }
  0x2c   :  { %97 = vrot.lane.b32.xlu0 %v87_v15, %s4378_s24  ;;  %v90_v19 = vsel %vm84_vm0, %v88_v8, %v89_v11  ;;  %v94_v21 = vsel %vm84_vm0, %v89_v11, 0.0  ;;  %v3765_v22 = vpack.c.bf16 %v119_v18, %v118_v17  ;;  %vm109_vm4 = vcmask 293888   ;;  %v3590_v32 = vld [vmem:[%s5338_s2] ss:$0 sm:$0xff]  ;;  %s4381_s2 = smov 32   ;;  %v369_v6 = vld [vmem:[#allocation7 + $0x10] sm:$0xff] }
  0x2d   :  { %3758 = vmatprep.subr.bf16.mxu0 %v3757_v12  ;;  %101 = vrot.lane.b32.xlu1 %v90_v19, %s4378_s24  ;;  %vm127_vm5 = vcmask 367616   ;;  %vm287_vm6 = vcmask 1045504   ;;  %v368_v5 = vld [vmem:[#allocation7 + $0x8] sm:$0xff]  ;;  %v370_v8 = vld [vmem:[#allocation7 + $0x18] sm:$0xff]  ;;  %v371_v11 = vld [vmem:[#allocation7 + $0x20] sm:$0xff]  ;;  %vm310_vm7 = vcmask 261120  }
  0x2e   :  { %3760 = vmatpush3.bf16.msra.mxu0 %v3757_v12  ;;  %v3775_v10 = vpack.c.bf16 %v370_v8, %v369_v6  ;;  %v372_v12 = vld [vmem:[#allocation7 + $0x28] sm:$0xff]  ;;  %v373_v14 = vld [vmem:[#allocation7 + $0x30] sm:$0xff]  ;;  %v374_v15 = vld [vmem:[#allocation7 + $0x38] sm:$0xff]  ;;  %vm319_vm8 = vcmask 1040384   ;;  %vm362_vm9 = vcmask 523264   ;;  %vm386_vm10 = vcmask 785408  }
  0x2f   :  { %3762 = vmatprep.subr.bf16.mxu0 %v3761_v16  ;;  %v3779_v13 = vpack.c.bf16 %v372_v12, %v371_v11  ;;  %v375_v17 = vld [vmem:[#allocation7 + $0x40] sm:$0xff]  ;;  %v376_v18 = vld [vmem:[#allocation7 + $0x48] sm:$0xff]  ;;  %v545_v12 = vld [vmem:[%s5341_s5 + $0x28] sm:$0xff]  ;;  %vm915_vm11 = vcmask 517120   ;;  %s4386_s14 = smov 2   ;;  %s4387_s15 = smov 4  }
  0x30   :  { %99 = vrot.lane.b32.xlu0 %v93_v20, %s4378_s24  ;;  %v3787_v19 = vpack.c.bf16 %v376_v18, %v375_v17  ;;  %v377_v20 = vld [vmem:[#allocation7 + $0x50] sm:$0xff]  ;;  %v546_v18 = vld [vmem:[%s5341_s5 + $0x30] sm:$0xff]  ;;  %s4388_s11 = smov 3   ;;  %s4390_s0 = smov 6   ;;  %vm4395_vm12 = vmmov 0   ;;  %vm3379_vm13 = vcmask 7168  }
  0x31   :  { %103 = vrot.lane.b32.xlu1 %v94_v21, %s4378_s24  ;;  %v378_v21 = vld [vmem:[#allocation7 + $0x58] sm:$0xff]  ;;  %v544_v17 = vld [vmem:[%s5341_s5 + $0x20] sm:$0xff]  ;;  %s4392_s25 = smov 7   ;;  %vm3381_vm14 = vcmask 15360   ;;  %vm3383_vm15 = vcmask 23552   ;;  %vm3389_vm2 = vcmask 48128  }
  0x32   :  { %3764 = vmatpush3.bf16.msra.mxu0 %v3761_v16  ;;  %v3783_v16 = vpack.c.bf16 %v374_v15, %v373_v14  ;;  %v678_v14 = vld [vmem:[%s5342_s6 + $0x8] sm:$0xff]  ;;  %v3667_v23 = vld [vmem:[#allocation4] ss:$0 sm:$0xff] }
  0x33   :  { %3767 = vmatprep.subr.msk.bf16.mxu0 %vm4518_vm3, %v3765_v22 }
  0x36   :  { %3770 = vmatpush3.bf16.msk.msra.mxu0 %vm4518_vm3, %v3765_v22  ;;  %v3791_v22 = vpack.c.bf16 %v378_v21, %v377_v20  ;;  %v3801_v20 = vpack.c.bf16 %v546_v18, %v544_v17  ;;  %v677_v21 = vld [vmem:[%s5342_s6] sm:$0xff] }
  0x9e   :  { %v98_v24 = vpop.permute.xlu0 %97 }
  0x9f   :  { %v110_v25 = vsel %vm109_vm4, %v76_v2, %v98_v24  ;;  %v102_v26 = vpop.permute.xlu1 %101 }
  0xa0   :  { %3714 = vmatprep.mubr.msk.f32.mxu0 %vm127_vm5, %v110_v25  ;;  %v112_v27 = vsel %vm109_vm4, %v78_v4, %v102_v26  ;;  %v367_v4 = vld [vmem:[#allocation7] sm:$0xff] }
  0xa2   :  { %v100_v28 = vpop.permute.xlu0 %99 }
  0xa3   :  { %v111_v29 = vsel %vm109_vm4, %v77_v3, %v100_v28  ;;  %v104_v30 = vpop.permute.xlu1 %103 }
  0xa4   :  { %3715 = vmatmul.mubr.msk.f32.vlgmr.msra.gmra.mrb[0].mxu0 %vm127_vm5, %v111_v29  ;;  %v113_v31 = vsel %vm109_vm4, %v79_v7, %v104_v30  ;;  %v3771_v7 = vpack.c.bf16 %v368_v5, %v367_v4  ;;  %vm3393_vm4 = vcmask 64512  }
  0xa5   :  { %3717 = vmatprep.mubr.msk.f32.mxu0 %vm127_vm5, %v112_v27 }
  0xa6   :  { %3772 = vmatprep.subr.bf16.mxu1 %v3771_v7 }
  0xa7   :  { %3774 = vmatpush3.bf16.msra.mxu1 %v3771_v7 }
  0xa8   :  { %3718 = vmatmul.mubr.msk.f32.gmra.mrb[2].mxu0 %vm127_vm5, %v113_v31  ;;  %3776 = vmatprep.subr.bf16.mxu1 %v3775_v10  ;;  %vm3395_vm5 = vcmask 72704  }
  0xab   :  { %3778 = vmatpush3.bf16.msra.mxu1 %v3775_v10 }
  0xac   :  { %3780 = vmatprep.subr.bf16.mxu1 %v3779_v13 }
  0xaf   :  { %3782 = vmatpush3.bf16.msra.mxu1 %v3779_v13  ;;  %v547_v13 = vld [vmem:[%s5341_s5 + $0x38] sm:$0xff] }
  0xb0   :  { %3784 = vmatprep.subr.bf16.mxu1 %v3783_v16  ;;  %v3799_v15 = vpack.c.bf16 %v547_v13, %v545_v12 }
  0xb3   :  { %3786 = vmatpush3.bf16.msra.mxu1 %v3783_v16  ;;  %v680_v16 = vld [vmem:[%s5342_s6 + $0x18] sm:$0xff] }
  0xb4   :  { %3788 = vmatprep.subr.bf16.mxu1 %v3787_v19 }
  0xb7   :  { %3790 = vmatpush3.bf16.msra.mxu1 %v3787_v19  ;;  %v4660_v19 = vpack.c.bf16 %v680_v16, %v678_v14 }
  0xb8   :  { %3792 = vmatprep.subr.bf16.mxu1 %v3791_v22 }
  0xbb   :  { %3794 = vmatpush3.bf16.msra.mxu1 %v3791_v22  ;;  %v679_v22 = vld [vmem:[%s5342_s6 + $0x10] sm:$0xff] }
  0xbc   :  { %3812 = vmatprep.subr.bf16.mxu1 %v4660_v19 }
 0x177   :  { %v3716_v33 = vpop.f32.mrb[0].mxu0 }
 0x178   :  { %v216_v34 = vadd.f32 %v3716_v33, %v3590_v32  ;;  %v210_v35 = vpop.f32.mrb[1].mxu0 }
 0x179   :  { %v211_v36 = vadd.f32 %v3590_v32, %v210_v35 }
 0x17a   :  { %v4529_v37 = vmax.f32 %v216_v34, 0.0 }
 0x17b   :  { %v4531_v38 = vmax.f32 %v211_v36, 0.0  ;;  %v3719_v39 = vpop.f32.mrb[2].mxu0 }
 0x17c   :  { %v226_v40 = vadd.f32 %v3719_v39, %v3590_v32  ;;  %239 = vrot.lane.b32.xlu1 %v4529_v37, %s4380_s26  ;;  %v220_v41 = vpop.f32.mrb[3].mxu0  ;;  %v289_v57 = vrot.slane %v4529_v37, 2 }
 0x17d   :  { %v221_v42 = vadd.f32 %v3590_v32, %v220_v41  ;;  %237 = vrot.lane.b32.xlu0 %v4531_v38, %s4380_s26  ;;  %v288_v58 = vrot.slane %v4531_v38, 2 }
 0x17e   :  { %v4535_v43 = vmax.f32 %v226_v40, 0.0 }
 0x17f   :  { %v4537_v44 = vmax.f32 %v221_v42, 0.0  ;;  %v290_v63 = vsel %vm287_vm6, %v288_v58, %v289_v57 }
 0x180   :  { %243 = vrot.lane.b32.xlu1 %v4535_v43, %s4380_s26  ;;  %v292_v2 = vrot.slane %v4535_v43, 2 }
 0x181   :  { %241 = vrot.lane.b32.xlu0 %v4537_v44, %s4380_s26  ;;  %v291_v3 = vrot.slane %v4537_v44, 2  ;;  %s4393_s26 = smov 10  }
 0x183   :  { %v293_v9 = vsel %vm287_vm6, %v291_v3, %v292_v2 }
 0x1ee   :  { %v240_v45 = vpop.permute.xlu1 %239 }
 0x1ef   :  { %v4542_v46 = vmax.f32 %v4529_v37, %v240_v45  ;;  %v238_v47 = vpop.permute.xlu0 %237 }
 0x1f0   :  { %v4545_v48 = vmax.f32 %v4531_v38, %v238_v47 }
 0x1f1   :  { %v4548_v49 = vrot.slane %v4542_v46, 1 }
 0x1f2   :  { %v257_v50 = vrot.slane %v4545_v48, 1  ;;  %v244_v51 = vpop.permute.xlu1 %243 }
 0x1f3   :  { %v268_v52 = vmax.f32 %v4542_v46, %v4548_v49  ;;  %v4554_v53 = vmax.f32 %v4535_v43, %v244_v51  ;;  %273 = vrot.lane.b32.xlu1 %v4548_v49, %s4381_s2  ;;  %v242_v54 = vpop.permute.xlu0 %241  ;;  %v540_v51 = vld [vmem:[%s5341_s5] sm:$0xff] }
 0x1f4   :  { %v4559_v55 = vmax.f32 %v4537_v44, %v242_v54  ;;  %v4563_v56 = vsel %vm84_vm0, %v257_v50, %v4548_v49  ;;  %v541_v50 = vld [vmem:[%s5341_s5 + $0x8] sm:$0xff] }
 0x1f5   :  { %v4568_v59 = vrot.slane %v4554_v53, 1  ;;  %271 = vrot.lane.b32.xlu0 %v4563_v56, %s4381_s2  ;;  %v267_v60 = vmax.f32 %v4545_v48, %v4563_v56  ;;  %v542_v56 = vld [vmem:[%s5341_s5 + $0x10] sm:$0xff] }
 0x1f6   :  { %v260_v61 = vrot.slane %v4559_v55, 1 }
 0x1f7   :  { %v270_v62 = vmax.f32 %v4554_v53, %v4568_v59  ;;  %296 = vrot.lane.b32.xlu1 %v289_v57, %s4381_s2 }
 0x1f8   :  { %v4581_v0 = vsel %vm84_vm0, %v260_v61, %v4568_v59 }
 0x1f9   :  { %294 = vrot.lane.b32.xlu0 %v290_v63, %s4381_s2  ;;  %v269_v1 = vmax.f32 %v4559_v55, %v4581_v0 }
 0x1fb   :  { %277 = vrot.lane.b32.xlu1 %v4568_v59, %s4381_s2 }
 0x1fd   :  { %275 = vrot.lane.b32.xlu0 %v4581_v0, %s4381_s2 }
 0x1ff   :  { %300 = vrot.lane.b32.xlu1 %v292_v2, %s4381_s2 }
 0x201   :  { %298 = vrot.lane.b32.xlu0 %v293_v9, %s4381_s2  ;;  %s4394_s2 = smov 9  }
 0x265   :  { %v274_v24 = vpop.permute.xlu1 %273 }
 0x266   :  { %v284_v26 = vmax.f32 %v4529_v37, %v274_v24  ;;  %v4668_v24 = vpack.c.bf16 %v679_v22, %v677_v21 }
 0x267   :  { %v272_v25 = vpop.permute.xlu0 %271 }
 0x268   :  { %v283_v28 = vmax.f32 %v4531_v38, %v272_v25  ;;  %v549_v25 = vld [vmem:[%s5341_s5 + $0x48] sm:$0xff] }
 0x269   :  { %v297_v27 = vpop.permute.xlu1 %296 }
 0x26a   :  { %v307_v29 = vmax.f32 %v284_v26, %v297_v27  ;;  %v551_v26 = vld [vmem:[%s5341_s5 + $0x58] sm:$0xff]  ;;  %v682_v27 = vld [vmem:[%s5342_s6 + $0x28] sm:$0xff] }
 0x26b   :  { %v295_v30 = vpop.permute.xlu0 %294 }
 0x26c   :  { %v312_v31 = vsel %vm310_vm7, %v268_v52, %v307_v29  ;;  %v306_v32 = vmax.f32 %v283_v28, %v295_v30  ;;  %v3803_v28 = vpack.c.bf16 %v551_v26, %v549_v25  ;;  %v684_v29 = vld [vmem:[%s5342_s6 + $0x38] sm:$0xff]  ;;  %v548_v30 = vld [vmem:[%s5341_s5 + $0x40] sm:$0xff] }
 0x26d   :  { %v278_v33 = vpop.permute.xlu1 %277  ;;  %v321_v35 = vrot.slane %v312_v31, 7  ;;  %v550_v31 = vld [vmem:[%s5341_s5 + $0x50] sm:$0xff] }
 0x26e   :  { %v311_v34 = vsel %vm310_vm7, %v267_v60, %v306_v32  ;;  %v286_v37 = vmax.f32 %v4535_v43, %v278_v33  ;;  %v543_v43 = vld [vmem:[%s5341_s5 + $0x18] sm:$0xff]  ;;  %v3797_v60 = vpack.c.bf16 %v542_v56, %v540_v51  ;;  %v4690_v32 = vpack.c.bf16 %v684_v29, %v682_v27 }
 0x26f   :  { %v320_v36 = vrot.slane %v311_v34, 7  ;;  %v276_v39 = vpop.permute.xlu0 %275  ;;  %v3795_v54 = vpack.c.bf16 %v543_v43, %v541_v50  ;;  %v3805_v33 = vpack.c.bf16 %v550_v31, %v548_v30  ;;  %v681_v34 = vld [vmem:[%s5342_s6 + $0x20] sm:$0xff]  ;;  %v690_v43 = vld [vmem:[%s5342_s6 + $0x68] sm:$0xff]  ;;  %v692_v51 = vld [vmem:[%s5342_s6 + $0x78] sm:$0xff]  ;;  %v4383_v56 = vmov 0.0  }
 0x270   :  { %v285_v42 = vmax.f32 %v4537_v44, %v276_v39  ;;  %v553_v39 = vld [vmem:[%s5341_s5 + $0x68] sm:$0xff]  ;;  %644 = vmatprep.mubr.f32.mxu0 %v4383_v56 }
 0x271   :  { %v301_v40 = vpop.permute.xlu1 %300  ;;  %v322_v38 = vsel %vm319_vm8, %v320_v36, %v321_v35  ;;  %v330_v41 = vsel %vm319_vm8, 0.0, %v320_v36  ;;  %3796 = vmatprep.subr.bf16.mxu0 %v3795_v54  ;;  %v683_v35 = vld [vmem:[%s5342_s6 + $0x30] sm:$0xff] }
 0x272   :  { %v309_v45 = vmax.f32 %v286_v37, %v301_v40  ;;  %v332_v46 = vsel %vm84_vm0, %v322_v38, 0.0  ;;  %v338_v47 = vrot.slane %v330_v41, 1  ;;  %3798 = vmatpush1.bf16.msra.mxu0 %v3797_v60  ;;  %v4698_v36 = vpack.c.bf16 %v683_v35, %v681_v34  ;;  %v555_v37 = vld [vmem:[%s5341_s5 + $0x78] sm:$0xff]  ;;  %v686_v40 = vld [vmem:[%s5342_s6 + $0x48] sm:$0xff]  ;;  %v691_v54 = vld [vmem:[%s5342_s6 + $0x70] sm:$0xff] }
 0x273   :  { %v299_v48 = vpop.permute.xlu0 %298  ;;  %v339_v49 = vrot.slane %v332_v46, 1  ;;  %3800 = vmatprep.subr.bf16.mxu0 %v3799_v15  ;;  %v3807_v38 = vpack.c.bf16 %v555_v37, %v553_v39 }
 0x274   :  { %v314_v44 = vsel %vm310_vm7, %v270_v62, %v309_v45  ;;  %v308_v52 = vmax.f32 %v285_v42, %v299_v48  ;;  %v552_v42 = vld [vmem:[%s5341_s5 + $0x60] sm:$0xff]  ;;  %v554_v45 = vld [vmem:[%s5341_s5 + $0x70] sm:$0xff] }
 0x275   :  { %v346_v57 = vsel %vm84_vm0, %v339_v49, 0.0  ;;  %v340_v58 = vsel %vm84_vm0, %v338_v47, %v339_v49  ;;  %v324_v53 = vrot.slane %v314_v44, 7  ;;  %v3809_v47 = vpack.c.bf16 %v554_v45, %v552_v42  ;;  %v685_v48 = vld [vmem:[%s5342_s6 + $0x40] sm:$0xff]  ;;  %v687_v49 = vld [vmem:[%s5342_s6 + $0x50] sm:$0xff] }
 0x276   :  { %v313_v61 = vsel %vm310_vm7, %v269_v1, %v308_v52  ;;  %352 = vrot.lane.b32.xlu1 %v346_v57, %s4382_s30  ;;  %350 = vrot.lane.b32.xlu0 %v340_v58, %s4382_s30  ;;  %v4728_v50 = vpack.c.bf16 %v687_v49, %v685_v48  ;;  %v4738_v44 = vpack.c.bf16 %v692_v51, %v690_v43  ;;  %v689_v52 = vld [vmem:[%s5342_s6 + $0x60] sm:$0xff]  ;;  %vm3399_vm7 = vcmask 89088  }
 0x277   :  { %v323_v59 = vrot.slane %v313_v61, 7  ;;  %3802 = vmatpush1.bf16.msra.mxu0 %v3801_v20  ;;  %v4748_v57 = vpack.c.bf16 %v691_v54, %v689_v52  ;;  %v3596_v58 = vld [vmem:[%s5340_s4] ss:$0 sm:$0xff]  ;;  %v558_v52 = vlaneseq }
 0x278   :  { %3804 = vmatprep.subr.bf16.mxu0 %v3803_v28 }
 0x279   :  { %v325_v62 = vsel %vm319_vm8, %v323_v59, %v324_v53  ;;  %v331_v63 = vsel %vm319_vm8, 0.0, %v323_v59  ;;  %v4795_v54 = vshrl.u32 %v558_v52, 7  ;;  %vm3401_vm8 = vcmask 97280  }
 0x27a   :  { %v333_v2 = vsel %vm84_vm0, %v325_v62, 0.0  ;;  %v341_v3 = vrot.slane %v331_v63, 1 }
 0x27b   :  { %v342_v4 = vrot.slane %v333_v2, 1  ;;  %3806 = vmatpush1.bf16.msra.mxu0 %v3805_v33 }
 0x27c   :  { %3808 = vmatprep.subr.bf16.mxu0 %v3807_v38 }
 0x27d   :  { %v347_v55 = vsel %vm84_vm0, %v342_v4, 0.0  ;;  %v343_v0 = vsel %vm84_vm0, %v341_v3, %v342_v4 }
 0x27e   :  { %356 = vrot.lane.b32.xlu1 %v347_v55, %s4382_s30  ;;  %354 = vrot.lane.b32.xlu0 %v343_v0, %s4382_s30 }
 0x27f   :  { %3810 = vmatpush1.bf16.msra.mxu0 %v3809_v47 }
 0x280   :  { %3828 = vmatprep.subr.bf16.mxu0 %v4660_v19 }
 0x2e8   :  { %v353_v1 = vpop.permute.xlu1 %352  ;;  %v351_v5 = vpop.permute.xlu0 %350 }
 0x2e9   :  { %v364_v6 = vsel %vm362_vm9, %v332_v46, %v353_v1  ;;  %v363_v7 = vsel %vm362_vm9, %v330_v41, %v351_v5  ;;  %v688_v41 = vld [vmem:[%s5342_s6 + $0x58] sm:$0xff]  ;;  %s4397_s6 = smov 11  }
 0x2ea   :  { %3744 = vmatprep.mubr.msk.f32.mxu1 %vm386_vm10, %v363_v7  ;;  %v4720_v46 = vpack.c.bf16 %v688_v41, %v686_v40 }
 0x2eb   :  { %3745 = vmatmul.mubr.msk.f32.vlgmr.msra.gmra.mrb[0].mxu1 %vm386_vm10, %v364_v6 }
 0x2ec   :  { %3814 = vmatpush1.bf16.msra.mxu1 %v4668_v24 }
 0x2ed   :  { %3816 = vmatprep.subr.bf16.mxu1 %v4690_v32 }
 0x2f0   :  { %v357_v8 = vpop.permute.xlu1 %356  ;;  %v355_v9 = vpop.permute.xlu0 %354  ;;  %3818 = vmatpush1.bf16.msra.mxu1 %v4698_v36 }
 0x2f1   :  { %v366_v10 = vsel %vm362_vm9, %v333_v2, %v357_v8  ;;  %v365_v11 = vsel %vm362_vm9, %v331_v63, %v355_v9  ;;  %3820 = vmatprep.subr.bf16.mxu1 %v4720_v46 }
 0x2f2   :  { %3747 = vmatprep.mubr.msk.f32.mxu1 %vm386_vm10, %v365_v11 }
 0x2f3   :  { %3748 = vmatmul.mubr.msk.f32.gmra.mrb[2].mxu1 %vm386_vm10, %v366_v10 }
 0x2f4   :  { %3822 = vmatpush1.bf16.msra.mxu1 %v4728_v50  ;;  %764 = vmatprep.mubr.f32.mxu1 %v4383_v56 }
 0x2f5   :  { %3824 = vmatprep.subr.bf16.mxu1 %v4738_v44 }
 0x2f8   :  { %3826 = vmatpush1.bf16.msra.mxu1 %v4748_v57 }
 0x2f9   :  { %3844 = vmatprep.subr.bf16.mxu1 %v4660_v19 }
 0x2fb   :  { %765 = vmatmul.mubr.f32.vlgmr.msra.gmra.mrb[4].mxu1 %v4383_v56 }
 0x2fc   :  { %3846 = vmatpush1.bf16.msra.mxu1 %v4668_v24  ;;  %1227 = vmatprep.mubr.f32.mxu1 %v4383_v56 }
 0x2fd   :  { %3848 = vmatprep.subr.bf16.mxu1 %v4690_v32 }
 0x300   :  { %3850 = vmatpush1.bf16.msra.mxu1 %v4698_v36 }
 0x301   :  { %3852 = vmatprep.subr.bf16.mxu1 %v4720_v46 }
 0x304   :  { %3854 = vmatpush1.bf16.msra.mxu1 %v4728_v50 }
 0x305   :  { %3856 = vmatprep.subr.bf16.mxu1 %v4738_v44 }
 0x308   :  { %3858 = vmatpush1.bf16.msra.mxu1 %v4748_v57 }
 0x309   :  { %3876 = vmatprep.subr.bf16.mxu1 %v4660_v19 }
 0x3be   :  { %v3746_v60 = vpop.f32.mrb[0].mxu1 }
 0x3bf   :  { %v471_v61 = vadd.f32 %v3746_v60, %v3596_v58  ;;  %v465_v53 = vpop.f32.mrb[1].mxu1 }
 0x3c0   :  { %v466_v59 = vadd.f32 %v3596_v58, %v465_v53  ;;  %v556_v53 = vld [vmem:[%s5343_s7] sm:$0x3] }
 0x3c1   :  { %v485_v62 = vmax.f32 %v471_v61, 0.0  ;;  %v560_v61 = vsub.s32 0, %v4795_v54 }
 0x3c2   :  { %v484_v63 = vmax.f32 %v466_v59, 0.0  ;;  %v564_v59 = vsub.s32 1, %v4795_v54 }
 0x3c3   :  { %v493_v2 = vrot.slane %v485_v62, 1  ;;  %v509_v3 = vrot.slane %v485_v62, 2  ;;  %v521_v4 = vrot.slane %v485_v62, 3 }
 0x3c4   :  { %v492_v55 = vrot.slane %v484_v63, 1  ;;  %v508_v0 = vrot.slane %v484_v63, 2  ;;  %v520_v1 = vrot.slane %v484_v63, 3 }
 0x3c5   :  { %v502_v5 = vsel %vm84_vm0, %v493_v2, 0.0  ;;  %v518_v6 = vsel %vm287_vm6, %v509_v3, 0.0  ;;  %v530_v11 = vsel %vm140_vm1, %v521_v4, 0.0 }
 0x3c6   :  { %v494_v7 = vsel %vm84_vm0, %v492_v55, %v493_v2  ;;  %v510_v8 = vsel %vm287_vm6, %v508_v0, %v509_v3  ;;  %v522_v9 = vsel %vm140_vm1, %v520_v1, %v521_v4  ;;  %v3749_v10 = vpop.f32.mrb[2].mxu1  ;;  %v505_v17 = vmax.f32 %v485_v62, %v502_v5 }
 0x3c7   :  { %v504_v12 = vmax.f32 %v484_v63, %v494_v7  ;;  %v532_v13 = vmax.f32 %v510_v8, %v522_v9  ;;  %v481_v14 = vadd.f32 %v3749_v10, %v3596_v58  ;;  %v475_v15 = vpop.f32.mrb[3].mxu1  ;;  %v533_v21 = vmax.f32 %v518_v6, %v530_v11 }
 0x3c8   :  { %v476_v16 = vadd.f32 %v3596_v58, %v475_v15  ;;  %v4384_v58 = vmov 1966171168   ;;  %v561_v63 = vrot.slane %v556_v53, %v560_v61  ;;  %v565_v2 = vrot.slane %v556_v53, %v564_v59 }
 0x3c9   :  { %v536_v18 = vmax.f32 %v504_v12, %v532_v13  ;;  %v487_v20 = vmax.f32 %v481_v14, 0.0  ;;  %v537_v33 = vmax.f32 %v505_v17, %v533_v21  ;;  %v775_v60 = vunpack.c.l.s4 %v4384_v58 }
 0x3ca   :  { %v486_v22 = vmax.f32 %v476_v16, 0.0 }
 0x3cb   :  { %v496_v25 = vrot.slane %v487_v20, 1  ;;  %v512_v26 = vrot.slane %v487_v20, 2  ;;  %v524_v27 = vrot.slane %v487_v20, 3  ;;  %3601 = vmatmul.mubr.msk.f32.vlgmr.msra.gmra.mrb[4].mxu0 %vm362_vm9, %v536_v18  ;;  %v776_v62 = vunpack.c.0.s8 %v775_v60 }
 0x3cc   :  { %v495_v28 = vrot.slane %v486_v22, 1  ;;  %v511_v29 = vrot.slane %v486_v22, 2  ;;  %v523_v30 = vrot.slane %v486_v22, 3  ;;  %650 = vmatprep.mubr.f32.mxu0 %v4383_v56  ;;  %3830 = vmatpush1.bf16.msra.mxu0 %v4668_v24 }
 0x3cd   :  { %v503_v31 = vsel %vm84_vm0, %v496_v25, 0.0  ;;  %v519_v34 = vsel %vm287_vm6, %v512_v26, 0.0  ;;  %3832 = vmatprep.subr.bf16.mxu0 %v4690_v32  ;;  %v531_v40 = vsel %vm140_vm1, %v524_v27, 0.0  ;;  %v4803_v4 = vsub.s32 %v776_v62, %v4795_v54 }
 0x3ce   :  { %v497_v35 = vsel %vm84_vm0, %v495_v28, %v496_v25  ;;  %v513_v39 = vsel %vm287_vm6, %v511_v29, %v512_v26  ;;  %v525_v37 = vsel %vm140_vm1, %v523_v30, %v524_v27  ;;  %v507_v42 = vmax.f32 %v487_v20, %v503_v31  ;;  %v766_v49 = vpop.f32.mrb[4].mxu1 }
 0x3cf   :  { %v506_v38 = vmax.f32 %v486_v22, %v497_v35  ;;  %3602 = vmatmul.mubr.msk.f32.gmra.mrb[6].mxu0 %vm362_vm9, %v537_v33  ;;  %v534_v41 = vmax.f32 %v513_v39, %v525_v37  ;;  %v535_v47 = vmax.f32 %v519_v34, %v531_v40  ;;  %v768_v43 = vpop.f32.mrb[5].mxu1  ;;  %vm3385_vm0 = vcmask 31744  }
 0x3d0   :  { %656 = vmatprep.mubr.f32.mxu0 %v4383_v56  ;;  %3834 = vmatpush1.bf16.msra.mxu0 %v4698_v36  ;;  %v773_v51 = vcombine.low %v766_v49, %v768_v43  ;;  %vm3387_vm1 = vcmask 39936   ;;  %vm3397_vm6 = vcmask 80896  }
 0x3d1   :  { %v538_v45 = vmax.f32 %v506_v38, %v534_v41  ;;  %3836 = vmatprep.subr.bf16.mxu0 %v4720_v46  ;;  %v539_v48 = vmax.f32 %v507_v42, %v535_v47 }
 0x3d2   :  { %v780_v6 = vrot.slane %v773_v51, %v4803_v4 }
 0x3d3   :  { %3603 = vmatmul.mubr.msk.f32.gmra.mrb[8].mxu0 %vm362_vm9, %v538_v45 }
 0x3d4   :  { %662 = vmatprep.mubr.f32.mxu0 %v4383_v56  ;;  %3838 = vmatpush1.bf16.msra.mxu0 %v4728_v50  ;;  %v788_v10 = vrot.slane %v780_v6, %v4803_v4  ;;  %v781_v16 = vcombine.high %v780_v6, %v780_v6 }
 0x3d5   :  { %3840 = vmatprep.subr.bf16.mxu0 %v4738_v44 }
 0x3d6   :  { %v795_v26 = vrot.slane %v781_v16, %v4803_v4 }
 0x3d7   :  { %3604 = vmatmul.mubr.msk.f32.gmra.mrb[10].mxu0 %vm362_vm9, %v539_v48 }
 0x3d8   :  { %3842 = vmatpush1.bf16.msra.mxu0 %v4748_v57  ;;  %1014 = vmatprep.mubr.f32.mxu0 %v4383_v56 }
 0x3d9   :  { %3860 = vmatprep.subr.bf16.mxu0 %v4660_v19 }
 0x49e   :  { %v646_v3 = vpop.f32.mrb[4].mxu0 }
 0x49f   :  { %v647_v55 = vadd.f32 %v646_v3, %v561_v63  ;;  %v648_v0 = vpop.f32.mrb[5].mxu0 }
 0x4a0   :  { %v649_v1 = vadd.f32 %v648_v0, %v565_v2 }
 0x4a1   :  { %669 = vst [vmem:[#allocation2] sm:$0xff] %v647_v55 }
 0x4a2   :  { %670 = vst [vmem:[#allocation2 + $0x8] sm:$0xff] %v649_v1  ;;  %v652_v5 = vpop.f32.mrb[6].mxu0 }
 0x4a3   :  { %v653_v7 = vadd.f32 %v652_v5, %v561_v63  ;;  %v654_v8 = vpop.f32.mrb[7].mxu0  ;;  %v3609_v5 = vld [vmem:[%s5344_s8] ss:$0 sm:$0xff] }
 0x4a4   :  { %v655_v9 = vadd.f32 %v654_v8, %v565_v2  ;;  %v877_v6 = vrot.slane %v3609_v5, %v4803_v4 }
 0x4a5   :  { %671 = vst [vmem:[#allocation2 + $0x10] sm:$0xff] %v653_v7 }
 0x4a6   :  { %672 = vst [vmem:[#allocation2 + $0x18] sm:$0xff] %v655_v9  ;;  %v658_v11 = vpop.f32.mrb[8].mxu0  ;;  %v878_v7 = vcombine.high %v877_v6, %v877_v6 }
 0x4a7   :  { %v659_v12 = vadd.f32 %v658_v11, %v561_v63  ;;  %v660_v13 = vpop.f32.mrb[9].mxu0 }
 0x4a8   :  { %v661_v14 = vadd.f32 %v660_v13, %v565_v2 }
 0x4a9   :  { %v694_v15 = vld [vmem:[#allocation2] ss:$8 sm:$0x3]  ;;  %673 = vst [vmem:[#allocation2 + $0x20] sm:$0xff] %v659_v12  ;;  %v4828_v12 = vrot.slane %v878_v7, %v4803_v4 }
 0x4aa   :  { %v798_v17 = vadd.f32 %v788_v10, %v694_v15  ;;  %674 = vst [vmem:[#allocation2 + $0x28] sm:$0xff] %v661_v14  ;;  %v664_v18 = vpop.f32.mrb[10].mxu0  ;;  %v4825_v10 = vrot.slane %v877_v6, %v4803_v4 }
 0x4ab   :  { %v665_v20 = vadd.f32 %v664_v18, %v561_v63  ;;  %v666_v21 = vpop.f32.mrb[11].mxu0 }
 0x4ac   :  { %v3605_v22 = vmul.f32 -1.442695, %v798_v17  ;;  %v667_v25 = vadd.f32 %v666_v21, %v565_v2  ;;  %v814_v30 = vrot.slane %v798_v17, 1 }
 0x4ad   :  { %675 = vst [vmem:[#allocation2 + $0x30] sm:$0xff] %v665_v20 }
 0x4ae   :  { %4038 = vpow2.f32 %v3605_v22  ;;  %676 = vst [vmem:[#allocation2 + $0x38] sm:$0xff] %v667_v25 }
 0x4b1   :  { %v696_v27 = vld [vmem:[#allocation2 + $0x20] ss:$8 sm:$0x3] }
 0x4b2   :  { %v799_v28 = vadd.f32 %v795_v26, %v696_v27 }
 0x4b4   :  { %v3606_v29 = vmul.f32 -1.442695, %v799_v28  ;;  %v815_v34 = vrot.slane %v799_v28, 1 }
 0x4b6   :  { %4040 = vpow2.f32 %v3606_v29 }
 0x4b7   :  { %4042 = vtanh.f32 %v814_v30 }
 0x4b8   :  { %v4039_v31 = vpop.eup %4038 }
 0x4b9   :  { %v806_v33 = vadd.f32 1.0, %v4039_v31  ;;  %v928_v31 = vld [vmem:[#allocation2 + $0x1] ss:$8 sm:$0x3] }
 0x4bb   :  { %4044 = vrcp.f32 %v806_v33 }
 0x4bc   :  { %4046 = vtanh.f32 %v815_v34 }
 0x4c0   :  { %v4041_v35 = vpop.eup %4040 }
 0x4c1   :  { %v807_v39 = vadd.f32 1.0, %v4041_v35  ;;  %v4043_v37 = vpop.eup %4042  ;;  %v930_v35 = vld [vmem:[#allocation2 + $0x21] ss:$8 sm:$0x3] }
 0x4c3   :  { %4048 = vrcp.f32 %v807_v39 }
 0x4c5   :  { %v4045_v40 = vpop.eup %4044 }
 0x4c6   :  { %v842_v38 = vmul.f32 %v4045_v40, %v4043_v37  ;;  %v4047_v41 = vpop.eup %4046  ;;  %v840_v47 = vmul.f32 0.0, %v4045_v40 }
 0x4c8   :  { %846 = vrot.lane.b32.xlu0 %v842_v38, %s4382_s30 }
 0x4cc   :  { %820 = vrot.lane.b32.xlu0 %v798_v17, %s4382_s30 }
 0x4cd   :  { %v4049_v42 = vpop.eup %4048 }
 0x4ce   :  { %v843_v45 = vmul.f32 %v4049_v42, %v4047_v41  ;;  %v841_v43 = vmul.f32 0.0, %v4049_v42 }
 0x4d0   :  { %848 = vrot.lane.b32.xlu1 %v843_v45, %s4382_s30 }
 0x4d4   :  { %822 = vrot.lane.b32.xlu1 %v799_v28, %s4382_s30 }
 0x53a   :  { %v847_v48 = vpop.permute.xlu0 %846 }
 0x53b   :  { %v4812_v49 = vadd.f32 %v847_v48, %v840_v47 }
 0x53d   :  { %4050 = vtanh.f32 %v4812_v49 }
 0x53e   :  { %v821_v61 = vpop.permute.xlu0 %820 }
 0x53f   :  { %v824_v59 = vrot.slane %v821_v61, 1 }
 0x541   :  { %v3607_v63 = vmul.f32 -1.442695, %v824_v59 }
 0x542   :  { %v849_v51 = vpop.permute.xlu1 %848 }
 0x543   :  { %v4815_v52 = vadd.f32 %v849_v51, %v841_v43 }
 0x545   :  { %4052 = vtanh.f32 %v4815_v52 }
 0x546   :  { %v823_v53 = vpop.permute.xlu1 %822  ;;  %4054 = vpow2.f32 %v3607_v63 }
 0x547   :  { %v4051_v58 = vpop.eup %4050  ;;  %v825_v62 = vrot.slane %v823_v53, 1 }
 0x548   :  { %858 = vrot.lane.b32.xlu0 %v4051_v58, %s4382_s30 }
 0x549   :  { %v3608_v2 = vmul.f32 -1.442695, %v825_v62 }
 0x54b   :  { %4056 = vpow2.f32 %v3608_v2 }
 0x54f   :  { %v4053_v60 = vpop.eup %4052 }
 0x550   :  { %860 = vrot.lane.b32.xlu1 %v4053_v60, %s4382_s30  ;;  %v4055_v3 = vpop.eup %4054 }
 0x551   :  { %v834_v0 = vadd.f32 1.0, %v4055_v3 }
 0x553   :  { %4058 = vrcp.f32 %v834_v0 }
 0x555   :  { %v4057_v55 = vpop.eup %4056 }
 0x556   :  { %v835_v1 = vadd.f32 1.0, %v4057_v55 }
 0x558   :  { %4060 = vrcp.f32 %v835_v1 }
 0x55d   :  { %v4059_v9 = vpop.eup %4058 }
 0x562   :  { %v4061_v13 = vpop.eup %4060 }
 0x5ba   :  { %v859_v8 = vpop.permute.xlu0 %858 }
 0x5bb   :  { %v864_v11 = vmul.f32 %v4059_v9, %v859_v8 }
 0x5bd   :  { %v4831_v16 = vmul.f32 %v4825_v10, %v864_v11 }
 0x5c2   :  { %v861_v14 = vpop.permute.xlu1 %860 }
 0x5c3   :  { %v865_v15 = vmul.f32 %v4061_v13, %v861_v14 }
 0x5c5   :  { %v4834_v17 = vmul.f32 %v4828_v12, %v865_v15  ;;  %v933_v18 = vcombine.low %v864_v11, %v865_v15 }
 0x5c7   :  { %v899_v20 = vcombine.low %v4831_v16, %v4834_v17  ;;  %v940_v21 = vrot.slane %v933_v18, %v4803_v4 }
 0x5c9   :  { %v947_v22 = vrot.slane %v940_v21, %v4803_v4 }
 0x5cb   :  { %3611 = vmatmul.mubr.msk.f32.vlgmr.msra.gmra.mrb[12].mxu0 %vm362_vm9, %v947_v22 }
 0x5cc   :  { %3862 = vmatpush1.bf16.msra.mxu0 %v4668_v24  ;;  %1440 = vmatprep.mubr.f32.mxu0 %v4383_v56 }
 0x5cd   :  { %3864 = vmatprep.subr.bf16.mxu0 %v4690_v32 }
 0x5d0   :  { %3866 = vmatpush1.bf16.msra.mxu0 %v4698_v36 }
 0x5d1   :  { %3868 = vmatprep.subr.bf16.mxu0 %v4720_v46 }
 0x5d4   :  { %3870 = vmatpush1.bf16.msra.mxu0 %v4728_v50 }
 0x5d5   :  { %3872 = vmatprep.subr.bf16.mxu0 %v4738_v44 }
 0x5d8   :  { %3874 = vmatpush1.bf16.msra.mxu0 %v4748_v57 }
 0x5d9   :  { %3892 = vmatprep.subr.bf16.mxu0 %v4660_v19 }
 0x69e   :  { %v1016_v25 = vpop.f32.mrb[12].mxu0 }
 0x69f   :  { %v1018_v26 = vpop.f32.mrb[13].mxu0 }
 0x6a0   :  { %v1023_v27 = vcombine.low %v1016_v25, %v1018_v26 }
 0x6a2   :  { %v1030_v28 = vrot.slane %v1023_v27, %v4803_v4 }
 0x6a4   :  { %v1031_v29 = vcombine.high %v1030_v28, %v1030_v28  ;;  %v1038_v30 = vrot.slane %v1030_v28, %v4803_v4 }
 0x6a6   :  { %v1045_v33 = vrot.slane %v1031_v29, %v4803_v4  ;;  %v1048_v34 = vadd.f32 %v1038_v30, %v928_v31 }
 0x6a8   :  { %v1049_v39 = vadd.f32 %v1045_v33, %v930_v35  ;;  %v3612_v37 = vmul.f32 -1.442695, %v1048_v34  ;;  %v1064_v38 = vrot.slane %v1048_v34, 1 }
 0x6aa   :  { %4062 = vpow2.f32 %v3612_v37  ;;  %v3613_v40 = vmul.f32 -1.442695, %v1049_v39  ;;  %v1065_v42 = vrot.slane %v1049_v39, 1 }
 0x6ac   :  { %4064 = vpow2.f32 %v3613_v40 }
 0x6ad   :  { %4066 = vtanh.f32 %v1064_v38 }
 0x6b4   :  { %v4063_v41 = vpop.eup %4062 }
 0x6b5   :  { %v1056_v45 = vadd.f32 1.0, %v4063_v41  ;;  %v1141_v41 = vld [vmem:[#allocation2 + $0x2] ss:$8 sm:$0x3] }
 0x6b6   :  { %v4065_v47 = vpop.eup %4064 }
 0x6b7   :  { %4068 = vrcp.f32 %v1056_v45  ;;  %v1057_v48 = vadd.f32 1.0, %v4065_v47  ;;  %v4067_v43 = vpop.eup %4066  ;;  %v1143_v47 = vld [vmem:[#allocation2 + $0x22] ss:$8 sm:$0x3] }
 0x6b8   :  { %4070 = vtanh.f32 %v1065_v42 }
 0x6b9   :  { %4072 = vrcp.f32 %v1057_v48 }
 0x6c1   :  { %v4069_v51 = vpop.eup %4068 }
 0x6c2   :  { %v4071_v58 = vpop.eup %4070  ;;  %v1092_v60 = vmul.f32 %v4069_v51, %v4067_v43  ;;  %v1090_v59 = vmul.f32 %v4069_v51, %v4812_v49 }
 0x6c3   :  { %v4073_v61 = vpop.eup %4072 }
 0x6c4   :  { %1096 = vrot.lane.b32.xlu0 %v1092_v60, %s4382_s30  ;;  %v1093_v53 = vmul.f32 %v4073_v61, %v4071_v58  ;;  %v1091_v2 = vmul.f32 %v4073_v61, %v4815_v52 }
 0x6c6   :  { %1098 = vrot.lane.b32.xlu1 %v1093_v53, %s4382_s30 }
 0x6c8   :  { %1070 = vrot.lane.b32.xlu0 %v1048_v34, %s4382_s30 }
 0x6ca   :  { %1072 = vrot.lane.b32.xlu1 %v1049_v39, %s4382_s30 }
 0x736   :  { %v1097_v62 = vpop.permute.xlu0 %1096 }
 0x737   :  { %v4858_v63 = vadd.f32 %v1097_v62, %v1090_v59 }
 0x738   :  { %v1099_v3 = vpop.permute.xlu1 %1098 }
 0x739   :  { %4074 = vtanh.f32 %v4858_v63  ;;  %v4862_v55 = vadd.f32 %v1099_v3, %v1091_v2 }
 0x73a   :  { %v1071_v5 = vpop.permute.xlu0 %1070 }
 0x73b   :  { %4076 = vtanh.f32 %v4862_v55  ;;  %v1074_v6 = vrot.slane %v1071_v5, 1 }
 0x73c   :  { %v1073_v49 = vpop.permute.xlu1 %1072 }
 0x73d   :  { %v1075_v7 = vrot.slane %v1073_v49, 1  ;;  %v3614_v8 = vmul.f32 -1.442695, %v1074_v6 }
 0x73f   :  { %v3615_v9 = vmul.f32 -1.442695, %v1075_v7  ;;  %4078 = vpow2.f32 %v3614_v8 }
 0x741   :  { %4080 = vpow2.f32 %v3615_v9 }
 0x743   :  { %v4075_v0 = vpop.eup %4074 }
 0x744   :  { %1108 = vrot.lane.b32.xlu0 %v4075_v0, %s4382_s30 }
 0x745   :  { %v4077_v1 = vpop.eup %4076 }
 0x746   :  { %1110 = vrot.lane.b32.xlu1 %v4077_v1, %s4382_s30 }
 0x749   :  { %v4079_v52 = vpop.eup %4078 }
 0x74a   :  { %v1084_v13 = vadd.f32 1.0, %v4079_v52 }
 0x74b   :  { %v4081_v11 = vpop.eup %4080 }
 0x74c   :  { %v1085_v14 = vadd.f32 1.0, %v4081_v11  ;;  %4082 = vrcp.f32 %v1084_v13 }
 0x74e   :  { %4084 = vrcp.f32 %v1085_v14 }
 0x756   :  { %v4083_v15 = vpop.eup %4082 }
 0x758   :  { %v4085_v22 = vpop.eup %4084 }
 0x7b6   :  { %v1109_v18 = vpop.permute.xlu0 %1108 }
 0x7b7   :  { %v1114_v21 = vmul.f32 %v4083_v15, %v1109_v18 }
 0x7b8   :  { %v1111_v25 = vpop.permute.xlu1 %1110 }
 0x7b9   :  { %v1115_v26 = vmul.f32 %v4085_v22, %v1111_v25  ;;  %v4868_v27 = vmul.f32 %v1114_v21, %v4825_v10 }
 0x7bb   :  { %v4871_v28 = vmul.f32 %v1115_v26, %v4828_v12  ;;  %v1146_v29 = vcombine.low %v1114_v21, %v1115_v26 }
 0x7bd   :  { %v1120_v30 = vcombine.low %v4868_v27, %v4871_v28  ;;  %v1153_v31 = vrot.slane %v1146_v29, %v4803_v4 }
 0x7bf   :  { %v1160_v33 = vrot.slane %v1153_v31, %v4803_v4 }
 0x7c1   :  { %3616 = vmatmul.mubr.msk.f32.vlgmr.msra.gmra.mrb[6].mxu1 %vm362_vm9, %v1160_v33 }
 0x7c2   :  { %3878 = vmatpush1.bf16.msra.mxu1 %v4668_v24  ;;  %1653 = vmatprep.mubr.f32.mxu1 %v4383_v56 }
 0x7c3   :  { %3880 = vmatprep.subr.bf16.mxu1 %v4690_v32 }
 0x7c6   :  { %3882 = vmatpush1.bf16.msra.mxu1 %v4698_v36 }
 0x7c7   :  { %3884 = vmatprep.subr.bf16.mxu1 %v4720_v46 }
 0x7ca   :  { %3886 = vmatpush1.bf16.msra.mxu1 %v4728_v50 }
 0x7cb   :  { %3888 = vmatprep.subr.bf16.mxu1 %v4738_v44 }
 0x7ce   :  { %3890 = vmatpush1.bf16.msra.mxu1 %v4748_v57 }
 0x7cf   :  { %3908 = vmatprep.subr.bf16.mxu1 %v4660_v19 }
 0x894   :  { %v1229_v34 = vpop.f32.mrb[6].mxu1 }
 0x895   :  { %v1231_v35 = vpop.f32.mrb[7].mxu1 }
 0x896   :  { %v1236_v39 = vcombine.low %v1229_v34, %v1231_v35 }
 0x898   :  { %v1243_v37 = vrot.slane %v1236_v39, %v4803_v4 }
 0x89a   :  { %v1244_v40 = vcombine.high %v1243_v37, %v1243_v37  ;;  %v1251_v38 = vrot.slane %v1243_v37, %v4803_v4 }
 0x89c   :  { %v1258_v42 = vrot.slane %v1244_v40, %v4803_v4  ;;  %v1261_v45 = vadd.f32 %v1251_v38, %v1141_v41 }
 0x89e   :  { %v1262_v48 = vadd.f32 %v1258_v42, %v1143_v47  ;;  %v3617_v43 = vmul.f32 -1.442695, %v1261_v45  ;;  %v1277_v58 = vrot.slane %v1261_v45, 1 }
 0x8a0   :  { %4086 = vpow2.f32 %v3617_v43  ;;  %v3618_v51 = vmul.f32 -1.442695, %v1262_v48  ;;  %v1278_v61 = vrot.slane %v1262_v48, 1 }
 0x8a2   :  { %4088 = vpow2.f32 %v3618_v51 }
 0x8a3   :  { %4090 = vtanh.f32 %v1277_v58 }
 0x8aa   :  { %v4087_v60 = vpop.eup %4086 }
 0x8ab   :  { %v1269_v53 = vadd.f32 1.0, %v4087_v60 }
 0x8ac   :  { %v4089_v59 = vpop.eup %4088 }
 0x8ad   :  { %4092 = vrcp.f32 %v1269_v53  ;;  %v1270_v62 = vadd.f32 1.0, %v4089_v59  ;;  %v4091_v2 = vpop.eup %4090  ;;  %v1354_v59 = vld [vmem:[#allocation2 + $0x3] ss:$8 sm:$0x3] }
 0x8ae   :  { %4094 = vtanh.f32 %v1278_v61 }
 0x8af   :  { %4096 = vrcp.f32 %v1270_v62 }
 0x8b7   :  { %v4093_v3 = vpop.eup %4092 }
 0x8b8   :  { %v4095_v0 = vpop.eup %4094  ;;  %v1305_v1 = vmul.f32 %v4093_v3, %v4091_v2  ;;  %v1303_v6 = vmul.f32 %v4093_v3, %v4858_v63  ;;  %v1356_v3 = vld [vmem:[#allocation2 + $0x23] ss:$8 sm:$0x3] }
 0x8b9   :  { %v4097_v5 = vpop.eup %4096 }
 0x8ba   :  { %1309 = vrot.lane.b32.xlu0 %v1305_v1, %s4382_s30  ;;  %v1306_v49 = vmul.f32 %v4097_v5, %v4095_v0  ;;  %v1304_v9 = vmul.f32 %v4097_v5, %v4862_v55 }
 0x8bc   :  { %1311 = vrot.lane.b32.xlu1 %v1306_v49, %s4382_s30 }
 0x8be   :  { %1283 = vrot.lane.b32.xlu0 %v1261_v45, %s4382_s30 }
 0x8c0   :  { %1285 = vrot.lane.b32.xlu1 %v1262_v48, %s4382_s30 }
 0x92c   :  { %v1310_v7 = vpop.permute.xlu0 %1309 }
 0x92d   :  { %v4895_v8 = vadd.f32 %v1310_v7, %v1303_v6 }
 0x92e   :  { %v1312_v52 = vpop.permute.xlu1 %1311 }
 0x92f   :  { %4098 = vtanh.f32 %v4895_v8  ;;  %v4899_v11 = vadd.f32 %v1312_v52, %v1304_v9 }
 0x930   :  { %v1284_v15 = vpop.permute.xlu0 %1283 }
 0x931   :  { %4100 = vtanh.f32 %v4899_v11  ;;  %v1287_v18 = vrot.slane %v1284_v15, 1 }
 0x932   :  { %v1286_v63 = vpop.permute.xlu1 %1285 }
 0x933   :  { %v1288_v21 = vrot.slane %v1286_v63, 1  ;;  %v3619_v22 = vmul.f32 -1.442695, %v1287_v18 }
 0x935   :  { %v3620_v25 = vmul.f32 -1.442695, %v1288_v21  ;;  %4102 = vpow2.f32 %v3619_v22 }
 0x937   :  { %4104 = vpow2.f32 %v3620_v25 }
 0x939   :  { %v4099_v13 = vpop.eup %4098 }
 0x93a   :  { %1321 = vrot.lane.b32.xlu0 %v4099_v13, %s4382_s30 }
 0x93b   :  { %v4101_v14 = vpop.eup %4100 }
 0x93c   :  { %1323 = vrot.lane.b32.xlu1 %v4101_v14, %s4382_s30 }
 0x93f   :  { %v4103_v55 = vpop.eup %4102 }
 0x940   :  { %v1297_v29 = vadd.f32 1.0, %v4103_v55 }
 0x941   :  { %v4105_v26 = vpop.eup %4104 }
 0x942   :  { %v1298_v31 = vadd.f32 1.0, %v4105_v26  ;;  %4106 = vrcp.f32 %v1297_v29 }
 0x944   :  { %4108 = vrcp.f32 %v1298_v31 }
 0x94c   :  { %v4107_v33 = vpop.eup %4106 }
 0x94e   :  { %v4109_v39 = vpop.eup %4108 }
 0x9ac   :  { %v1322_v34 = vpop.permute.xlu0 %1321 }
 0x9ad   :  { %v1327_v35 = vmul.f32 %v4107_v33, %v1322_v34 }
 0x9ae   :  { %v1324_v37 = vpop.permute.xlu1 %1323 }
 0x9af   :  { %v1328_v40 = vmul.f32 %v4109_v39, %v1324_v37  ;;  %v4905_v38 = vmul.f32 %v1327_v35, %v4825_v10 }
 0x9b1   :  { %v4908_v41 = vmul.f32 %v1328_v40, %v4828_v12  ;;  %v1359_v42 = vcombine.low %v1327_v35, %v1328_v40 }
 0x9b3   :  { %v1333_v45 = vcombine.low %v4905_v38, %v4908_v41  ;;  %v1366_v47 = vrot.slane %v1359_v42, %v4803_v4 }
 0x9b5   :  { %v1373_v48 = vrot.slane %v1366_v47, %v4803_v4 }
 0x9b7   :  { %3621 = vmatmul.mubr.msk.f32.vlgmr.msra.gmra.mrb[14].mxu0 %vm362_vm9, %v1373_v48 }
 0x9b8   :  { %3894 = vmatpush1.bf16.msra.mxu0 %v4668_v24  ;;  %1866 = vmatprep.mubr.f32.mxu0 %v4383_v56 }
 0x9b9   :  { %3896 = vmatprep.subr.bf16.mxu0 %v4690_v32 }
 0x9bc   :  { %3898 = vmatpush1.bf16.msra.mxu0 %v4698_v36 }
 0x9bd   :  { %3900 = vmatprep.subr.bf16.mxu0 %v4720_v46 }
 0x9c0   :  { %3902 = vmatpush1.bf16.msra.mxu0 %v4728_v50 }
 0x9c1   :  { %3904 = vmatprep.subr.bf16.mxu0 %v4738_v44 }
 0x9c4   :  { %3906 = vmatpush1.bf16.msra.mxu0 %v4748_v57 }
 0x9c5   :  { %3924 = vmatprep.subr.bf16.mxu0 %v4660_v19 }
 0xa8a   :  { %v1442_v43 = vpop.f32.mrb[14].mxu0 }
 0xa8b   :  { %v1444_v51 = vpop.f32.mrb[15].mxu0 }
 0xa8c   :  { %v1449_v58 = vcombine.low %v1442_v43, %v1444_v51 }
 0xa8e   :  { %v1456_v60 = vrot.slane %v1449_v58, %v4803_v4 }
 0xa90   :  { %v1457_v61 = vcombine.high %v1456_v60, %v1456_v60  ;;  %v1464_v53 = vrot.slane %v1456_v60, %v4803_v4 }
 0xa92   :  { %v1471_v62 = vrot.slane %v1457_v61, %v4803_v4  ;;  %v1474_v2 = vadd.f32 %v1464_v53, %v1354_v59 }
 0xa94   :  { %v1475_v0 = vadd.f32 %v1471_v62, %v1356_v3  ;;  %v3622_v1 = vmul.f32 -1.442695, %v1474_v2  ;;  %v1490_v49 = vrot.slane %v1474_v2, 1 }
 0xa96   :  { %4110 = vpow2.f32 %v3622_v1  ;;  %v3623_v5 = vmul.f32 -1.442695, %v1475_v0  ;;  %v1491_v7 = vrot.slane %v1475_v0, 1 }
 0xa98   :  { %4112 = vpow2.f32 %v3623_v5 }
 0xa99   :  { %4114 = vtanh.f32 %v1490_v49 }
 0xaa0   :  { %v4111_v6 = vpop.eup %4110 }
 0xaa1   :  { %v1482_v9 = vadd.f32 1.0, %v4111_v6 }
 0xaa2   :  { %v4113_v52 = vpop.eup %4112 }
 0xaa3   :  { %4116 = vrcp.f32 %v1482_v9  ;;  %v1483_v13 = vadd.f32 1.0, %v4113_v52  ;;  %v4115_v14 = vpop.eup %4114 }
 0xaa4   :  { %4118 = vtanh.f32 %v1491_v7 }
 0xaa5   :  { %4120 = vrcp.f32 %v1483_v13 }
 0xaad   :  { %v4117_v15 = vpop.eup %4116 }
 0xaae   :  { %v4119_v63 = vpop.eup %4118  ;;  %v1518_v18 = vmul.f32 %v4117_v15, %v4115_v14  ;;  %v1516_v25 = vmul.f32 %v4117_v15, %v4895_v8  ;;  %v1567_v15 = vld [vmem:[#allocation2 + $0x4] ss:$8 sm:$0x3] }
 0xaaf   :  { %v4121_v21 = vpop.eup %4120 }
 0xab0   :  { %1522 = vrot.lane.b32.xlu0 %v1518_v18, %s4382_s30  ;;  %v1519_v22 = vmul.f32 %v4121_v21, %v4119_v63  ;;  %v1517_v29 = vmul.f32 %v4121_v21, %v4899_v11  ;;  %v1569_v21 = vld [vmem:[#allocation2 + $0x24] ss:$8 sm:$0x3] }
 0xab2   :  { %1524 = vrot.lane.b32.xlu1 %v1519_v22, %s4382_s30 }
 0xab4   :  { %1496 = vrot.lane.b32.xlu0 %v1474_v2, %s4382_s30 }
 0xab6   :  { %1498 = vrot.lane.b32.xlu1 %v1475_v0, %s4382_s30 }
 0xb22   :  { %v1523_v55 = vpop.permute.xlu0 %1522 }
 0xb23   :  { %v4932_v26 = vadd.f32 %v1523_v55, %v1516_v25 }
 0xb24   :  { %v1525_v31 = vpop.permute.xlu1 %1524 }
 0xb25   :  { %4122 = vtanh.f32 %v4932_v26  ;;  %v4936_v33 = vadd.f32 %v1525_v31, %v1517_v29 }
 0xb26   :  { %v1497_v39 = vpop.permute.xlu0 %1496 }
 0xb27   :  { %4124 = vtanh.f32 %v4936_v33  ;;  %v1500_v37 = vrot.slane %v1497_v39, 1 }
 0xb28   :  { %v1499_v8 = vpop.permute.xlu1 %1498 }
 0xb29   :  { %v1501_v40 = vrot.slane %v1499_v8, 1  ;;  %v3624_v42 = vmul.f32 -1.442695, %v1500_v37 }
 0xb2b   :  { %v3625_v47 = vmul.f32 -1.442695, %v1501_v40  ;;  %4126 = vpow2.f32 %v3624_v42 }
 0xb2d   :  { %4128 = vpow2.f32 %v3625_v47 }
 0xb2f   :  { %v4123_v34 = vpop.eup %4122 }
 0xb30   :  { %1534 = vrot.lane.b32.xlu0 %v4123_v34, %s4382_s30 }
 0xb31   :  { %v4125_v35 = vpop.eup %4124 }
 0xb32   :  { %1536 = vrot.lane.b32.xlu1 %v4125_v35, %s4382_s30 }
 0xb35   :  { %v4127_v11 = vpop.eup %4126 }
 0xb36   :  { %v1510_v43 = vadd.f32 1.0, %v4127_v11 }
 0xb37   :  { %v4129_v48 = vpop.eup %4128 }
 0xb38   :  { %v1511_v51 = vadd.f32 1.0, %v4129_v48  ;;  %4130 = vrcp.f32 %v1510_v43 }
 0xb3a   :  { %4132 = vrcp.f32 %v1511_v51 }
 0xb42   :  { %v4131_v58 = vpop.eup %4130 }
 0xb44   :  { %v4133_v53 = vpop.eup %4132 }
 0xba2   :  { %v1535_v60 = vpop.permute.xlu0 %1534 }
 0xba3   :  { %v1540_v61 = vmul.f32 %v4131_v58, %v1535_v60 }
 0xba4   :  { %v1537_v59 = vpop.permute.xlu1 %1536 }
 0xba5   :  { %v1541_v62 = vmul.f32 %v4133_v53, %v1537_v59  ;;  %v4942_v2 = vmul.f32 %v1540_v61, %v4825_v10 }
 0xba7   :  { %v4945_v3 = vmul.f32 %v1541_v62, %v4828_v12  ;;  %v1572_v0 = vcombine.low %v1540_v61, %v1541_v62 }
 0xba9   :  { %v1546_v1 = vcombine.low %v4942_v2, %v4945_v3  ;;  %v1579_v5 = vrot.slane %v1572_v0, %v4803_v4 }
 0xbab   :  { %v1586_v49 = vrot.slane %v1579_v5, %v4803_v4 }
 0xbad   :  { %3626 = vmatmul.mubr.msk.f32.vlgmr.msra.gmra.mrb[8].mxu1 %vm362_vm9, %v1586_v49 }
 0xbae   :  { %3910 = vmatpush1.bf16.msra.mxu1 %v4668_v24  ;;  %2079 = vmatprep.mubr.f32.mxu1 %v4383_v56 }
 0xbaf   :  { %3912 = vmatprep.subr.bf16.mxu1 %v4690_v32 }
 0xbb2   :  { %3914 = vmatpush1.bf16.msra.mxu1 %v4698_v36 }
 0xbb3   :  { %3916 = vmatprep.subr.bf16.mxu1 %v4720_v46 }
 0xbb6   :  { %3918 = vmatpush1.bf16.msra.mxu1 %v4728_v50 }
 0xbb7   :  { %3920 = vmatprep.subr.bf16.mxu1 %v4738_v44 }
 0xbba   :  { %3922 = vmatpush1.bf16.msra.mxu1 %v4748_v57 }
 0xbbb   :  { %3940 = vmatprep.subr.bf16.mxu1 %v4660_v19 }
 0xc80   :  { %v1655_v6 = vpop.f32.mrb[8].mxu1 }
 0xc81   :  { %v1657_v7 = vpop.f32.mrb[9].mxu1 }
 0xc82   :  { %v1662_v9 = vcombine.low %v1655_v6, %v1657_v7 }
 0xc84   :  { %v1669_v52 = vrot.slane %v1662_v9, %v4803_v4 }
 0xc86   :  { %v1670_v13 = vcombine.high %v1669_v52, %v1669_v52  ;;  %v1677_v14 = vrot.slane %v1669_v52, %v4803_v4 }
 0xc88   :  { %v1684_v63 = vrot.slane %v1670_v13, %v4803_v4  ;;  %v1687_v18 = vadd.f32 %v1677_v14, %v1567_v15 }
 0xc8a   :  { %v1688_v22 = vadd.f32 %v1684_v63, %v1569_v21  ;;  %v3627_v25 = vmul.f32 -1.442695, %v1687_v18  ;;  %v1703_v29 = vrot.slane %v1687_v18, 1 }
 0xc8c   :  { %4134 = vpow2.f32 %v3627_v25  ;;  %v3628_v55 = vmul.f32 -1.442695, %v1688_v22  ;;  %v1704_v34 = vrot.slane %v1688_v22, 1 }
 0xc8e   :  { %4136 = vpow2.f32 %v3628_v55 }
 0xc8f   :  { %4138 = vtanh.f32 %v1703_v29 }
 0xc96   :  { %v4135_v31 = vpop.eup %4134 }
 0xc97   :  { %v1695_v35 = vadd.f32 1.0, %v4135_v31 }
 0xc98   :  { %v4137_v39 = vpop.eup %4136 }
 0xc99   :  { %4140 = vrcp.f32 %v1695_v35  ;;  %v1696_v8 = vadd.f32 1.0, %v4137_v39  ;;  %v4139_v37 = vpop.eup %4138 }
 0xc9a   :  { %4142 = vtanh.f32 %v1704_v34 }
 0xc9b   :  { %4144 = vrcp.f32 %v1696_v8 }
 0xca3   :  { %v4141_v40 = vpop.eup %4140 }
 0xca4   :  { %v4143_v42 = vpop.eup %4142  ;;  %v1731_v47 = vmul.f32 %v4141_v40, %v4139_v37  ;;  %v1729_v43 = vmul.f32 %v4141_v40, %v4932_v26 }
 0xca5   :  { %v4145_v11 = vpop.eup %4144 }
 0xca6   :  { %1735 = vrot.lane.b32.xlu0 %v1731_v47, %s4382_s30  ;;  %v1732_v48 = vmul.f32 %v4145_v11, %v4143_v42  ;;  %v1730_v60 = vmul.f32 %v4145_v11, %v4936_v33  ;;  %v1780_v11 = vld [vmem:[#allocation2 + $0x5] ss:$8 sm:$0x3] }
 0xca8   :  { %1737 = vrot.lane.b32.xlu1 %v1732_v48, %s4382_s30 }
 0xcaa   :  { %1709 = vrot.lane.b32.xlu0 %v1687_v18, %s4382_s30 }
 0xcac   :  { %1711 = vrot.lane.b32.xlu1 %v1688_v22, %s4382_s30 }
 0xd18   :  { %v1736_v51 = vpop.permute.xlu0 %1735 }
 0xd19   :  { %v4969_v58 = vadd.f32 %v1736_v51, %v1729_v43  ;;  %v1782_v51 = vld [vmem:[#allocation2 + $0x25] ss:$8 sm:$0x3] }
 0xd1a   :  { %v1738_v61 = vpop.permute.xlu1 %1737 }
 0xd1b   :  { %4146 = vtanh.f32 %v4969_v58  ;;  %v4973_v53 = vadd.f32 %v1738_v61, %v1730_v60 }
 0xd1c   :  { %v1710_v0 = vpop.permute.xlu0 %1709 }
 0xd1d   :  { %4148 = vtanh.f32 %v4973_v53  ;;  %v1713_v5 = vrot.slane %v1710_v0, 1 }
 0xd1e   :  { %v1712_v26 = vpop.permute.xlu1 %1711 }
 0xd1f   :  { %v1714_v49 = vrot.slane %v1712_v26, 1  ;;  %v3629_v6 = vmul.f32 -1.442695, %v1713_v5 }
 0xd21   :  { %v3630_v7 = vmul.f32 -1.442695, %v1714_v49  ;;  %4150 = vpow2.f32 %v3629_v6 }
 0xd23   :  { %4152 = vpow2.f32 %v3630_v7 }
 0xd25   :  { %v4147_v59 = vpop.eup %4146 }
 0xd26   :  { %1747 = vrot.lane.b32.xlu0 %v4147_v59, %s4382_s30 }
 0xd27   :  { %v4149_v62 = vpop.eup %4148 }
 0xd28   :  { %1749 = vrot.lane.b32.xlu1 %v4149_v62, %s4382_s30 }
 0xd2b   :  { %v4151_v33 = vpop.eup %4150 }
 0xd2c   :  { %v1723_v52 = vadd.f32 1.0, %v4151_v33 }
 0xd2d   :  { %v4153_v9 = vpop.eup %4152 }
 0xd2e   :  { %v1724_v13 = vadd.f32 1.0, %v4153_v9  ;;  %4154 = vrcp.f32 %v1723_v52 }
 0xd30   :  { %4156 = vrcp.f32 %v1724_v13 }
 0xd38   :  { %v4155_v14 = vpop.eup %4154 }
 0xd3a   :  { %v4157_v18 = vpop.eup %4156 }
 0xd98   :  { %v1748_v15 = vpop.permute.xlu0 %1747 }
 0xd99   :  { %v1753_v63 = vmul.f32 %v4155_v14, %v1748_v15 }
 0xd9a   :  { %v1750_v21 = vpop.permute.xlu1 %1749 }
 0xd9b   :  { %v1754_v22 = vmul.f32 %v4157_v18, %v1750_v21  ;;  %v4979_v25 = vmul.f32 %v1753_v63, %v4825_v10 }
 0xd9d   :  { %v4982_v55 = vmul.f32 %v1754_v22, %v4828_v12  ;;  %v1785_v29 = vcombine.low %v1753_v63, %v1754_v22 }
 0xd9f   :  { %v1759_v31 = vcombine.low %v4979_v25, %v4982_v55  ;;  %v1792_v34 = vrot.slane %v1785_v29, %v4803_v4 }
 0xda1   :  { %v1799_v35 = vrot.slane %v1792_v34, %v4803_v4  ;;  %v1766_v27 = vrot.slane %v1759_v31, %v4803_v4 }
 0xda3   :  { %3631 = vmatmul.mubr.msk.f32.vlgmr.msra.gmra.mrb[16].mxu0 %vm362_vm9, %v1799_v35  ;;  %v1773_v41 = vrot.slane %v1766_v27, %v4803_v4 }
 0xda4   :  { %3926 = vmatpush1.bf16.msra.mxu0 %v4668_v24  ;;  %2292 = vmatprep.mubr.f32.mxu0 %v4383_v56 }
 0xda5   :  { %3928 = vmatprep.subr.bf16.mxu0 %v4690_v32  ;;  %v1775_v25 = vsel %vm915_vm11, %v1773_v41, 0.0 }
 0xda8   :  { %3930 = vmatpush1.bf16.msra.mxu0 %v4698_v36 }
 0xda9   :  { %3932 = vmatprep.subr.bf16.mxu0 %v4720_v46 }
 0xdac   :  { %3934 = vmatpush1.bf16.msra.mxu0 %v4728_v50 }
 0xdad   :  { %3936 = vmatprep.subr.bf16.mxu0 %v4738_v44 }
 0xdb0   :  { %3938 = vmatpush1.bf16.msra.mxu0 %v4748_v57 }
 0xdb1   :  { %3956 = vmatprep.subr.bf16.mxu0 %v4660_v19 }
 0xe76   :  { %v1868_v39 = vpop.f32.mrb[16].mxu0 }
 0xe77   :  { %v1870_v8 = vpop.f32.mrb[17].mxu0 }
 0xe78   :  { %v1875_v37 = vcombine.low %v1868_v39, %v1870_v8 }
 0xe7a   :  { %v1882_v40 = vrot.slane %v1875_v37, %v4803_v4 }
 0xe7c   :  { %v1883_v42 = vcombine.high %v1882_v40, %v1882_v40  ;;  %v1890_v47 = vrot.slane %v1882_v40, %v4803_v4 }
 0xe7e   :  { %v1897_v48 = vrot.slane %v1883_v42, %v4803_v4  ;;  %v1900_v43 = vadd.f32 %v1890_v47, %v1780_v11 }
 0xe80   :  { %v1901_v60 = vadd.f32 %v1897_v48, %v1782_v51  ;;  %v3632_v61 = vmul.f32 -1.442695, %v1900_v43  ;;  %v1916_v62 = vrot.slane %v1900_v43, 1 }
 0xe82   :  { %4158 = vpow2.f32 %v3632_v61  ;;  %v3633_v59 = vmul.f32 -1.442695, %v1901_v60  ;;  %v1917_v26 = vrot.slane %v1901_v60, 1 }
 0xe84   :  { %4160 = vpow2.f32 %v3633_v59 }
 0xe85   :  { %4162 = vtanh.f32 %v1916_v62 }
 0xe8c   :  { %v4159_v0 = vpop.eup %4158 }
 0xe8d   :  { %v1908_v5 = vadd.f32 1.0, %v4159_v0 }
 0xe8e   :  { %v4161_v49 = vpop.eup %4160 }
 0xe8f   :  { %4164 = vrcp.f32 %v1908_v5  ;;  %v1909_v6 = vadd.f32 1.0, %v4161_v49  ;;  %v4163_v7 = vpop.eup %4162 }
 0xe90   :  { %4166 = vtanh.f32 %v1917_v26 }
 0xe91   :  { %4168 = vrcp.f32 %v1909_v6 }
 0xe99   :  { %v4165_v33 = vpop.eup %4164 }
 0xe9a   :  { %v4167_v9 = vpop.eup %4166  ;;  %v1944_v52 = vmul.f32 %v4165_v33, %v4163_v7  ;;  %v1942_v15 = vmul.f32 %v4165_v33, %v4969_v58 }
 0xe9b   :  { %v4169_v13 = vpop.eup %4168 }
 0xe9c   :  { %1948 = vrot.lane.b32.xlu0 %v1944_v52, %s4382_s30  ;;  %v1945_v14 = vmul.f32 %v4169_v13, %v4167_v9  ;;  %v1943_v21 = vmul.f32 %v4169_v13, %v4973_v53 }
 0xe9e   :  { %1950 = vrot.lane.b32.xlu1 %v1945_v14, %s4382_s30 }
 0xea0   :  { %1922 = vrot.lane.b32.xlu0 %v1900_v43, %s4382_s30 }
 0xea2   :  { %1924 = vrot.lane.b32.xlu1 %v1901_v60, %s4382_s30 }
 0xf0e   :  { %v1949_v63 = vpop.permute.xlu0 %1948 }
 0xf0f   :  { %v5006_v18 = vadd.f32 %v1949_v63, %v1942_v15  ;;  %v1993_v63 = vld [vmem:[#allocation2 + $0x6] ss:$8 sm:$0x3] }
 0xf10   :  { %v1951_v22 = vpop.permute.xlu1 %1950 }
 0xf11   :  { %4170 = vtanh.f32 %v5006_v18  ;;  %v5010_v29 = vadd.f32 %v1951_v22, %v1943_v21 }
 0xf12   :  { %v1923_v39 = vpop.permute.xlu0 %1922 }
 0xf13   :  { %4172 = vtanh.f32 %v5010_v29  ;;  %v1926_v8 = vrot.slane %v1923_v39, 1 }
 0xf14   :  { %v1925_v58 = vpop.permute.xlu1 %1924 }
 0xf15   :  { %v1927_v37 = vrot.slane %v1925_v58, 1  ;;  %v3634_v40 = vmul.f32 -1.442695, %v1926_v8 }
 0xf17   :  { %v3635_v42 = vmul.f32 -1.442695, %v1927_v37  ;;  %4174 = vpow2.f32 %v3634_v40 }
 0xf19   :  { %4176 = vpow2.f32 %v3635_v42 }
 0xf1b   :  { %v4171_v34 = vpop.eup %4170 }
 0xf1c   :  { %1960 = vrot.lane.b32.xlu0 %v4171_v34, %s4382_s30  ;;  %v1995_v34 = vld [vmem:[#allocation2 + $0x26] ss:$8 sm:$0x3] }
 0xf1d   :  { %v4173_v35 = vpop.eup %4172 }
 0xf1e   :  { %1962 = vrot.lane.b32.xlu1 %v4173_v35, %s4382_s30 }
 0xf21   :  { %v4175_v53 = vpop.eup %4174 }
 0xf22   :  { %v1936_v11 = vadd.f32 1.0, %v4175_v53 }
 0xf23   :  { %v4177_v47 = vpop.eup %4176 }
 0xf24   :  { %v1937_v48 = vadd.f32 1.0, %v4177_v47  ;;  %4178 = vrcp.f32 %v1936_v11 }
 0xf26   :  { %4180 = vrcp.f32 %v1937_v48 }
 0xf2e   :  { %v4179_v43 = vpop.eup %4178 }
 0xf30   :  { %v4181_v61 = vpop.eup %4180 }
 0xf8e   :  { %v1961_v51 = vpop.permute.xlu0 %1960 }
 0xf8f   :  { %v1966_v60 = vmul.f32 %v4179_v43, %v1961_v51 }
 0xf90   :  { %v1963_v59 = vpop.permute.xlu1 %1962 }
 0xf91   :  { %v1967_v62 = vmul.f32 %v4181_v61, %v1963_v59  ;;  %v5016_v0 = vmul.f32 %v1966_v60, %v4825_v10 }
 0xf93   :  { %v5019_v26 = vmul.f32 %v1967_v62, %v4828_v12  ;;  %v1998_v5 = vcombine.low %v1966_v60, %v1967_v62 }
 0xf95   :  { %v1972_v49 = vcombine.low %v5016_v0, %v5019_v26  ;;  %v2005_v6 = vrot.slane %v1998_v5, %v4803_v4 }
 0xf97   :  { %v2012_v7 = vrot.slane %v2005_v6, %v4803_v4 }
 0xf99   :  { %3636 = vmatmul.mubr.msk.f32.vlgmr.msra.gmra.mrb[10].mxu1 %vm362_vm9, %v2012_v7 }
 0xf9a   :  { %3942 = vmatpush1.bf16.msra.mxu1 %v4668_v24  ;;  %2505 = vmatprep.mubr.f32.mxu1 %v4383_v56 }
 0xf9b   :  { %3944 = vmatprep.subr.bf16.mxu1 %v4690_v32 }
 0xf9e   :  { %3946 = vmatpush1.bf16.msra.mxu1 %v4698_v36 }
 0xf9f   :  { %3948 = vmatprep.subr.bf16.mxu1 %v4720_v46 }
 0xfa2   :  { %3950 = vmatpush1.bf16.msra.mxu1 %v4728_v50 }
 0xfa3   :  { %3952 = vmatprep.subr.bf16.mxu1 %v4738_v44 }
 0xfa6   :  { %3954 = vmatpush1.bf16.msra.mxu1 %v4748_v57 }
 0xfa7   :  { %3972 = vmatprep.subr.bf16.mxu1 %v4660_v19 }
0x106c   :  { %v2081_v33 = vpop.f32.mrb[10].mxu1 }
0x106d   :  { %v2083_v9 = vpop.f32.mrb[11].mxu1 }
0x106e   :  { %v2088_v52 = vcombine.low %v2081_v33, %v2083_v9 }
0x1070   :  { %v2095_v13 = vrot.slane %v2088_v52, %v4803_v4 }
0x1072   :  { %v2096_v14 = vcombine.high %v2095_v13, %v2095_v13  ;;  %v2103_v15 = vrot.slane %v2095_v13, %v4803_v4 }
0x1074   :  { %v2110_v21 = vrot.slane %v2096_v14, %v4803_v4  ;;  %v2113_v22 = vadd.f32 %v2103_v15, %v1993_v63 }
0x1076   :  { %v2114_v35 = vadd.f32 %v2110_v21, %v1995_v34  ;;  %v3637_v39 = vmul.f32 -1.442695, %v2113_v22  ;;  %v2129_v8 = vrot.slane %v2113_v22, 1 }
0x1078   :  { %4182 = vpow2.f32 %v3637_v39  ;;  %v3638_v58 = vmul.f32 -1.442695, %v2114_v35  ;;  %v2130_v40 = vrot.slane %v2114_v35, 1 }
0x107a   :  { %4184 = vpow2.f32 %v3638_v58 }
0x107b   :  { %4186 = vtanh.f32 %v2129_v8 }
0x1082   :  { %v4183_v37 = vpop.eup %4182 }
0x1083   :  { %v2121_v42 = vadd.f32 1.0, %v4183_v37 }
0x1084   :  { %v4185_v53 = vpop.eup %4184 }
0x1085   :  { %4188 = vrcp.f32 %v2121_v42  ;;  %v2122_v47 = vadd.f32 1.0, %v4185_v53  ;;  %v4187_v11 = vpop.eup %4186 }
0x1086   :  { %4190 = vtanh.f32 %v2130_v40 }
0x1087   :  { %4192 = vrcp.f32 %v2122_v47 }
0x108f   :  { %v4189_v48 = vpop.eup %4188 }
0x1090   :  { %v4191_v43 = vpop.eup %4190  ;;  %v2157_v51 = vmul.f32 %v4189_v48, %v4187_v11  ;;  %v2155_v59 = vmul.f32 %v4189_v48, %v5006_v18 }
0x1091   :  { %v4193_v60 = vpop.eup %4192 }
0x1092   :  { %2161 = vrot.lane.b32.xlu0 %v2157_v51, %s4382_s30  ;;  %v2158_v61 = vmul.f32 %v4193_v60, %v4191_v43  ;;  %v2156_v6 = vmul.f32 %v4193_v60, %v5010_v29 }
0x1094   :  { %2163 = vrot.lane.b32.xlu1 %v2158_v61, %s4382_s30 }
0x1096   :  { %2135 = vrot.lane.b32.xlu0 %v2113_v22, %s4382_s30 }
0x1098   :  { %2137 = vrot.lane.b32.xlu1 %v2114_v35, %s4382_s30 }
0x1104   :  { %v2162_v62 = vpop.permute.xlu0 %2161 }
0x1105   :  { %v5043_v5 = vadd.f32 %v2162_v62, %v2155_v59 }
0x1106   :  { %v2164_v7 = vpop.permute.xlu1 %2163 }
0x1107   :  { %4194 = vtanh.f32 %v5043_v5  ;;  %v5047_v33 = vadd.f32 %v2164_v7, %v2156_v6 }
0x1108   :  { %v2136_v13 = vpop.permute.xlu0 %2135 }
0x1109   :  { %4196 = vtanh.f32 %v5047_v33  ;;  %v2139_v14 = vrot.slane %v2136_v13, 1 }
0x110a   :  { %v2138_v18 = vpop.permute.xlu1 %2137 }
0x110b   :  { %v2140_v15 = vrot.slane %v2138_v18, 1  ;;  %v3639_v63 = vmul.f32 -1.442695, %v2139_v14  ;;  %v2208_v18 = vld [vmem:[#allocation2 + $0x27] ss:$8 sm:$0x3] }
0x110d   :  { %v3640_v21 = vmul.f32 -1.442695, %v2140_v15  ;;  %4198 = vpow2.f32 %v3639_v63 }
0x110f   :  { %4200 = vpow2.f32 %v3640_v21 }
0x1111   :  { %v4195_v9 = vpop.eup %4194 }
0x1112   :  { %2173 = vrot.lane.b32.xlu0 %v4195_v9, %s4382_s30  ;;  %v2206_v9 = vld [vmem:[#allocation2 + $0x7] ss:$8 sm:$0x3] }
0x1113   :  { %v4197_v52 = vpop.eup %4196 }
0x1114   :  { %2175 = vrot.lane.b32.xlu1 %v4197_v52, %s4382_s30 }
0x1117   :  { %v4199_v29 = vpop.eup %4198 }
0x1118   :  { %v2149_v34 = vadd.f32 1.0, %v4199_v29 }
0x1119   :  { %v4201_v22 = vpop.eup %4200 }
0x111a   :  { %v2150_v35 = vadd.f32 1.0, %v4201_v22  ;;  %4202 = vrcp.f32 %v2149_v34 }
0x111c   :  { %4204 = vrcp.f32 %v2150_v35 }
0x1124   :  { %v4203_v39 = vpop.eup %4202 }
0x1126   :  { %v4205_v37 = vpop.eup %4204 }
0x1184   :  { %v2174_v58 = vpop.permute.xlu0 %2173 }
0x1185   :  { %v2179_v8 = vmul.f32 %v4203_v39, %v2174_v58 }
0x1186   :  { %v2176_v40 = vpop.permute.xlu1 %2175 }
0x1187   :  { %v2180_v42 = vmul.f32 %v4205_v37, %v2176_v40  ;;  %v5053_v53 = vmul.f32 %v2179_v8, %v4825_v10 }
0x1189   :  { %v5056_v47 = vmul.f32 %v2180_v42, %v4828_v12  ;;  %v2211_v11 = vcombine.low %v2179_v8, %v2180_v42 }
0x118b   :  { %v2185_v48 = vcombine.low %v5053_v53, %v5056_v47  ;;  %v2218_v43 = vrot.slane %v2211_v11, %v4803_v4 }
0x118d   :  { %v2225_v51 = vrot.slane %v2218_v43, %v4803_v4 }
0x118f   :  { %3641 = vmatmul.mubr.msk.f32.vlgmr.msra.gmra.mrb[18].mxu0 %vm362_vm9, %v2225_v51 }
0x1190   :  { %3958 = vmatpush1.bf16.msra.mxu0 %v4668_v24  ;;  %2718 = vmatprep.mubr.f32.mxu0 %v4383_v56 }
0x1191   :  { %3960 = vmatprep.subr.bf16.mxu0 %v4690_v32 }
0x1194   :  { %3962 = vmatpush1.bf16.msra.mxu0 %v4698_v36 }
0x1195   :  { %3964 = vmatprep.subr.bf16.mxu0 %v4720_v46 }
0x1198   :  { %3966 = vmatpush1.bf16.msra.mxu0 %v4728_v50 }
0x1199   :  { %3968 = vmatprep.subr.bf16.mxu0 %v4738_v44 }
0x119c   :  { %3970 = vmatpush1.bf16.msra.mxu0 %v4748_v57 }
0x119d   :  { %3988 = vmatprep.subr.bf16.mxu0 %v4660_v19 }
0x1262   :  { %v2294_v60 = vpop.f32.mrb[18].mxu0 }
0x1263   :  { %v2296_v61 = vpop.f32.mrb[19].mxu0 }
0x1264   :  { %v2301_v59 = vcombine.low %v2294_v60, %v2296_v61 }
0x1266   :  { %v2308_v62 = vrot.slane %v2301_v59, %v4803_v4 }
0x1268   :  { %v2309_v6 = vcombine.high %v2308_v62, %v2308_v62  ;;  %v2316_v7 = vrot.slane %v2308_v62, %v4803_v4 }
0x126a   :  { %v2323_v52 = vrot.slane %v2309_v6, %v4803_v4  ;;  %v2326_v13 = vadd.f32 %v2316_v7, %v2206_v9 }
0x126c   :  { %v2327_v14 = vadd.f32 %v2323_v52, %v2208_v18  ;;  %v3642_v15 = vmul.f32 -1.442695, %v2326_v13  ;;  %v2342_v21 = vrot.slane %v2326_v13, 1 }
0x126e   :  { %4206 = vpow2.f32 %v3642_v15  ;;  %v3643_v63 = vmul.f32 -1.442695, %v2327_v14  ;;  %v2343_v29 = vrot.slane %v2327_v14, 1 }
0x1270   :  { %4208 = vpow2.f32 %v3643_v63 }
0x1271   :  { %4210 = vtanh.f32 %v2342_v21 }
0x1278   :  { %v4207_v19 = vpop.eup %4206 }
0x1279   :  { %v2334_v22 = vadd.f32 1.0, %v4207_v19 }
0x127a   :  { %v4209_v34 = vpop.eup %4208 }
0x127b   :  { %4212 = vrcp.f32 %v2334_v22  ;;  %v2335_v35 = vadd.f32 1.0, %v4209_v34  ;;  %v4211_v39 = vpop.eup %4210 }
0x127c   :  { %4214 = vtanh.f32 %v2343_v29 }
0x127d   :  { %4216 = vrcp.f32 %v2335_v35 }
0x1285   :  { %v4213_v58 = vpop.eup %4212 }
0x1286   :  { %v4215_v8 = vpop.eup %4214  ;;  %v2370_v37 = vmul.f32 %v4213_v58, %v4211_v39  ;;  %v2368_v11 = vmul.f32 %v4213_v58, %v5043_v5 }
0x1287   :  { %v4217_v40 = vpop.eup %4216 }
0x1288   :  { %2374 = vrot.lane.b32.xlu0 %v2370_v37, %s4382_s30  ;;  %v2371_v42 = vmul.f32 %v4217_v40, %v4215_v8  ;;  %v2369_v60 = vmul.f32 %v4217_v40, %v5047_v33 }
0x128a   :  { %2376 = vrot.lane.b32.xlu1 %v2371_v42, %s4382_s30 }
0x128c   :  { %2348 = vrot.lane.b32.xlu0 %v2326_v13, %s4382_s30 }
0x128e   :  { %2350 = vrot.lane.b32.xlu1 %v2327_v14, %s4382_s30 }
0x12fa   :  { %v2375_v43 = vpop.permute.xlu0 %2374 }
0x12fb   :  { %v5080_v51 = vadd.f32 %v2375_v43, %v2368_v11 }
0x12fc   :  { %v2377_v61 = vpop.permute.xlu1 %2376 }
0x12fd   :  { %4218 = vtanh.f32 %v5080_v51  ;;  %v5084_v59 = vadd.f32 %v2377_v61, %v2369_v60 }
0x12fe   :  { %v2349_v7 = vpop.permute.xlu0 %2348 }
0x12ff   :  { %4220 = vtanh.f32 %v5084_v59  ;;  %v2352_v9 = vrot.slane %v2349_v7, 1  ;;  %v2419_v7 = vld [vmem:[#allocation2 + $0x10] ss:$8 sm:$0x3] }
0x1300   :  { %v2351_v5 = vpop.permute.xlu1 %2350 }
0x1301   :  { %v2353_v52 = vrot.slane %v2351_v5, 1  ;;  %v3644_v13 = vmul.f32 -1.442695, %v2352_v9 }
0x1303   :  { %v3645_v18 = vmul.f32 -1.442695, %v2353_v52  ;;  %4222 = vpow2.f32 %v3644_v13  ;;  %v2421_v52 = vld [vmem:[#allocation2 + $0x30] ss:$8 sm:$0x3] }
0x1305   :  { %4224 = vpow2.f32 %v3645_v18 }
0x1307   :  { %v4219_v62 = vpop.eup %4218 }
0x1308   :  { %2386 = vrot.lane.b32.xlu0 %v4219_v62, %s4382_s30 }
0x1309   :  { %v4221_v6 = vpop.eup %4220 }
0x130a   :  { %2388 = vrot.lane.b32.xlu1 %v4221_v6, %s4382_s30 }
0x130d   :  { %v4223_v33 = vpop.eup %4222 }
0x130e   :  { %v2362_v15 = vadd.f32 1.0, %v4223_v33 }
0x130f   :  { %v4225_v14 = vpop.eup %4224 }
0x1310   :  { %v2363_v63 = vadd.f32 1.0, %v4225_v14  ;;  %4226 = vrcp.f32 %v2362_v15 }
0x1312   :  { %4228 = vrcp.f32 %v2363_v63 }
0x131a   :  { %v4227_v21 = vpop.eup %4226 }
0x131c   :  { %v4229_v22 = vpop.eup %4228 }
0x137a   :  { %v2387_v19 = vpop.permute.xlu0 %2386 }
0x137b   :  { %v2392_v29 = vmul.f32 %v4227_v21, %v2387_v19 }
0x137c   :  { %v2389_v34 = vpop.permute.xlu1 %2388 }
0x137d   :  { %v2393_v35 = vmul.f32 %v4229_v22, %v2389_v34  ;;  %v5090_v39 = vmul.f32 %v2392_v29, %v4825_v10 }
0x137f   :  { %v5093_v58 = vmul.f32 %v2393_v35, %v4828_v12  ;;  %v2424_v8 = vcombine.low %v2392_v29, %v2393_v35 }
0x1381   :  { %v2398_v37 = vcombine.low %v5090_v39, %v5093_v58  ;;  %v2431_v40 = vrot.slane %v2424_v8, %v4803_v4 }
0x1383   :  { %v2438_v42 = vrot.slane %v2431_v40, %v4803_v4 }
0x1385   :  { %3646 = vmatmul.mubr.msk.f32.vlgmr.msra.gmra.mrb[12].mxu1 %vm362_vm9, %v2438_v42 }
0x1386   :  { %3974 = vmatpush1.bf16.msra.mxu1 %v4668_v24  ;;  %2931 = vmatprep.mubr.f32.mxu1 %v4383_v56 }
0x1387   :  { %3976 = vmatprep.subr.bf16.mxu1 %v4690_v32 }
0x138a   :  { %3978 = vmatpush1.bf16.msra.mxu1 %v4698_v36 }
0x138b   :  { %3980 = vmatprep.subr.bf16.mxu1 %v4720_v46 }
0x138e   :  { %3982 = vmatpush1.bf16.msra.mxu1 %v4728_v50 }
0x138f   :  { %3984 = vmatprep.subr.bf16.mxu1 %v4738_v44 }
0x1392   :  { %3986 = vmatpush1.bf16.msra.mxu1 %v4748_v57 }
0x1458   :  { %v2507_v11 = vpop.f32.mrb[12].mxu1 }
0x1459   :  { %v2509_v43 = vpop.f32.mrb[13].mxu1 }
0x145a   :  { %v2514_v60 = vcombine.low %v2507_v11, %v2509_v43 }
0x145c   :  { %v2521_v61 = vrot.slane %v2514_v60, %v4803_v4 }
0x145e   :  { %v2522_v62 = vcombine.high %v2521_v61, %v2521_v61  ;;  %v2529_v6 = vrot.slane %v2521_v61, %v4803_v4 }
0x1460   :  { %v2536_v5 = vrot.slane %v2522_v62, %v4803_v4  ;;  %v2539_v9 = vadd.f32 %v2529_v6, %v2419_v7 }
0x1462   :  { %v2540_v13 = vadd.f32 %v2536_v5, %v2421_v52  ;;  %v3647_v18 = vmul.f32 -1.442695, %v2539_v9  ;;  %v2555_v14 = vrot.slane %v2539_v9, 1 }
0x1464   :  { %4230 = vpow2.f32 %v3647_v18  ;;  %v3648_v33 = vmul.f32 -1.442695, %v2540_v13  ;;  %v2556_v63 = vrot.slane %v2540_v13, 1 }
0x1466   :  { %4232 = vpow2.f32 %v3648_v33 }
0x1467   :  { %4234 = vtanh.f32 %v2555_v14 }
0x146e   :  { %v4231_v15 = vpop.eup %4230 }
0x146f   :  { %v2547_v21 = vadd.f32 1.0, %v4231_v15 }
0x1470   :  { %v4233_v19 = vpop.eup %4232 }
0x1471   :  { %4236 = vrcp.f32 %v2547_v21  ;;  %v2548_v29 = vadd.f32 1.0, %v4233_v19  ;;  %v4235_v22 = vpop.eup %4234 }
0x1472   :  { %4238 = vtanh.f32 %v2556_v63 }
0x1473   :  { %4240 = vrcp.f32 %v2548_v29 }
0x147b   :  { %v4237_v34 = vpop.eup %4236 }
0x147c   :  { %v4239_v35 = vpop.eup %4238  ;;  %v2583_v8 = vmul.f32 %v4237_v34, %v4235_v22  ;;  %v2581_v11 = vmul.f32 %v4237_v34, %v5080_v51 }
0x147d   :  { %v4241_v40 = vpop.eup %4240 }
0x147e   :  { %2587 = vrot.lane.b32.xlu0 %v2583_v8, %s4382_s30  ;;  %v2584_v42 = vmul.f32 %v4241_v40, %v4239_v35  ;;  %v2582_v61 = vmul.f32 %v4241_v40, %v5084_v59 }
0x1480   :  { %2589 = vrot.lane.b32.xlu1 %v2584_v42, %s4382_s30 }
0x1482   :  { %2561 = vrot.lane.b32.xlu0 %v2539_v9, %s4382_s30 }
0x1484   :  { %2563 = vrot.lane.b32.xlu1 %v2540_v13, %s4382_s30 }
0x14f0   :  { %v2588_v43 = vpop.permute.xlu0 %2587 }
0x14f1   :  { %v5116_v60 = vadd.f32 %v2588_v43, %v2581_v11 }
0x14f2   :  { %v2590_v62 = vpop.permute.xlu1 %2589 }
0x14f3   :  { %4242 = vtanh.f32 %v5116_v60  ;;  %v5120_v6 = vadd.f32 %v2590_v62, %v2582_v61 }
0x14f4   :  { %v2562_v9 = vpop.permute.xlu0 %2561 }
0x14f5   :  { %4244 = vtanh.f32 %v5120_v6  ;;  %v2565_v52 = vrot.slane %v2562_v9, 1 }
0x14f6   :  { %v2564_v51 = vpop.permute.xlu1 %2563 }
0x14f7   :  { %v2566_v13 = vrot.slane %v2564_v51, 1  ;;  %v3649_v18 = vmul.f32 -1.442695, %v2565_v52  ;;  %v2632_v52 = vld [vmem:[#allocation2 + $0x11] ss:$8 sm:$0x3] }
0x14f9   :  { %v3650_v33 = vmul.f32 -1.442695, %v2566_v13  ;;  %4246 = vpow2.f32 %v3649_v18  ;;  %v2634_v13 = vld [vmem:[#allocation2 + $0x31] ss:$8 sm:$0x3] }
0x14fb   :  { %4248 = vpow2.f32 %v3650_v33 }
0x14fd   :  { %v4243_v7 = vpop.eup %4242 }
0x14fe   :  { %2599 = vrot.lane.b32.xlu0 %v4243_v7, %s4382_s30 }
0x14ff   :  { %v4245_v5 = vpop.eup %4244 }
0x1500   :  { %2601 = vrot.lane.b32.xlu1 %v4245_v5, %s4382_s30 }
0x1503   :  { %v4247_v59 = vpop.eup %4246 }
0x1504   :  { %v2575_v15 = vadd.f32 1.0, %v4247_v59 }
0x1505   :  { %v4249_v14 = vpop.eup %4248 }
0x1506   :  { %v2576_v63 = vadd.f32 1.0, %v4249_v14  ;;  %4250 = vrcp.f32 %v2575_v15 }
0x1508   :  { %4252 = vrcp.f32 %v2576_v63 }
0x1510   :  { %v4251_v21 = vpop.eup %4250 }
0x1512   :  { %v4253_v22 = vpop.eup %4252 }
0x1570   :  { %v2600_v19 = vpop.permute.xlu0 %2599 }
0x1571   :  { %v2605_v29 = vmul.f32 %v4251_v21, %v2600_v19 }
0x1572   :  { %v2602_v34 = vpop.permute.xlu1 %2601 }
0x1573   :  { %v2606_v35 = vmul.f32 %v4253_v22, %v2602_v34  ;;  %v5126_v8 = vmul.f32 %v2605_v29, %v4825_v10 }
0x1575   :  { %v5129_v40 = vmul.f32 %v2606_v35, %v4828_v12  ;;  %v2637_v42 = vcombine.low %v2605_v29, %v2606_v35 }
0x1577   :  { %v2611_v11 = vcombine.low %v5126_v8, %v5129_v40  ;;  %v2644_v43 = vrot.slane %v2637_v42, %v4803_v4 }
0x1579   :  { %v2651_v61 = vrot.slane %v2644_v43, %v4803_v4  ;;  %v2618_v31 = vrot.slane %v2611_v11, %v4803_v4 }
0x157b   :  { %3651 = vmatmul.mubr.msk.f32.vlgmr.msra.gmra.mrb[20].mxu0 %vm362_vm9, %v2651_v61  ;;  %v2625_v47 = vrot.slane %v2618_v31, %v4803_v4  ;;  %v3404_v31 = vld [vmem:[%s5347_s12 + $0x8] sm:$0xff] }
0x157c   :  { %3990 = vmatpush1.bf16.msra.mxu0 %v4668_v24  ;;  %3144 = vmatprep.mubr.f32.mxu0 %v4383_v56 }
0x157d   :  { %3992 = vmatprep.subr.bf16.mxu0 %v4690_v32 }
0x1580   :  { %3994 = vmatpush1.bf16.msra.mxu0 %v4698_v36 }
0x1581   :  { %3996 = vmatprep.subr.bf16.mxu0 %v4720_v46 }
0x1584   :  { %3998 = vmatpush1.bf16.msra.mxu0 %v4728_v50 }
0x1585   :  { %4000 = vmatprep.subr.bf16.mxu0 %v4738_v44 }
0x1588   :  { %4002 = vmatpush1.bf16.msra.mxu0 %v4748_v57 }
0x164e   :  { %v2720_v62 = vpop.f32.mrb[20].mxu0 }
0x164f   :  { %v2722_v7 = vpop.f32.mrb[21].mxu0 }
0x1650   :  { %v2727_v5 = vcombine.low %v2720_v62, %v2722_v7 }
0x1652   :  { %v2734_v9 = vrot.slane %v2727_v5, %v4803_v4 }
0x1654   :  { %v2735_v24 = vcombine.high %v2734_v9, %v2734_v9  ;;  %v2742_v51 = vrot.slane %v2734_v9, %v4803_v4 }
0x1656   :  { %v2749_v32 = vrot.slane %v2735_v24, %v4803_v4  ;;  %v2752_v36 = vadd.f32 %v2742_v51, %v2632_v52 }
0x1658   :  { %v2753_v46 = vadd.f32 %v2749_v32, %v2634_v13  ;;  %v3652_v18 = vmul.f32 -1.442695, %v2752_v36  ;;  %v2768_v44 = vrot.slane %v2752_v36, 1 }
0x165a   :  { %4254 = vpow2.f32 %v3652_v18  ;;  %v3653_v50 = vmul.f32 -1.442695, %v2753_v46  ;;  %v2769_v33 = vrot.slane %v2753_v46, 1 }
0x165c   :  { %4256 = vpow2.f32 %v3653_v50 }
0x165d   :  { %4258 = vtanh.f32 %v2768_v44 }
0x1664   :  { %v4255_v57 = vpop.eup %4254 }
0x1665   :  { %v2760_v59 = vadd.f32 1.0, %v4255_v57 }
0x1666   :  { %v4257_v14 = vpop.eup %4256 }
0x1667   :  { %4260 = vrcp.f32 %v2760_v59  ;;  %v2761_v15 = vadd.f32 1.0, %v4257_v14  ;;  %v4259_v63 = vpop.eup %4258 }
0x1668   :  { %4262 = vtanh.f32 %v2769_v33 }
0x1669   :  { %4264 = vrcp.f32 %v2761_v15 }
0x1671   :  { %v4261_v21 = vpop.eup %4260 }
0x1672   :  { %v4263_v19 = vpop.eup %4262  ;;  %v2796_v29 = vmul.f32 %v4261_v21, %v4259_v63  ;;  %v2794_v35 = vmul.f32 %v4261_v21, %v5116_v60 }
0x1673   :  { %v4265_v22 = vpop.eup %4264 }
0x1674   :  { %2800 = vrot.lane.b32.xlu0 %v2796_v29, %s4382_s30  ;;  %v2797_v34 = vmul.f32 %v4265_v22, %v4263_v19  ;;  %v2795_v61 = vmul.f32 %v4265_v22, %v5120_v6 }
0x1676   :  { %2802 = vrot.lane.b32.xlu1 %v2797_v34, %s4382_s30 }
0x1678   :  { %2774 = vrot.lane.b32.xlu0 %v2752_v36, %s4382_s30 }
0x167a   :  { %2776 = vrot.lane.b32.xlu1 %v2753_v46, %s4382_s30 }
0x16e6   :  { %v2801_v42 = vpop.permute.xlu0 %2800 }
0x16e7   :  { %v5152_v43 = vadd.f32 %v2801_v42, %v2794_v35 }
0x16e8   :  { %v2803_v62 = vpop.permute.xlu1 %2802 }
0x16e9   :  { %4266 = vtanh.f32 %v5152_v43  ;;  %v5156_v7 = vadd.f32 %v2803_v62, %v2795_v61 }
0x16ea   :  { %v2775_v24 = vpop.permute.xlu0 %2774 }
0x16eb   :  { %4268 = vtanh.f32 %v5156_v7  ;;  %v2778_v51 = vrot.slane %v2775_v24, 1 }
0x16ec   :  { %v2777_v60 = vpop.permute.xlu1 %2776 }
0x16ed   :  { %v2779_v52 = vrot.slane %v2777_v60, 1  ;;  %v3654_v32 = vmul.f32 -1.442695, %v2778_v51  ;;  %v2847_v51 = vld [vmem:[#allocation2 + $0x32] ss:$8 sm:$0x3] }
0x16ef   :  { %v3655_v36 = vmul.f32 -1.442695, %v2779_v52  ;;  %4270 = vpow2.f32 %v3654_v32 }
0x16f1   :  { %4272 = vpow2.f32 %v3655_v36 }
0x16f3   :  { %v4267_v5 = vpop.eup %4266 }
0x16f4   :  { %2812 = vrot.lane.b32.xlu0 %v4267_v5, %s4382_s30 }
0x16f5   :  { %v4269_v9 = vpop.eup %4268 }
0x16f6   :  { %2814 = vrot.lane.b32.xlu1 %v4269_v9, %s4382_s30  ;;  %v2845_v9 = vld [vmem:[#allocation2 + $0x12] ss:$8 sm:$0x3] }
0x16f9   :  { %v4271_v6 = vpop.eup %4270 }
0x16fa   :  { %v2788_v46 = vadd.f32 1.0, %v4271_v6 }
0x16fb   :  { %v4273_v13 = vpop.eup %4272 }
0x16fc   :  { %v2789_v18 = vadd.f32 1.0, %v4273_v13  ;;  %4274 = vrcp.f32 %v2788_v46 }
0x16fe   :  { %4276 = vrcp.f32 %v2789_v18 }
0x1706   :  { %v4275_v50 = vpop.eup %4274 }
0x1708   :  { %v4277_v33 = vpop.eup %4276 }
0x1766   :  { %v2813_v44 = vpop.permute.xlu0 %2812 }
0x1767   :  { %v2818_v57 = vmul.f32 %v4275_v50, %v2813_v44 }
0x1768   :  { %v2815_v59 = vpop.permute.xlu1 %2814 }
0x1769   :  { %v2819_v14 = vmul.f32 %v4277_v33, %v2815_v59  ;;  %v5162_v15 = vmul.f32 %v2818_v57, %v4825_v10 }
0x176b   :  { %v5165_v63 = vmul.f32 %v2819_v14, %v4828_v12  ;;  %v2850_v21 = vcombine.low %v2818_v57, %v2819_v14 }
0x176d   :  { %v2824_v19 = vcombine.low %v5162_v15, %v5165_v63  ;;  %v2857_v29 = vrot.slane %v2850_v21, %v4803_v4 }
0x176f   :  { %v2864_v22 = vrot.slane %v2857_v29, %v4803_v4 }
0x1771   :  { %3656 = vmatmul.mubr.msk.f32.vlgmr.msra.gmra.mrb[14].mxu1 %vm362_vm9, %v2864_v22 }
0x1772   :  { %3486 = vmatprep.mubr.f32.mxu1 %v4383_v56 }
0x1844   :  { %v2933_v34 = vpop.f32.mrb[14].mxu1 }
0x1845   :  { %v2935_v35 = vpop.f32.mrb[15].mxu1 }
0x1846   :  { %v2940_v42 = vcombine.low %v2933_v34, %v2935_v35 }
0x1848   :  { %v2947_v61 = vrot.slane %v2940_v42, %v4803_v4 }
0x184a   :  { %v2948_v62 = vcombine.high %v2947_v61, %v2947_v61  ;;  %v2955_v5 = vrot.slane %v2947_v61, %v4803_v4 }
0x184c   :  { %v2962_v24 = vrot.slane %v2948_v62, %v4803_v4  ;;  %v2965_v60 = vadd.f32 %v2955_v5, %v2845_v9 }
0x184e   :  { %v2966_v52 = vadd.f32 %v2962_v24, %v2847_v51  ;;  %v3657_v32 = vmul.f32 -1.442695, %v2965_v60  ;;  %v2981_v6 = vrot.slane %v2965_v60, 1 }
0x1850   :  { %4278 = vpow2.f32 %v3657_v32  ;;  %v3658_v36 = vmul.f32 -1.442695, %v2966_v52  ;;  %v2982_v46 = vrot.slane %v2966_v52, 1 }
0x1852   :  { %4280 = vpow2.f32 %v3658_v36 }
0x1853   :  { %4282 = vtanh.f32 %v2981_v6 }
0x185a   :  { %v4279_v13 = vpop.eup %4278 }
0x185b   :  { %v2973_v18 = vadd.f32 1.0, %v4279_v13 }
0x185c   :  { %v4281_v50 = vpop.eup %4280 }
0x185d   :  { %4284 = vrcp.f32 %v2973_v18  ;;  %v2974_v44 = vadd.f32 1.0, %v4281_v50  ;;  %v4283_v57 = vpop.eup %4282 }
0x185e   :  { %4286 = vtanh.f32 %v2982_v46 }
0x185f   :  { %4288 = vrcp.f32 %v2974_v44 }
0x1867   :  { %v4285_v33 = vpop.eup %4284 }
0x1868   :  { %v4287_v59 = vpop.eup %4286  ;;  %v3009_v14 = vmul.f32 %v4285_v33, %v4283_v57  ;;  %v3007_v22 = vmul.f32 %v4285_v33, %v5152_v43 }
0x1869   :  { %v4289_v21 = vpop.eup %4288 }
0x186a   :  { %3013 = vrot.lane.b32.xlu0 %v3009_v14, %s4382_s30  ;;  %v3010_v29 = vmul.f32 %v4289_v21, %v4287_v59  ;;  %v3008_v42 = vmul.f32 %v4289_v21, %v5156_v7 }
0x186c   :  { %3015 = vrot.lane.b32.xlu1 %v3010_v29, %s4382_s30 }
0x186e   :  { %2987 = vrot.lane.b32.xlu0 %v2965_v60, %s4382_s30 }
0x1870   :  { %2989 = vrot.lane.b32.xlu1 %v2966_v52, %s4382_s30 }
0x18dc   :  { %v3014_v34 = vpop.permute.xlu0 %3013 }
0x18dd   :  { %v5181_v35 = vadd.f32 %v3014_v34, %v3007_v22 }
0x18de   :  { %v3016_v61 = vpop.permute.xlu1 %3015 }
0x18df   :  { %4290 = vtanh.f32 %v5181_v35  ;;  %v5185_v62 = vadd.f32 %v3016_v61, %v3008_v42 }
0x18e0   :  { %v2988_v24 = vpop.permute.xlu0 %2987 }
0x18e1   :  { %4292 = vtanh.f32 %v5185_v62  ;;  %v2991_v60 = vrot.slane %v2988_v24, 1 }
0x18e2   :  { %v2990_v43 = vpop.permute.xlu1 %2989 }
0x18e3   :  { %v2992_v51 = vrot.slane %v2990_v43, 1  ;;  %v3659_v52 = vmul.f32 -1.442695, %v2991_v60  ;;  %v3058_v60 = vld [vmem:[#allocation2 + $0x13] ss:$8 sm:$0x3] }
0x18e5   :  { %v3660_v32 = vmul.f32 -1.442695, %v2992_v51  ;;  %4294 = vpow2.f32 %v3659_v52 }
0x18e7   :  { %4296 = vpow2.f32 %v3660_v32  ;;  %v3060_v32 = vld [vmem:[#allocation2 + $0x33] ss:$8 sm:$0x3] }
0x18e9   :  { %v4291_v5 = vpop.eup %4290 }
0x18ea   :  { %3025 = vrot.lane.b32.xlu0 %v4291_v5, %s4382_s30 }
0x18eb   :  { %v4293_v9 = vpop.eup %4292 }
0x18ec   :  { %3027 = vrot.lane.b32.xlu1 %v4293_v9, %s4382_s30 }
0x18ef   :  { %v4295_v7 = vpop.eup %4294 }
0x18f0   :  { %v3001_v6 = vadd.f32 1.0, %v4295_v7 }
0x18f1   :  { %v4297_v36 = vpop.eup %4296 }
0x18f2   :  { %v3002_v13 = vadd.f32 1.0, %v4297_v36  ;;  %4298 = vrcp.f32 %v3001_v6 }
0x18f4   :  { %4300 = vrcp.f32 %v3002_v13 }
0x18fc   :  { %v4299_v46 = vpop.eup %4298 }
0x18fe   :  { %v4301_v44 = vpop.eup %4300 }
0x195c   :  { %v3026_v18 = vpop.permute.xlu0 %3025 }
0x195d   :  { %v3031_v50 = vmul.f32 %v4299_v46, %v3026_v18 }
0x195e   :  { %v3028_v57 = vpop.permute.xlu1 %3027 }
0x195f   :  { %v3032_v33 = vmul.f32 %v4301_v44, %v3028_v57  ;;  %v5191_v59 = vmul.f32 %v3031_v50, %v4825_v10 }
0x1961   :  { %v5194_v14 = vmul.f32 %v3032_v33, %v4828_v12  ;;  %v3063_v21 = vcombine.low %v3031_v50, %v3032_v33 }
0x1963   :  { %v3037_v29 = vcombine.low %v5191_v59, %v5194_v14  ;;  %v3070_v22 = vrot.slane %v3063_v21, %v4803_v4 }
0x1965   :  { %v3077_v34 = vrot.slane %v3070_v22, %v4803_v4 }
0x1967   :  { %3661 = vmatmul.mubr.msk.f32.vlgmr.msra.gmra.mrb[22].mxu0 %vm362_vm9, %v3077_v34  ;;  %vm3409_vm9 = vcmask 105472  }
0x1968   :  { %3754 = vmatprep.mubr.msk.f32.mxu0 %vm4395_vm12, %v4383_v56 }
0x1a3a   :  { %v3146_v42 = vpop.f32.mrb[22].mxu0 }
0x1a3b   :  { %v3148_v61 = vpop.f32.mrb[23].mxu0 }
0x1a3c   :  { %v3153_v5 = vcombine.low %v3146_v42, %v3148_v61 }
0x1a3e   :  { %v3160_v9 = vrot.slane %v3153_v5, %v4803_v4 }
0x1a40   :  { %v3161_v24 = vcombine.high %v3160_v9, %v3160_v9  ;;  %v3168_v43 = vrot.slane %v3160_v9, %v4803_v4 }
0x1a42   :  { %v3175_v51 = vrot.slane %v3161_v24, %v4803_v4  ;;  %v3178_v52 = vadd.f32 %v3168_v43, %v3058_v60 }
0x1a44   :  { %v3179_v7 = vadd.f32 %v3175_v51, %v3060_v32  ;;  %v3662_v36 = vmul.f32 -1.442695, %v3178_v52  ;;  %v3194_v13 = vrot.slane %v3178_v52, 1 }
0x1a46   :  { %4302 = vpow2.f32 %v3662_v36  ;;  %v3663_v6 = vmul.f32 -1.442695, %v3179_v7  ;;  %v3195_v18 = vrot.slane %v3179_v7, 1 }
0x1a48   :  { %4304 = vpow2.f32 %v3663_v6 }
0x1a49   :  { %4306 = vtanh.f32 %v3194_v13 }
0x1a50   :  { %v4303_v46 = vpop.eup %4302 }
0x1a51   :  { %v3186_v50 = vadd.f32 1.0, %v4303_v46 }
0x1a52   :  { %v4305_v44 = vpop.eup %4304 }
0x1a53   :  { %4308 = vrcp.f32 %v3186_v50  ;;  %v3187_v57 = vadd.f32 1.0, %v4305_v44  ;;  %v4307_v33 = vpop.eup %4306 }
0x1a54   :  { %4310 = vtanh.f32 %v3195_v18 }
0x1a55   :  { %4312 = vrcp.f32 %v3187_v57  ;;  %v3666_v57 = vld [vmem:[%s5346_s10] ss:$0 sm:$0xff]  ;;  %s4385_s10 = smov 1  }
0x1a5d   :  { %v4309_v21 = vpop.eup %4308 }
0x1a5e   :  { %v4311_v22 = vpop.eup %4310  ;;  %v3222_v34 = vmul.f32 %v4309_v21, %v4307_v33  ;;  %v3220_v5 = vmul.f32 %v4309_v21, %v5181_v35  ;;  %v3282_v33 = vrot.slane %v3666_v57, %v4803_v4 }
0x1a5f   :  { %v4313_v42 = vpop.eup %4312 }
0x1a60   :  { %3226 = vrot.lane.b32.xlu0 %v3222_v34, %s4382_s30  ;;  %v3223_v61 = vmul.f32 %v4313_v42, %v4311_v22  ;;  %v3221_v43 = vmul.f32 %v4313_v42, %v5185_v62  ;;  %v1553_v62 = vrot.slane %v1546_v1, %v4803_v4  ;;  %v2405_v1 = vrot.slane %v2398_v37, %v4803_v4 }
0x1a61   :  { %v2627_v37 = vsel %vm915_vm11, %v2625_v47, 0.0  ;;  %v3283_v21 = vcombine.high %v3282_v33, %v3282_v33  ;;  %v3290_v42 = vrot.slane %v3282_v33, %v4803_v4  ;;  %v4389_v47 = vmov 0.0|0.0  }
0x1a62   :  { %3228 = vrot.lane.b32.xlu1 %v3223_v61, %s4382_s30  ;;  %v1560_v13 = vrot.slane %v1553_v62, %v4803_v4  ;;  %v2412_v26 = vrot.slane %v2405_v1, %v4803_v4  ;;  %4009 = vmatprep.subr.bf16.mxu0 %v4389_v47 }
0x1a64   :  { %3200 = vrot.lane.b32.xlu0 %v3178_v52, %s4382_s30  ;;  %v1127_v52 = vrot.slane %v1120_v30, %v4803_v4  ;;  %v1979_v30 = vrot.slane %v1972_v49, %v4803_v4  ;;  %v1562_v38 = vsel %vm915_vm11, %v1560_v13, 0.0  ;;  %v2831_v49 = vrot.slane %v2824_v19, %v4803_v4 }
0x1a65   :  { %v2414_v39 = vsel %vm915_vm11, %v2412_v26, 0.0  ;;  %v3403_v26 = vld [vmem:[%s5347_s12] sm:$0xff] }
0x1a66   :  { %3202 = vrot.lane.b32.xlu1 %v3179_v7, %s4382_s30  ;;  %v1134_v35 = vrot.slane %v1127_v52, %v4803_v4  ;;  %v1340_v7 = vrot.slane %v1333_v45, %v4803_v4  ;;  %v2192_v45 = vrot.slane %v2185_v48, %v4803_v4  ;;  %v1986_v3 = vrot.slane %v1979_v30, %v4803_v4 }
0x1a67   :  { %v3044_v48 = vrot.slane %v3037_v29, %v4803_v4  ;;  %v2838_v58 = vrot.slane %v2831_v49, %v4803_v4 }
0x1a68   :  { %v1136_v6 = vsel %vm915_vm11, %v1134_v35, 0.0  ;;  %v1347_v28 = vrot.slane %v1340_v7, %v4803_v4  ;;  %v2199_v55 = vrot.slane %v2192_v45, %v4803_v4  ;;  %v1988_v0 = vsel %vm915_vm11, %v1986_v3, 0.0 }
0x1a69   :  { %v3051_v8 = vrot.slane %v3044_v48, %v4803_v4  ;;  %v2840_v40 = vsel %vm915_vm11, %v2838_v58, 0.0  ;;  %v3405_v48 = vld [vmem:[%s5347_s12 + $0x10] sm:$0xff] }
0x1a6a   :  { %v1349_v2 = vsel %vm915_vm11, %v1347_v28, 0.0  ;;  %v2201_v53 = vsel %vm915_vm11, %v2199_v55, 0.0 }
0x1a6b   :  { %v3053_v11 = vsel %vm915_vm11, %v3051_v8, 0.0 }
0x1ad2   :  { %v3227_v9 = vpop.permute.xlu0 %3226 }
0x1ad3   :  { %v3232_v24 = vadd.f32 %v3227_v9, %v3220_v5  ;;  %v3297_v5 = vrot.slane %v3283_v21, %v4803_v4 }
0x1ad4   :  { %v3229_v60 = vpop.permute.xlu1 %3228 }
0x1ad5   :  { %4314 = vtanh.f32 %v3232_v24  ;;  %v3233_v51 = vadd.f32 %v3229_v60, %v3221_v43 }
0x1ad6   :  { %v3201_v15 = vpop.permute.xlu0 %3200 }
0x1ad7   :  { %4316 = vtanh.f32 %v3233_v51  ;;  %v3204_v19 = vrot.slane %v3201_v15, 1 }
0x1ad8   :  { %v3203_v63 = vpop.permute.xlu1 %3202 }
0x1ad9   :  { %v3205_v59 = vrot.slane %v3203_v63, 1  ;;  %v3664_v14 = vmul.f32 -1.442695, %v3204_v19 }
0x1adb   :  { %v3665_v29 = vmul.f32 -1.442695, %v3205_v59  ;;  %4318 = vpow2.f32 %v3664_v14 }
0x1add   :  { %4320 = vpow2.f32 %v3665_v29 }
0x1adf   :  { %v4315_v32 = vpop.eup %4314 }
0x1ae0   :  { %3238 = vrot.lane.b32.xlu0 %v4315_v32, %s4382_s30 }
0x1ae1   :  { %v4317_v36 = vpop.eup %4316 }
0x1ae2   :  { %3240 = vrot.lane.b32.xlu1 %v4317_v36, %s4382_s30 }
0x1ae5   :  { %v4319_v46 = vpop.eup %4318 }
0x1ae6   :  { %v3214_v50 = vadd.f32 1.0, %v4319_v46 }
0x1ae7   :  { %v4321_v18 = vpop.eup %4320 }
0x1ae8   :  { %v3215_v44 = vadd.f32 1.0, %v4321_v18  ;;  %4322 = vrcp.f32 %v3214_v50 }
0x1aea   :  { %4324 = vrcp.f32 %v3215_v44 }
0x1af2   :  { %v4323_v22 = vpop.eup %4322 }
0x1af4   :  { %v4325_v9 = vpop.eup %4324 }
0x1aff   :  { %1137 = vadd.xlane.f32.xlu0 %v1136_v6  ;;  %v906_v6 = vrot.slane %v899_v20, %v4803_v4 }
0x1b01   :  { %v913_v28 = vrot.slane %v906_v6, %v4803_v4 }
0x1b03   :  { %1563 = vadd.xlane.f32.xlu0 %v1562_v38  ;;  %v916_v30 = vsel %vm915_vm11, %v913_v28, 0.0  ;;  %v5292_v38 = vld [vmem:[#allocation3] ss:$0 sm:$0xff] }
0x1b06   :  { %1350 = vadd.xlane.f32.xlu1 %v1349_v2 }
0x1b07   :  { %1776 = vadd.xlane.f32.xlu0 %v1775_v25 }
0x1b0a   :  { %1989 = vadd.xlane.f32.xlu1 %v1988_v0  ;;  %v3407_v0 = vld [vmem:[%s5347_s12 + $0x20] sm:$0x1f] }
0x1b0b   :  { %2202 = vadd.xlane.f32.xlu0 %v2201_v53  ;;  %v4003_v49 = vpack.c.bf16 %v3407_v0, %v3404_v31  ;;  %v3406_v53 = vld [vmem:[%s5347_s12 + $0x18] sm:$0x1f] }
0x1b0d   :  { %4005 = vmatprep.subr.msk.bf16.mxu1 %vm4518_vm3, %v4003_v49 }
0x1b0e   :  { %2415 = vadd.xlane.f32.xlu1 %v2414_v39  ;;  %v3408_v39 = vld [vmem:[%s5347_s12 + $0x28] sm:$0x1f]  ;;  %s4391_s12 = smov 5  }
0x1b0f   :  { %2628 = vadd.xlane.f32.xlu0 %v2627_v37  ;;  %v4006_v37 = vpack.c.bf16 %v3406_v53, %v3403_v26  ;;  %v4010_v8 = vpack.c.bf16 %v3408_v39, %v3405_v48 }
0x1b11   :  { %4008 = vmatpush1.bf16.msk.msra.mxu1 %vm4518_vm3, %v4006_v37  ;;  %4012 = vmatpush3.bf16.msk.msra.mxu0 %vm4518_vm3, %v4010_v8  ;;  %vm3391_vm3 = vcmask 56320  }
0x1b12   :  { %2841 = vadd.xlane.f32.xlu1 %v2840_v40 }
0x1b13   :  { %3054 = vadd.xlane.f32.xlu0 %v3053_v11 }
0x1b52   :  { %v3239_v34 = vpop.permute.xlu0 %3238 }
0x1b53   :  { %v3244_v61 = vmul.f32 %v4323_v22, %v3239_v34 }
0x1b54   :  { %v3241_v24 = vpop.permute.xlu1 %3240 }
0x1b55   :  { %v3245_v43 = vmul.f32 %v4325_v9, %v3241_v24  ;;  %v3246_v60 = vmul.f32 %v3244_v61, %v4825_v10  ;;  %v3300_v51 = vmul.f32 %v3290_v42, %v3244_v61 }
0x1b57   :  { %v3247_v32 = vmul.f32 %v3245_v43, %v4828_v12  ;;  %v3301_v36 = vmul.f32 %v3297_v5, %v3245_v43 }
0x1b59   :  { %v3250_v52 = vcombine.low %v3246_v60, %v3247_v32  ;;  %v3304_v35 = vcombine.low %v3300_v51, %v3301_v36 }
0x1b5b   :  { %v3257_v62 = vrot.slane %v3250_v52, %v4803_v4  ;;  %v3311_v7 = vrot.slane %v3304_v35, %v4803_v4 }
0x1b5d   :  { %v3264_v13 = vrot.slane %v3257_v62, %v4803_v4  ;;  %v3318_v27 = vrot.slane %v3311_v7, %v4803_v4 }
0x1b5f   :  { %v3266_v10 = vsel %vm915_vm11, %v3264_v13, 0.0  ;;  %v3320_v12 = vsel %vm915_vm11, %v3318_v27, 0.0 }
0x1b60   :  { %3267 = vadd.xlane.f32.xlu1 %v3266_v10  ;;  %3321 = vadd.xlane.f32.xlu0 %v3320_v12 }
0x1b64   :  { %917 = vadd.xlane.f32.xlu1 %v916_v30  ;;  %v4398_v30 = vmov 1983009808  }
0x1b8c   :  { %v1138_v41 = vpop.xlane.xlu0 %1137 }
0x1b8d   :  { %v1139_v16 = vadd.f32 %v5292_v38, %v1138_v41 }
0x1b8f   :  { %3332 = vrot.lane.b32.xlu0 %v1139_v16, %s4385_s10 }
0x1b90   :  { %v1564_v17 = vpop.xlane.xlu0 %1563 }
0x1b91   :  { %v1565_v1 = vadd.f32 %v5292_v38, %v1564_v17 }
0x1b93   :  { %v1351_v20 = vpop.xlane.xlu1 %1350 }
0x1b94   :  { %v1352_v45 = vadd.f32 %v5292_v38, %v1351_v20  ;;  %v1777_v2 = vpop.xlane.xlu0 %1776 }
0x1b95   :  { %v1778_v3 = vadd.f32 %v5292_v38, %v1777_v2 }
0x1b96   :  { %3336 = vrot.lane.b32.xlu1 %v1352_v45, %s4386_s14 }
0x1b97   :  { %v1990_v4 = vpop.xlane.xlu1 %1989  ;;  %3344 = vrot.lane.b32.xlu0 %v1778_v3, %s4387_s15 }
0x1b98   :  { %v2203_v25 = vpop.xlane.xlu0 %2202  ;;  %v1991_v40 = vadd.f32 %v5292_v38, %v1990_v4 }
0x1b99   :  { %v2204_v55 = vadd.f32 %v5292_v38, %v2203_v25 }
0x1b9a   :  { %3340 = vrot.lane.b32.xlu1 %v1565_v1, %s4388_s11 }
0x1b9b   :  { %v2416_v58 = vpop.xlane.xlu1 %2415  ;;  %3352 = vrot.lane.b32.xlu0 %v2204_v55, %s4390_s0 }
0x1b9c   :  { %v2629_v11 = vpop.xlane.xlu0 %2628  ;;  %v2417_v63 = vadd.f32 %v5292_v38, %v2416_v58 }
0x1b9d   :  { %v2630_v15 = vadd.f32 %v5292_v38, %v2629_v11 }
0x1b9e   :  { %3348 = vrot.lane.b32.xlu1 %v1991_v40, %s4391_s12 }
0x1b9f   :  { %3360 = vrot.lane.b32.xlu0 %v2630_v15, %s4376_s21  ;;  %v2842_v59 = vpop.xlane.xlu1 %2841  ;;  %s4396_s21 = smov 12  }
0x1ba0   :  { %v3055_v19 = vpop.xlane.xlu0 %3054  ;;  %v2843_v29 = vadd.f32 %v5292_v38, %v2842_v59 }
0x1ba1   :  { %v3056_v14 = vadd.f32 %v5292_v38, %v3055_v19 }
0x1ba2   :  { %3356 = vrot.lane.b32.xlu1 %v2417_v63, %s4392_s25 }
0x1ba3   :  { %3368 = vrot.lane.b32.xlu0 %v3056_v14, %s4393_s26 }
0x1ba6   :  { %3364 = vrot.lane.b32.xlu1 %v2843_v29, %s4394_s2 }
0x1bed   :  { %v3268_v46 = vpop.xlane.xlu1 %3267  ;;  %v3322_v18 = vpop.xlane.xlu0 %3321 }
0x1bee   :  { %v3269_v50 = vadd.f32 %v5292_v38, %v3268_v46  ;;  %v3330_v44 = vadd.f32 %v3667_v23, %v3322_v18 }
0x1bf0   :  { %3376 = vrot.lane.b32.xlu0 %v3330_v44, %s4396_s21  ;;  %3372 = vrot.lane.b32.xlu1 %v3269_v50, %s4397_s6 }
0x1bf1   :  { %v918_v57 = vpop.xlane.xlu1 %917 }
0x1bf2   :  { %v926_v42 = vadd.f32 %v5292_v38, %v918_v57  ;;  %v3568_v38 = vunpack.c.l.s4 %v4398_v30 }
0x1bf4   :  { %v3569_v41 = vunpack.c.0.s8 %v3568_v38 }
0x1bf6   :  { %v3572_v20 = vsub.s32 %v3569_v41, %v4795_v54 }
0x1c01   :  { %v3333_v21 = vpop.permute.xlu0 %3332 }
0x1c02   :  { %v3380_v61 = vsel %vm3379_vm13, %v926_v42, %v3333_v21 }
0x1c08   :  { %v3337_v33 = vpop.permute.xlu1 %3336 }
0x1c09   :  { %v3345_v34 = vpop.permute.xlu0 %3344  ;;  %v3382_v5 = vsel %vm3381_vm14, %v3380_v61, %v3337_v33 }
0x1c0c   :  { %v3341_v22 = vpop.permute.xlu1 %3340 }
0x1c0d   :  { %v3353_v9 = vpop.permute.xlu0 %3352  ;;  %v3384_v24 = vsel %vm3383_vm15, %v3382_v5, %v3341_v22 }
0x1c0e   :  { %v3386_v43 = vsel %vm3385_vm0, %v3384_v24, %v3345_v34 }
0x1c10   :  { %v3349_v56 = vpop.permute.xlu1 %3348 }
0x1c11   :  { %v3388_v51 = vsel %vm3387_vm1, %v3386_v43, %v3349_v56  ;;  %v3361_v32 = vpop.permute.xlu0 %3360 }
0x1c12   :  { %v3390_v36 = vsel %vm3389_vm2, %v3388_v51, %v3353_v9 }
0x1c14   :  { %v3357_v60 = vpop.permute.xlu1 %3356 }
0x1c15   :  { %v3392_v52 = vsel %vm3391_vm3, %v3390_v36, %v3357_v60  ;;  %v3369_v62 = vpop.permute.xlu0 %3368 }
0x1c16   :  { %v3394_v7 = vsel %vm3393_vm4, %v3392_v52, %v3361_v32 }
0x1c18   :  { %v3365_v35 = vpop.permute.xlu1 %3364 }
0x1c19   :  { %v3396_v6 = vsel %vm3395_vm5, %v3394_v7, %v3365_v35 }
0x1c1a   :  { %v3398_v27 = vsel %vm3397_vm6, %v3396_v6, %v3369_v62 }
0x1c62   :  { %v3377_v13 = vpop.permute.xlu0 %3376  ;;  %v3373_v10 = vpop.permute.xlu1 %3372 }
0x1c63   :  { %v3400_v12 = vsel %vm3399_vm7, %v3398_v27, %v3373_v10 }
0x1c64   :  { %v3402_v28 = vsel %vm3401_vm8, %v3400_v12, %v3377_v13 }
0x1c65   :  { %3670 = vmatmul.mubr.msk.f32.vlgmr.msra.gmra.mrb[16].mxu1 %vm3409_vm9, %v3402_v28  ;;  %3755 = vmatmul.mubr.msk.f32.vlgmr.msra.gmra.mrb[24].mxu0 %vm3409_vm9, %v3402_v28 }
0x1d38   :  { %v3488_v16 = vpop.f32.mrb[16].mxu1  ;;  %v3559_v17 = vpop.f32.mrb[24].mxu0 }
0x1d39   :  { %v3490_v45 = vpop.f32.mrb[17].mxu1  ;;  %v3756_v2 = vpop.f32.mrb[25].mxu0  ;;  %v3580_v4 = vrot.slane %v3559_v17, %v3572_v20 }
0x1d3a   :  { %v3566_v3 = vcombine.low %v3488_v16, %v3490_v45 }
0x1d3c   :  { %v3573_v1 = vrot.slane %v3566_v3, %v3572_v20 }
0x1d3e   :  { %v3581_v25 = vcombine.low %v3573_v1, %v3580_v4 }
0x1d40   :  { %3583 = vst [vmem:[%s5348_s13] sm:$0x3f] %v3581_v25 }
0x1d41   :  { %3588 = vsyncpa [#allocation6], 1 }
0x1d42   :  { %3589 = vsyncpa [#allocation8], 1 }

</bundles_post_ra>
